<compile_context>
chip_gen: v6e
topology: v6e:2x2x1
jax: 0.10.0
libtpu: 0.0.40
codegen_flags: <defaults>
</compile_context>

<pallas_src>
import math

import jax
import jax.numpy as jnp
from jax import lax
from jax.experimental import pallas as pl
from jax.experimental.pallas import tpu as pltpu

# Full-f32 matmuls everywhere (kernel trace and reference) so they compare tightly.
jax.config.update("jax_default_matmul_precision", "highest")

# ---------------- small config consistent with the module ----------------
B = 2            # batch
E = 2            # ensemble_size
S = 8            # seq_len
H = 32           # hidden_size
N_HEADS = 4      # num_attention_heads
N_KV_HEADS = 2   # num_key_value_heads
HEAD_DIM = H // N_HEADS            # 8
HALF = HEAD_DIM // 2               # 4
N_REP = N_HEADS // N_KV_HEADS      # 2
KV_DIM = N_KV_HEADS * HEAD_DIM     # 16
INTER = 64                         # intermediate_size
EPS = 1e-5                         # rms_norm_eps
ROPE_BASE = 10000.0

BS = B * S                         # 16   matmul M dimension inside the kernel
QKV_DIM = H + 2 * KV_DIM           # 64   per-member fused q|k|v width
QKV2 = E * QKV_DIM                 # 128  both members (block-diagonal)
H2 = E * H                         # 64
INTER2 = E * INTER                 # 128


# ---------------- in-kernel helper ----------------
def _rms(t):
    """RMS normalization without gain (gains are folded into the next matmul)."""
    return t * lax.rsqrt(jnp.mean(t * t, axis=-1, keepdims=True) + EPS)


# ---------------- the fused decoder-layer kernel (single step, both members) ----------------
def decoder_layer_kernel(x_ref, wqkv_ref, wo_ref, w12_ref, w3_ref,
                         rope_ref, mask_ref, out_ref):
    # ---- load x in the module's (B, E, S, H) layout, fold to (BS, E*H) ----
    x4 = x_ref[...]
    x0 = x4[:, 0].reshape(BS, H)
    x1 = x4[:, 1].reshape(BS, H)
    x_both = jnp.concatenate([x0, x1], axis=-1)                   # (BS, 2H)

    # ---- input RMSNorm per member (g1 folded into wqkv) ----
    xn_both = jnp.concatenate([_rms(x0), _rms(x1)], axis=-1)      # (BS, 2H)

    # ---- block-diagonal fused QKV projection for both ensemble members.
    #      columns: [q0 | k0 | v0 | q1 | k1 | v1]; q columns pre-scaled by 1/sqrt(hd)
    qkv = jnp.dot(xn_both, wqkv_ref[...], preferred_element_type=jnp.float32)   # (BS, 128)

    # ---- RoPE over the whole fused slab: rotate-half == two lane rolls; the
    #      +/-sin pattern, head boundaries and identity-on-v-lanes are folded
    #      into the precomputed tables.
    rope = rope_ref[...]                                           # (3, BS, 128)
    qkv = (qkv * rope[0]
           + pltpu.roll(qkv, shift=QKV2 - HALF, axis=1) * rope[1]  # x[l+HALF] path
           + pltpu.roll(qkv, shift=HALF, axis=1) * rope[2])        # x[l-HALF] path

    # ---- attention: all B*E*N_HEADS problems batched on the leading axis ----
    def head_slab(lane0):
        return qkv[:, lane0:lane0 + HEAD_DIM].reshape(B, S, HEAD_DIM)

    q_parts, k_parts, v_parts = [], [], []
    for e in range(E):
        off = e * QKV_DIM
        for h in range(N_HEADS):
            kvh = h // N_REP                     # grouped-query head mapping
            q_parts.append(head_slab(off + h * HEAD_DIM))
            k_parts.append(head_slab(off + H + kvh * HEAD_DIM))
            v_parts.append(head_slab(off + H + KV_DIM + kvh * HEAD_DIM))
    q = jnp.concatenate(q_parts, axis=0)         # (E*NH*B, S, hd) = (16, 8, 8)
    k = jnp.concatenate(k_parts, axis=0)
    v = jnp.concatenate(v_parts, axis=0)

    s = jnp.einsum('bsd,btd->bst', q, k, preferred_element_type=jnp.float32)
    s = s + mask_ref[...]                        # additive causal mask (S, S)
    m = jnp.max(s, axis=-1, keepdims=True)
    p = jnp.exp(s - m)
    o = jnp.einsum('bst,btd->bsd', p, v, preferred_element_type=jnp.float32)
    o = o / jnp.sum(p, axis=-1, keepdims=True)   # exact softmax normalization

    # reassemble to the block-diagonal lane layout [e0 h0..h3 | e1 h0..h3]
    attn_both = jnp.concatenate(
        [o[i * B:(i + 1) * B].reshape(BS, HEAD_DIM) for i in range(E * N_HEADS)],
        axis=-1)                                 # (BS, 2H)

    # ---- out projection + residual ----
    h1 = x_both + jnp.dot(attn_both, wo_ref[...], preferred_element_type=jnp.float32)

    # ---- post-attention RMSNorm (g2 folded into w12) + block-diag SwiGLU MLP ----
    hn = jnp.concatenate([_rms(h1[:, :H]), _rms(h1[:, H:])], axis=-1)
    h12 = jnp.dot(hn, w12_ref[...], preferred_element_type=jnp.float32)        # (BS, 4*INTER)
    mlp_in = jax.nn.silu(h12[:, :INTER2]) * h12[:, INTER2:]                    # (BS, 2*INTER)
    y = h1 + jnp.dot(mlp_in, w3_ref[...], preferred_element_type=jnp.float32)  # (BS, 2H)

    # ---- write back in the module's (B, E, S, H) layout ----
    y0 = y[:, :H].reshape(B, S, H)
    y1 = y[:, H:].reshape(B, S, H)
    out_ref[...] = jnp.concatenate([y0[:, None], y1[:, None]], axis=1)


# ---------------- one-time weight / table preparation (amortized; not per call) ----------------
def _fold(wrs):
    # diag(r_e) @ W @ diag(s_e): folds the anchored fast weights -> (E, I, O)
    w, r, s = wrs
    return r[:, :, None] * w[None, :, :] * s[:, None, :]


def _block_diag(b0, b1):
    i0, o0 = b0.shape
    i1, o1 = b1.shape
    top = jnp.concatenate([b0, jnp.zeros((i0, o1), b0.dtype)], axis=1)
    bot = jnp.concatenate([jnp.zeros((i1, o0), b1.dtype), b1], axis=1)
    return jnp.concatenate([top, bot], axis=0)


def prepare_decoder_params(params, cos, sin):
    """Folds r/s fast weights, RMSNorm gains and the attention scale into
    block-diagonal fused weights, and builds the fused RoPE tables.  Run once."""
    scale = 1.0 / math.sqrt(HEAD_DIM)
    g1 = params["g1"][None, :, None]
    g2 = params["g2"][None, :, None]

    wq_f = _fold(params["wq"]) * scale            # score scale pre-folded into q
    wk_f = _fold(params["wk"])
    wv_f = _fold(params["wv"])
    wqkv_e = g1 * jnp.concatenate([wq_f, wk_f, wv_f], axis=-1)     # (E, H, 64)
    wqkv_bd = _block_diag(wqkv_e[0], wqkv_e[1])                    # (2H, 128)

    wo_f = _fold(params["wo"])
    wo_bd = _block_diag(wo_f[0], wo_f[1])                          # (2H, 2H)

    w1_f = g2 * _fold(params["w1"])
    w2_f = g2 * _fold(params["w2"])
    w12_bd = jnp.concatenate([_block_diag(w1_f[0], w1_f[1]),       # gate (2H, 2*INTER)
                              _block_diag(w2_f[0], w2_f[1])],      # up   (2H, 2*INTER)
                             axis=1)                               # (2H, 4*INTER)

    w3_f = _fold(params["w3"])
    w3_bd = _block_diag(w3_f[0], w3_f[1])                          # (2*INTER, 2H)

    # RoPE tables for the fused q|k|v lanes; per head-local lane l:
    #   out[l] = x[l]*cos[l] - x[l+HALF]*sin[l]   (l <  HALF)
    #   out[l] = x[l]*cos[l] + x[l-HALF]*sin[l]   (l >= HALF)
    # realized in-kernel with two lane rolls; v lanes pass through (cos=1,sin=0).
    d = jnp.arange(HEAD_DIM)[None, :]
    sin_a = jnp.where(d < HALF, -sin, 0.0)
    sin_b = jnp.where(d < HALF, 0.0, sin)

    def member_lanes(tab, v_fill):
        return jnp.concatenate(
            [jnp.tile(tab, (1, N_HEADS)),                  # q lanes
             jnp.tile(tab, (1, N_KV_HEADS)),               # k lanes
             jnp.full((S, KV_DIM), v_fill, jnp.float32)],  # v lanes (identity)
            axis=1)                                        # (S, QKV_DIM)

    rope = jnp.stack([member_lanes(cos, 1.0),
                      member_lanes(sin_a, 0.0),
                      member_lanes(sin_b, 0.0)])           # (3, S, 64)
    rope = jnp.tile(rope, (1, B, E))                       # (3, BS, 128)

    return {"wqkv": wqkv_bd, "wo": wo_bd, "w12": w12_bd, "w3": w3_bd, "rope": rope}


# ---------------- per-call wrapper: one gridless pallas_call, everything in VMEM ----------------
@jax.jit
def decoder_layer_pallas(x, folded, mask):
    vmem = pl.BlockSpec(memory_space=pltpu.MemorySpace.VMEM)
    return pl.pallas_call(
        decoder_layer_kernel,
        out_shape=jax.ShapeDtypeStruct((B, E, S, H), jnp.float32),
        in_specs=[vmem] * 7,
        out_specs=vmem,
    )(x, folded["wqkv"], folded["wo"], folded["w12"], folded["w3"],
      folded["rope"], mask)


# ---------------- deterministic parameter init (mirrors reset_parameters) ----------------
def init_anchored_linear(key, in_f, out_f):
    # std = relu gain / sqrt(fan_in of weight.T) = sqrt(2)/sqrt(in_features)
    std = math.sqrt(2.0) / math.sqrt(in_f)
    kw, kr, ks = jax.random.split(key, 3)
    w = std * jax.random.normal(kw, (in_f, out_f), jnp.float32)
    r = 1.0 + std * jax.random.normal(kr, (E, in_f), jnp.float32)
    s = 1.0 + std * jax.random.normal(ks, (E, out_f), jnp.float32)
    return w, r, s


# ---------------- plain-JAX reference for verification ----------------
def _anchored_linear_ref(x, wrs):
    w, r, s = wrs
    return jnp.einsum('besi,io->beso', x * r[None, :, None, :], w) * s[None, :, None, :]


def reference(x, params, cos, sin, mask):
    def rms(t, g):
        var = jnp.mean(t * t, axis=-1, keepdims=True)
        return g * (t * lax.rsqrt(var + EPS))

    def rot_half(t):
        half = t.shape[-1] // 2
        return jnp.concatenate([-t[..., half:], t[..., :half]], axis=-1)

    xn = rms(x, params["g1"])
    xq = _anchored_linear_ref(xn, params["wq"]).reshape(B, E, S, N_HEADS, HEAD_DIM)
    xk = _anchored_linear_ref(xn, params["wk"]).reshape(B, E, S, N_KV_HEADS, HEAD_DIM)
    xv = _anchored_linear_ref(xn, params["wv"]).reshape(B, E, S, N_KV_HEADS, HEAD_DIM)
    cos_b = cos[None, None, :, None, :]
    sin_b = sin[None, None, :, None, :]
    xq = xq * cos_b + rot_half(xq) * sin_b
    xk = xk * cos_b + rot_half(xk) * sin_b
    xk = jnp.repeat(xk, N_REP, axis=3)
    xv = jnp.repeat(xv, N_REP, axis=3)
    aw = jnp.einsum('besnh,betnh->benst', xq, xk) / math.sqrt(HEAD_DIM)
    aw = aw + mask
    aw = jax.nn.softmax(aw, axis=-1)
    ao = jnp.einsum('benst,betnh->bensh', aw, xv)
    ao = ao.transpose(0, 1, 3, 2, 4).reshape(B, E, S, H)
    h = x + _anchored_linear_ref(ao, params["wo"])
    hn = rms(h, params["g2"])
    mlp = _anchored_linear_ref(
        jax.nn.silu(_anchored_linear_ref(hn, params["w1"]))
        * _anchored_linear_ref(hn, params["w2"]),
        params["w3"])
    return h + mlp


if __name__ == "__main__":
    key = jax.random.PRNGKey(0)
    keys = jax.random.split(key, 8)
    params = {
        "wq": init_anchored_linear(keys[0], H, N_HEADS * HEAD_DIM),
        "wk": init_anchored_linear(keys[1], H, KV_DIM),
        "wv": init_anchored_linear(keys[2], H, KV_DIM),
        "wo": init_anchored_linear(keys[3], N_HEADS * HEAD_DIM, H),
        "w1": init_anchored_linear(keys[4], H, INTER),
        "w2": init_anchored_linear(keys[5], H, INTER),
        "w3": init_anchored_linear(keys[6], INTER, H),
        "g1": jnp.ones((H,), jnp.float32),   # RMSNorm weights init to ones
        "g2": jnp.ones((H,), jnp.float32),
    }
    x = jax.random.normal(keys[7], (B, E, S, H), jnp.float32)

    # rotary tables (standard rotate-half RoPE)
    inv_freq = 1.0 / (ROPE_BASE ** (jnp.arange(0, HEAD_DIM, 2, dtype=jnp.float32) / HEAD_DIM))
    t = jnp.arange(S, dtype=jnp.float32)
    freqs = jnp.outer(t, inv_freq)
    emb = jnp.concatenate([freqs, freqs], axis=-1)
    cos, sin = jnp.cos(emb), jnp.sin(emb)

    # additive causal attention mask (broadcast over B, E, heads)
    mask = jnp.where(jnp.tril(jnp.ones((S, S), dtype=bool)), 0.0, -1e9).astype(jnp.float32)

    folded = prepare_decoder_params(params, cos, sin)   # one-time, amortized prep
    out = decoder_layer_pallas(x, folded, mask)
    out = jax.block_until_ready(out)
    assert out.shape == (B, E, S, H)

    ref = reference(x, params, cos, sin, mask)
    err = float(jnp.max(jnp.abs(out - ref)))
    # All matmuls f32, softmax normalization exact; expected error ~1e-5.  The
    # 1e-2 bound only leaves slack for MXU/EUP implementation differences.
    if not err < 1e-2:
        raise AssertionError(f"mismatch vs reference: max abs err {err}")

    print("KERNEL_OK")
</pallas_src>

<mosaic_0001>
module attributes {stable_mosaic.version = 11 : i64} {
  func.func @decoder_layer_kernel(%arg0: memref<2x2x8x32xf32, #tpu.memory_space<vmem>>, %arg1: memref<64x128xf32, #tpu.memory_space<vmem>>, %arg2: memref<64x64xf32, #tpu.memory_space<vmem>>, %arg3: memref<64x256xf32, #tpu.memory_space<vmem>>, %arg4: memref<128x64xf32, #tpu.memory_space<vmem>>, %arg5: memref<3x16x128xf32, #tpu.memory_space<vmem>>, %arg6: memref<8x8xf32, #tpu.memory_space<vmem>>, %arg7: memref<2x2x8x32xf32, #tpu.memory_space<vmem>>) attributes {dimension_semantics = [], scalar_prefetch = 0 : i64, scratch_operands = 0 : i64, tpu.core_type = #tpu.core_type<tc>} {
    %c0 = arith.constant 0 : index
    %c0_0 = arith.constant 0 : index
    %c0_1 = arith.constant 0 : index
    %c0_2 = arith.constant 0 : index
    %0 = vector.load %arg0[%c0, %c0_0, %c0_1, %c0_2] : memref<2x2x8x32xf32, #tpu.memory_space<vmem>>, vector<2x2x8x32xf32>
    %1 = vector.extract_strided_slice %0 {offsets = [0, 0, 0, 0], sizes = [2, 1, 8, 32], strides = [1, 1, 1, 1]} : vector<2x2x8x32xf32> to vector<2x1x8x32xf32>
    %2 = vector.shape_cast %1 : vector<2x1x8x32xf32> to vector<2x8x32xf32>
    %3 = vector.shape_cast %2 : vector<2x8x32xf32> to vector<16x32xf32>
    %4 = vector.extract_strided_slice %0 {offsets = [0, 1, 0, 0], sizes = [2, 1, 8, 32], strides = [1, 1, 1, 1]} : vector<2x2x8x32xf32> to vector<2x1x8x32xf32>
    %5 = vector.shape_cast %4 : vector<2x1x8x32xf32> to vector<2x8x32xf32>
    %6 = vector.shape_cast %5 : vector<2x8x32xf32> to vector<16x32xf32>
    %7 = tpu.concatenate %3, %6 in 1 : vector<16x32xf32>, vector<16x32xf32> -> vector<16x64xf32>
    %8 = arith.mulf %3, %3 : vector<16x32xf32>
    %cst = arith.constant dense<0.000000e+00> : vector<16xf32>
    %9 = vector.multi_reduction <add>, %8, %cst [1] : vector<16x32xf32> to vector<16xf32>
    %10 = vector.shape_cast %9 : vector<16xf32> to vector<16x1xf32>
    %cst_3 = arith.constant 3.200000e+01 : f32
    %11 = vector.broadcast %cst_3 : f32 to vector<16x1xf32>
    %12 = arith.divf %10, %11 : vector<16x1xf32>
    %cst_4 = arith.constant 9.99999974E-6 : f32
    %13 = vector.broadcast %cst_4 : f32 to vector<16x1xf32>
    %14 = arith.addf %12, %13 : vector<16x1xf32>
    %15 = math.rsqrt %14 : vector<16x1xf32>
    %16 = vector.broadcast %15 : vector<16x1xf32> to vector<16x32xf32>
    %17 = arith.mulf %3, %16 : vector<16x32xf32>
    %18 = arith.mulf %6, %6 : vector<16x32xf32>
    %cst_5 = arith.constant dense<0.000000e+00> : vector<16xf32>
    %19 = vector.multi_reduction <add>, %18, %cst_5 [1] : vector<16x32xf32> to vector<16xf32>
    %20 = vector.shape_cast %19 : vector<16xf32> to vector<16x1xf32>
    %cst_6 = arith.constant 3.200000e+01 : f32
    %21 = vector.broadcast %cst_6 : f32 to vector<16x1xf32>
    %22 = arith.divf %20, %21 : vector<16x1xf32>
    %cst_7 = arith.constant 9.99999974E-6 : f32
    %23 = vector.broadcast %cst_7 : f32 to vector<16x1xf32>
    %24 = arith.addf %22, %23 : vector<16x1xf32>
    %25 = math.rsqrt %24 : vector<16x1xf32>
    %26 = vector.broadcast %25 : vector<16x1xf32> to vector<16x32xf32>
    %27 = arith.mulf %6, %26 : vector<16x32xf32>
    %28 = tpu.concatenate %17, %27 in 1 : vector<16x32xf32>, vector<16x32xf32> -> vector<16x64xf32>
    %c0_8 = arith.constant 0 : index
    %c0_9 = arith.constant 0 : index
    %29 = vector.load %arg1[%c0_8, %c0_9] : memref<64x128xf32, #tpu.memory_space<vmem>>, vector<64x128xf32>
    %cst_10 = arith.constant dense<0.000000e+00> : vector<16x128xf32>
    %30 = tpu.matmul %28, %29, %cst_10 {dimension_numbers = #tpu.dot_dimension_numbers<[1], [0], [0], [1], [0, 0, 1, 1], [], []>, precision = #tpu.contract_precision<fp32>} : vector<16x64xf32>, vector<64x128xf32>, vector<16x128xf32> -> vector<16x128xf32>
    %c0_11 = arith.constant 0 : index
    %c0_12 = arith.constant 0 : index
    %c0_13 = arith.constant 0 : index
    %31 = vector.load %arg5[%c0_11, %c0_12, %c0_13] : memref<3x16x128xf32, #tpu.memory_space<vmem>>, vector<3x16x128xf32>
    %32 = vector.extract_strided_slice %31 {offsets = [0, 0, 0], sizes = [1, 16, 128], strides = [1, 1, 1]} : vector<3x16x128xf32> to vector<1x16x128xf32>
    %33 = vector.shape_cast %32 : vector<1x16x128xf32> to vector<16x128xf32>
    %34 = arith.mulf %30, %33 : vector<16x128xf32>
    %c124_i32 = arith.constant 124 : i32
    %35 = tpu.dynamic_rotate %30 by %c124_i32 dim 1 : vector<16x128xf32>, i32 -> vector<16x128xf32>
    %36 = vector.extract_strided_slice %31 {offsets = [1, 0, 0], sizes = [1, 16, 128], strides = [1, 1, 1]} : vector<3x16x128xf32> to vector<1x16x128xf32>
    %37 = vector.shape_cast %36 : vector<1x16x128xf32> to vector<16x128xf32>
    %38 = arith.mulf %35, %37 : vector<16x128xf32>
    %39 = arith.addf %34, %38 : vector<16x128xf32>
    %c4_i32 = arith.constant 4 : i32
    %40 = tpu.dynamic_rotate %30 by %c4_i32 dim 1 : vector<16x128xf32>, i32 -> vector<16x128xf32>
    %41 = vector.extract_strided_slice %31 {offsets = [2, 0, 0], sizes = [1, 16, 128], strides = [1, 1, 1]} : vector<3x16x128xf32> to vector<1x16x128xf32>
    %42 = vector.shape_cast %41 : vector<1x16x128xf32> to vector<16x128xf32>
    %43 = arith.mulf %40, %42 : vector<16x128xf32>
    %44 = arith.addf %39, %43 : vector<16x128xf32>
    %45 = vector.extract_strided_slice %44 {offsets = [0, 0], sizes = [16, 8], strides = [1, 1]} : vector<16x128xf32> to vector<16x8xf32>
    %46 = vector.shape_cast %45 : vector<16x8xf32> to vector<2x8x8xf32>
    %47 = vector.extract_strided_slice %44 {offsets = [0, 32], sizes = [16, 8], strides = [1, 1]} : vector<16x128xf32> to vector<16x8xf32>
    %48 = vector.shape_cast %47 : vector<16x8xf32> to vector<2x8x8xf32>
    %49 = vector.extract_strided_slice %44 {offsets = [0, 48], sizes = [16, 8], strides = [1, 1]} : vector<16x128xf32> to vector<16x8xf32>
    %50 = vector.shape_cast %49 : vector<16x8xf32> to vector<2x8x8xf32>
    %51 = vector.extract_strided_slice %44 {offsets = [0, 8], sizes = [16, 8], strides = [1, 1]} : vector<16x128xf32> to vector<16x8xf32>
    %52 = vector.shape_cast %51 : vector<16x8xf32> to vector<2x8x8xf32>
    %53 = vector.extract_strided_slice %44 {offsets = [0, 32], sizes = [16, 8], strides = [1, 1]} : vector<16x128xf32> to vector<16x8xf32>
    %54 = vector.shape_cast %53 : vector<16x8xf32> to vector<2x8x8xf32>
    %55 = vector.extract_strided_slice %44 {offsets = [0, 48], sizes = [16, 8], strides = [1, 1]} : vector<16x128xf32> to vector<16x8xf32>
    %56 = vector.shape_cast %55 : vector<16x8xf32> to vector<2x8x8xf32>
    %57 = vector.extract_strided_slice %44 {offsets = [0, 16], sizes = [16, 8], strides = [1, 1]} : vector<16x128xf32> to vector<16x8xf32>
    %58 = vector.shape_cast %57 : vector<16x8xf32> to vector<2x8x8xf32>
    %59 = vector.extract_strided_slice %44 {offsets = [0, 40], sizes = [16, 8], strides = [1, 1]} : vector<16x128xf32> to vector<16x8xf32>
    %60 = vector.shape_cast %59 : vector<16x8xf32> to vector<2x8x8xf32>
    %61 = vector.extract_strided_slice %44 {offsets = [0, 56], sizes = [16, 8], strides = [1, 1]} : vector<16x128xf32> to vector<16x8xf32>
    %62 = vector.shape_cast %61 : vector<16x8xf32> to vector<2x8x8xf32>
    %63 = vector.extract_strided_slice %44 {offsets = [0, 24], sizes = [16, 8], strides = [1, 1]} : vector<16x128xf32> to vector<16x8xf32>
    %64 = vector.shape_cast %63 : vector<16x8xf32> to vector<2x8x8xf32>
    %65 = vector.extract_strided_slice %44 {offsets = [0, 40], sizes = [16, 8], strides = [1, 1]} : vector<16x128xf32> to vector<16x8xf32>
    %66 = vector.shape_cast %65 : vector<16x8xf32> to vector<2x8x8xf32>
    %67 = vector.extract_strided_slice %44 {offsets = [0, 56], sizes = [16, 8], strides = [1, 1]} : vector<16x128xf32> to vector<16x8xf32>
    %68 = vector.shape_cast %67 : vector<16x8xf32> to vector<2x8x8xf32>
    %69 = vector.extract_strided_slice %44 {offsets = [0, 64], sizes = [16, 8], strides = [1, 1]} : vector<16x128xf32> to vector<16x8xf32>
    %70 = vector.shape_cast %69 : vector<16x8xf32> to vector<2x8x8xf32>
    %71 = vector.extract_strided_slice %44 {offsets = [0, 96], sizes = [16, 8], strides = [1, 1]} : vector<16x128xf32> to vector<16x8xf32>
    %72 = vector.shape_cast %71 : vector<16x8xf32> to vector<2x8x8xf32>
    %73 = vector.extract_strided_slice %44 {offsets = [0, 112], sizes = [16, 8], strides = [1, 1]} : vector<16x128xf32> to vector<16x8xf32>
    %74 = vector.shape_cast %73 : vector<16x8xf32> to vector<2x8x8xf32>
    %75 = vector.extract_strided_slice %44 {offsets = [0, 72], sizes = [16, 8], strides = [1, 1]} : vector<16x128xf32> to vector<16x8xf32>
    %76 = vector.shape_cast %75 : vector<16x8xf32> to vector<2x8x8xf32>
    %77 = vector.extract_strided_slice %44 {offsets = [0, 96], sizes = [16, 8], strides = [1, 1]} : vector<16x128xf32> to vector<16x8xf32>
    %78 = vector.shape_cast %77 : vector<16x8xf32> to vector<2x8x8xf32>
    %79 = vector.extract_strided_slice %44 {offsets = [0, 112], sizes = [16, 8], strides = [1, 1]} : vector<16x128xf32> to vector<16x8xf32>
    %80 = vector.shape_cast %79 : vector<16x8xf32> to vector<2x8x8xf32>
    %81 = vector.extract_strided_slice %44 {offsets = [0, 80], sizes = [16, 8], strides = [1, 1]} : vector<16x128xf32> to vector<16x8xf32>
    %82 = vector.shape_cast %81 : vector<16x8xf32> to vector<2x8x8xf32>
    %83 = vector.extract_strided_slice %44 {offsets = [0, 104], sizes = [16, 8], strides = [1, 1]} : vector<16x128xf32> to vector<16x8xf32>
    %84 = vector.shape_cast %83 : vector<16x8xf32> to vector<2x8x8xf32>
    %85 = vector.extract_strided_slice %44 {offsets = [0, 120], sizes = [16, 8], strides = [1, 1]} : vector<16x128xf32> to vector<16x8xf32>
    %86 = vector.shape_cast %85 : vector<16x8xf32> to vector<2x8x8xf32>
    %87 = vector.extract_strided_slice %44 {offsets = [0, 88], sizes = [16, 8], strides = [1, 1]} : vector<16x128xf32> to vector<16x8xf32>
    %88 = vector.shape_cast %87 : vector<16x8xf32> to vector<2x8x8xf32>
    %89 = vector.extract_strided_slice %44 {offsets = [0, 104], sizes = [16, 8], strides = [1, 1]} : vector<16x128xf32> to vector<16x8xf32>
    %90 = vector.shape_cast %89 : vector<16x8xf32> to vector<2x8x8xf32>
    %91 = vector.extract_strided_slice %44 {offsets = [0, 120], sizes = [16, 8], strides = [1, 1]} : vector<16x128xf32> to vector<16x8xf32>
    %92 = vector.shape_cast %91 : vector<16x8xf32> to vector<2x8x8xf32>
    %93 = tpu.concatenate %46, %52, %58, %64, %70, %76, %82, %88 in 0 : vector<2x8x8xf32>, vector<2x8x8xf32>, vector<2x8x8xf32>, vector<2x8x8xf32>, vector<2x8x8xf32>, vector<2x8x8xf32>, vector<2x8x8xf32>, vector<2x8x8xf32> -> vector<16x8x8xf32>
    %94 = tpu.concatenate %48, %54, %60, %66, %72, %78, %84, %90 in 0 : vector<2x8x8xf32>, vector<2x8x8xf32>, vector<2x8x8xf32>, vector<2x8x8xf32>, vector<2x8x8xf32>, vector<2x8x8xf32>, vector<2x8x8xf32>, vector<2x8x8xf32> -> vector<16x8x8xf32>
    %95 = tpu.concatenate %50, %56, %62, %68, %74, %80, %86, %92 in 0 : vector<2x8x8xf32>, vector<2x8x8xf32>, vector<2x8x8xf32>, vector<2x8x8xf32>, vector<2x8x8xf32>, vector<2x8x8xf32>, vector<2x8x8xf32>, vector<2x8x8xf32> -> vector<16x8x8xf32>
    "tpu.trace_start"() <{level = 10 : i32, message = "bsd,btd->bst"}> : () -> ()
    %cst_14 = arith.constant dense<0.000000e+00> : vector<16x8x8xf32>
    %96 = tpu.matmul %93, %94, %cst_14 {dimension_numbers = #tpu.dot_dimension_numbers<[2], [2], [1], [1], [0, 0, 0, 1, 1, 1], [0], [0]>, precision = #tpu.contract_precision<fp32>} : vector<16x8x8xf32>, vector<16x8x8xf32>, vector<16x8x8xf32> -> vector<16x8x8xf32>
    "tpu.trace_stop"() : () -> ()
    %c0_15 = arith.constant 0 : index
    %c0_16 = arith.constant 0 : index
    %97 = vector.load %arg6[%c0_15, %c0_16] : memref<8x8xf32, #tpu.memory_space<vmem>>, vector<8x8xf32>
    %98 = vector.shape_cast %97 : vector<8x8xf32> to vector<1x8x8xf32>
    %99 = vector.broadcast %98 : vector<1x8x8xf32> to vector<16x8x8xf32>
    %100 = arith.addf %96, %99 : vector<16x8x8xf32>
    %cst_17 = arith.constant dense<0xFF800000> : vector<16x8xf32>
    %101 = vector.multi_reduction <maximumf>, %100, %cst_17 [2] : vector<16x8x8xf32> to vector<16x8xf32>
    %102 = vector.shape_cast %101 : vector<16x8xf32> to vector<16x8x1xf32>
    %103 = vector.broadcast %102 : vector<16x8x1xf32> to vector<16x8x8xf32>
    %104 = arith.subf %100, %103 : vector<16x8x8xf32>
    %105 = math.exp %104 : vector<16x8x8xf32>
    "tpu.trace_start"() <{level = 10 : i32, message = "bst,btd->bsd"}> : () -> ()
    %cst_18 = arith.constant dense<0.000000e+00> : vector<16x8x8xf32>
    %106 = tpu.matmul %105, %95, %cst_18 {dimension_numbers = #tpu.dot_dimension_numbers<[2], [1], [1], [2], [0, 0, 0, 1, 1, 2], [0], [0]>, precision = #tpu.contract_precision<fp32>} : vector<16x8x8xf32>, vector<16x8x8xf32>, vector<16x8x8xf32> -> vector<16x8x8xf32>
    "tpu.trace_stop"() : () -> ()
    %cst_19 = arith.constant dense<0.000000e+00> : vector<16x8xf32>
    %107 = vector.multi_reduction <add>, %105, %cst_19 [2] : vector<16x8x8xf32> to vector<16x8xf32>
    %108 = vector.shape_cast %107 : vector<16x8xf32> to vector<16x8x1xf32>
    %109 = vector.broadcast %108 : vector<16x8x1xf32> to vector<16x8x8xf32>
    %110 = arith.divf %106, %109 : vector<16x8x8xf32>
    %111 = vector.extract_strided_slice %110 {offsets = [0, 0, 0], sizes = [2, 8, 8], strides = [1, 1, 1]} : vector<16x8x8xf32> to vector<2x8x8xf32>
    %112 = vector.shape_cast %111 : vector<2x8x8xf32> to vector<16x8xf32>
    %113 = vector.extract_strided_slice %110 {offsets = [2, 0, 0], sizes = [2, 8, 8], strides = [1, 1, 1]} : vector<16x8x8xf32> to vector<2x8x8xf32>
    %114 = vector.shape_cast %113 : vector<2x8x8xf32> to vector<16x8xf32>
    %115 = vector.extract_strided_slice %110 {offsets = [4, 0, 0], sizes = [2, 8, 8], strides = [1, 1, 1]} : vector<16x8x8xf32> to vector<2x8x8xf32>
    %116 = vector.shape_cast %115 : vector<2x8x8xf32> to vector<16x8xf32>
    %117 = vector.extract_strided_slice %110 {offsets = [6, 0, 0], sizes = [2, 8, 8], strides = [1, 1, 1]} : vector<16x8x8xf32> to vector<2x8x8xf32>
    %118 = vector.shape_cast %117 : vector<2x8x8xf32> to vector<16x8xf32>
    %119 = vector.extract_strided_slice %110 {offsets = [8, 0, 0], sizes = [2, 8, 8], strides = [1, 1, 1]} : vector<16x8x8xf32> to vector<2x8x8xf32>
    %120 = vector.shape_cast %119 : vector<2x8x8xf32> to vector<16x8xf32>
    %121 = vector.extract_strided_slice %110 {offsets = [10, 0, 0], sizes = [2, 8, 8], strides = [1, 1, 1]} : vector<16x8x8xf32> to vector<2x8x8xf32>
    %122 = vector.shape_cast %121 : vector<2x8x8xf32> to vector<16x8xf32>
    %123 = vector.extract_strided_slice %110 {offsets = [12, 0, 0], sizes = [2, 8, 8], strides = [1, 1, 1]} : vector<16x8x8xf32> to vector<2x8x8xf32>
    %124 = vector.shape_cast %123 : vector<2x8x8xf32> to vector<16x8xf32>
    %125 = vector.extract_strided_slice %110 {offsets = [14, 0, 0], sizes = [2, 8, 8], strides = [1, 1, 1]} : vector<16x8x8xf32> to vector<2x8x8xf32>
    %126 = vector.shape_cast %125 : vector<2x8x8xf32> to vector<16x8xf32>
    %127 = tpu.concatenate %112, %114, %116, %118, %120, %122, %124, %126 in 1 : vector<16x8xf32>, vector<16x8xf32>, vector<16x8xf32>, vector<16x8xf32>, vector<16x8xf32>, vector<16x8xf32>, vector<16x8xf32>, vector<16x8xf32> -> vector<16x64xf32>
    %c0_20 = arith.constant 0 : index
    %c0_21 = arith.constant 0 : index
    %128 = vector.load %arg2[%c0_20, %c0_21] : memref<64x64xf32, #tpu.memory_space<vmem>>, vector<64x64xf32>
    %cst_22 = arith.constant dense<0.000000e+00> : vector<16x64xf32>
    %129 = tpu.matmul %127, %128, %cst_22 {dimension_numbers = #tpu.dot_dimension_numbers<[1], [0], [0], [1], [0, 0, 1, 1], [], []>, precision = #tpu.contract_precision<fp32>} : vector<16x64xf32>, vector<64x64xf32>, vector<16x64xf32> -> vector<16x64xf32>
    %130 = arith.addf %7, %129 : vector<16x64xf32>
    %131 = vector.extract_strided_slice %130 {offsets = [0, 0], sizes = [16, 32], strides = [1, 1]} : vector<16x64xf32> to vector<16x32xf32>
    %132 = arith.mulf %131, %131 : vector<16x32xf32>
    %cst_23 = arith.constant dense<0.000000e+00> : vector<16xf32>
    %133 = vector.multi_reduction <add>, %132, %cst_23 [1] : vector<16x32xf32> to vector<16xf32>
    %134 = vector.shape_cast %133 : vector<16xf32> to vector<16x1xf32>
    %cst_24 = arith.constant 3.200000e+01 : f32
    %135 = vector.broadcast %cst_24 : f32 to vector<16x1xf32>
    %136 = arith.divf %134, %135 : vector<16x1xf32>
    %cst_25 = arith.constant 9.99999974E-6 : f32
    %137 = vector.broadcast %cst_25 : f32 to vector<16x1xf32>
    %138 = arith.addf %136, %137 : vector<16x1xf32>
    %139 = math.rsqrt %138 : vector<16x1xf32>
    %140 = vector.broadcast %139 : vector<16x1xf32> to vector<16x32xf32>
    %141 = arith.mulf %131, %140 : vector<16x32xf32>
    %142 = vector.extract_strided_slice %130 {offsets = [0, 32], sizes = [16, 32], strides = [1, 1]} : vector<16x64xf32> to vector<16x32xf32>
    %143 = arith.mulf %142, %142 : vector<16x32xf32>
    %cst_26 = arith.constant dense<0.000000e+00> : vector<16xf32>
    %144 = vector.multi_reduction <add>, %143, %cst_26 [1] : vector<16x32xf32> to vector<16xf32>
    %145 = vector.shape_cast %144 : vector<16xf32> to vector<16x1xf32>
    %cst_27 = arith.constant 3.200000e+01 : f32
    %146 = vector.broadcast %cst_27 : f32 to vector<16x1xf32>
    %147 = arith.divf %145, %146 : vector<16x1xf32>
    %cst_28 = arith.constant 9.99999974E-6 : f32
    %148 = vector.broadcast %cst_28 : f32 to vector<16x1xf32>
    %149 = arith.addf %147, %148 : vector<16x1xf32>
    %150 = math.rsqrt %149 : vector<16x1xf32>
    %151 = vector.broadcast %150 : vector<16x1xf32> to vector<16x32xf32>
    %152 = arith.mulf %142, %151 : vector<16x32xf32>
    %153 = tpu.concatenate %141, %152 in 1 : vector<16x32xf32>, vector<16x32xf32> -> vector<16x64xf32>
    %c0_29 = arith.constant 0 : index
    %c0_30 = arith.constant 0 : index
    %154 = vector.load %arg3[%c0_29, %c0_30] : memref<64x256xf32, #tpu.memory_space<vmem>>, vector<64x256xf32>
    %cst_31 = arith.constant dense<0.000000e+00> : vector<16x256xf32>
    %155 = tpu.matmul %153, %154, %cst_31 {dimension_numbers = #tpu.dot_dimension_numbers<[1], [0], [0], [1], [0, 0, 1, 1], [], []>, precision = #tpu.contract_precision<fp32>} : vector<16x64xf32>, vector<64x256xf32>, vector<16x256xf32> -> vector<16x256xf32>
    %156 = vector.extract_strided_slice %155 {offsets = [0, 0], sizes = [16, 128], strides = [1, 1]} : vector<16x256xf32> to vector<16x128xf32>
    %157 = arith.negf %156 : vector<16x128xf32>
    %158 = math.exp %157 : vector<16x128xf32>
    %cst_32 = arith.constant 1.000000e+00 : f32
    %159 = vector.broadcast %cst_32 : f32 to vector<16x128xf32>
    %160 = arith.addf %159, %158 : vector<16x128xf32>
    %161 = arith.divf %159, %160 : vector<16x128xf32>
    %162 = arith.mulf %156, %161 : vector<16x128xf32>
    %163 = vector.extract_strided_slice %155 {offsets = [0, 128], sizes = [16, 128], strides = [1, 1]} : vector<16x256xf32> to vector<16x128xf32>
    %164 = arith.mulf %162, %163 : vector<16x128xf32>
    %c0_33 = arith.constant 0 : index
    %c0_34 = arith.constant 0 : index
    %165 = vector.load %arg4[%c0_33, %c0_34] : memref<128x64xf32, #tpu.memory_space<vmem>>, vector<128x64xf32>
    %cst_35 = arith.constant dense<0.000000e+00> : vector<16x64xf32>
    %166 = tpu.matmul %164, %165, %cst_35 {dimension_numbers = #tpu.dot_dimension_numbers<[1], [0], [0], [1], [0, 0, 1, 1], [], []>, precision = #tpu.contract_precision<fp32>} : vector<16x128xf32>, vector<128x64xf32>, vector<16x64xf32> -> vector<16x64xf32>
    %167 = arith.addf %130, %166 : vector<16x64xf32>
    %168 = vector.extract_strided_slice %167 {offsets = [0, 0], sizes = [16, 32], strides = [1, 1]} : vector<16x64xf32> to vector<16x32xf32>
    %169 = vector.shape_cast %168 : vector<16x32xf32> to vector<2x8x32xf32>
    %170 = vector.extract_strided_slice %167 {offsets = [0, 32], sizes = [16, 32], strides = [1, 1]} : vector<16x64xf32> to vector<16x32xf32>
    %171 = vector.shape_cast %170 : vector<16x32xf32> to vector<2x8x32xf32>
    %172 = vector.shape_cast %169 : vector<2x8x32xf32> to vector<2x1x8x32xf32>
    %173 = vector.shape_cast %171 : vector<2x8x32xf32> to vector<2x1x8x32xf32>
    %174 = tpu.concatenate %172, %173 in 1 : vector<2x1x8x32xf32>, vector<2x1x8x32xf32> -> vector<2x2x8x32xf32>
    %c0_36 = arith.constant 0 : index
    %c0_37 = arith.constant 0 : index
    %c0_38 = arith.constant 0 : index
    %c0_39 = arith.constant 0 : index
    %175 = vector.load %arg7[%c0_36, %c0_37, %c0_38, %c0_39] : memref<2x2x8x32xf32, #tpu.memory_space<vmem>>, vector<2x2x8x32xf32>
    tpu.vector_store %arg7[%c0_36, %c0_37, %c0_38, %c0_39], %174 {strides = array<i32>} : memref<2x2x8x32xf32, #tpu.memory_space<vmem>>, vector<2x2x8x32xf32>,
    return
  }
}

</mosaic_0001>

<bundles_post_ra>
// kernel: decoder_layer_pallas.1
= control target key start
LH: loop header
LB: loop body
LE: loop exit
PB: predicated region body
PF: predicated region fallthrough
CT: control target
= control target key end

     0   :  { %12 = vsyncpa [#allocation3], 0  ;;  %s22592_s0 = inlined_call_operand.hbm [shape: f32[2,2,8,32], index: 0, kind: input, shape index: {}]   ;;  %s22593_s1 = inlined_call_operand.vmem [shape: f32[64,128], index: 1, kind: input, shape index: {}]   ;;  %s22594_s2 = inlined_call_operand.hbm [shape: f32[64,64], index: 2, kind: input, shape index: {}]   ;;  %s22595_s3 = inlined_call_operand.vmem [shape: f32[64,256], index: 3, kind: input, shape index: {}]   ;;  %s22596_s4 = inlined_call_operand.vmem [shape: f32[128,64], index: 4, kind: input, shape index: {}]   ;;  %s22597_s5 = inlined_call_operand.hbm [shape: f32[3,16,128], index: 5, kind: input, shape index: {}]   ;;  %s22598_s6 = inlined_call_operand.vmem [shape: f32[8,8], index: 6, kind: input, shape index: {}]   ;;  %s22599_s7 = inlined_call_operand.hbm [shape: f32[2,2,8,32], index: 7, kind: output, shape index: {}]  }
   0x1   :  { %13 = vsyncpa [#allocation6], 0 }
   0x2   :  { %14 = vsyncpa [#allocation4], 0  ;;  %s19751_s24 = smov [#allocation5]   ;;  %s19752_s26 = smov [#allocation2]  }
   0x3   :  { %s34_s25 = sshll.u32 %s19751_s24, 4  ;;  %s20_s27 = sshll.u32 %s19752_s26, 4  ;;  %s35_s25 = int_to_ptr.vmem [resolvable:$true] %s34_s25  ;;  %s21_s27 = int_to_ptr.vmem [resolvable:$true] %s20_s27 }
   0x4   :  { %s19673_s28 = scalar_lea.vmem %s35_s25, 1024  ;;  %p19678_p1 = scmp.lt.s32.totalorder %s35_s25, %s35_s25 }
   0x5   :  { %p19674_p0 = scmp.ne.s32.totalorder %s35_s25, %s19673_s28  ;;  %p19679_p2 = scmp.lt.s32.totalorder %s19673_s28, %s19673_s28 }
   0x7   :  { %p19680_p3 = por %p19679_p2, %p19678_p1 }
   0x9   :  { %p19681_p4 = pnand %p19680_p3, %p19674_p0 }
   0xb   :  { %19684 = shalt.err (!%p19681_p4)
}
   0xc   :  { %s19753_s29 = smov 128   ;;  %s19754_s30 = smov 8  }
   0xd   :  { %40 = dma.hbm_to_vmem [thread:$0]  %s22594_s2, 1024, %s35_s25, [#allocation6], %s19753_s29, %s19753_s29, %s19754_s30  }
   0xe   :  { %s19693_s10 = scalar_lea.vmem %s21_s27, 512  ;;  %p19698_p6 = scmp.lt.s32.totalorder %s21_s27, %s21_s27 }
   0xf   :  { %p19694_p5 = scmp.ne.s32.totalorder %s21_s27, %s19693_s10  ;;  %p19699_p7 = scmp.lt.s32.totalorder %s19693_s10, %s19693_s10 }
  0x11   :  { %p19700_p8 = por %p19699_p7, %p19698_p6 }
  0x13   :  { %p19701_p9 = pnand %p19700_p8, %p19694_p5 }
  0x15   :  { %19704 = shalt.err (!%p19701_p9)
}
  0x16   :  { %26 = dma.hbm_to_vmem [thread:$0]  %s22592_s0, 512, %s21_s27, [#allocation3], %s19753_s29, %s19753_s29, %s19754_s30  }
  0x17   :  { %s19755_s13 = smov [#allocation7]  }
  0x18   :  { %s50_s14 = sshll.u32 %s19755_s13, 4  ;;  %s51_s14 = int_to_ptr.vmem [resolvable:$true] %s50_s14 }
  0x19   :  { %s19713_s15 = scalar_lea.vmem %s51_s14, 768  ;;  %p19718_p11 = scmp.lt.s32.totalorder %s51_s14, %s51_s14 }
  0x1a   :  { %p19714_p10 = scmp.ne.s32.totalorder %s51_s14, %s19713_s15  ;;  %p19719_p12 = scmp.lt.s32.totalorder %s19713_s15, %s19713_s15 }
  0x1c   :  { %p19720_p13 = por %p19719_p12, %p19718_p11 }
  0x1e   :  { %p19721_p0 = pnand %p19720_p13, %p19714_p10 }
  0x20   :  { %19724 = shalt.err (!%p19721_p0)
}
  0x21   :  { %56 = dma.hbm_to_vmem [thread:$0]  %s22597_s5, 768, %s51_s14, [#allocation6], %s19753_s29, %s19753_s29, %s19754_s30  }
  0x22   :  { %19745 = dma.done.wait [#allocation3], 512  }
  0x23   :  { %19746 = vsyncadd [#allocation3], 4294966784 }
  0x24   :  { %19747 = dma.done.wait [#allocation6], 1792  }
  0x25   :  { %19748 = vsyncadd [#allocation6], 4294965504  ;;  %v19831_v0 = vld [vmem:[#allocation2 + $0x8] sm:$0xff]  ;;  %vm80_vm0 = vcmask 261120   ;;  %v19833_v1 = vld [vmem:[#allocation2 + $0x18] sm:$0xff]  ;;  %vm134_vm1 = vcmask 523264  }
  0x26   :  { %v19835_v2 = vld [vmem:[#allocation2] sm:$0xff]  ;;  %v100_v3 = vmul.f32 %v19831_v0, %v19831_v0  ;;  %v101_v4 = vmul.f32 %v19833_v1, %v19833_v1  ;;  %v19843_v6 = vld [vmem:[#allocation2 + $0x10] sm:$0xff]  ;;  %v133_v12 = vld [vmem:[%s22593_s1 + $0x38] sm:$0xff]  ;;  %s19757_s10 = smov 124   ;;  %s19758_s11 = smov 4   ;;  %vm19760_vm2 = vmmov 0  }
  0x27   :  { %v83_v5 = vmul.f32 %v19835_v2, %v19835_v2  ;;  %v84_v7 = vmul.f32 %v19843_v6, %v19843_v6  ;;  %v132_v13 = vld [vmem:[%s22593_s1 + $0x30] sm:$0xff]  ;;  %v131_v14 = vld [vmem:[%s22593_s1 + $0x28] sm:$0xff]  ;;  %v19860_v15 = vand.u32 4294901760, %v133_v12  ;;  %v130_v18 = vld [vmem:[%s22593_s1 + $0x20] sm:$0xff]  ;;  %s19761_s12 = smov 96   ;;  %s19762_s13 = smov 120  }
  0x28   :  { %v102_v8 = vsel %vm80_vm0, %v100_v3, 0.0  ;;  %v105_v10 = vsel %vm80_vm0, %v101_v4, 0.0  ;;  %v19862_v16 = vand.u32 4294901760, %v132_v13  ;;  %v19864_v17 = vand.u32 4294901760, %v131_v14  ;;  %v129_v19 = vld [vmem:[%s22593_s1 + $0x18] sm:$0xff]  ;;  %v128_v42 = vld [vmem:[%s22593_s1 + $0x10] sm:$0xff] }
  0x29   :  { %v85_v9 = vsel %vm80_vm0, %v83_v5, 0.0  ;;  %103 = vadd.xlane.f32.xlu0 %v102_v8  ;;  %v88_v11 = vsel %vm80_vm0, %v84_v7, 0.0  ;;  %v19872_v20 = vand.u32 4294901760, %v130_v18  ;;  %v19874_v21 = vand.u32 4294901760, %v129_v19  ;;  %18152 = vmatprep.subr.mxu0 %v19860_v15  ;;  %v127_v45 = vld [vmem:[%s22593_s1 + $0x8] sm:$0xff]  ;;  %v126_v49 = vld [vmem:[%s22593_s1] sm:$0xff] }
  0x2a   :  { %86 = vadd.xlane.f32.xlu1 %v85_v9  ;;  %v19877_v22 = vsub.f32 %v133_v12, %v19860_v15  ;;  %v19880_v23 = vsub.f32 %v132_v13, %v19862_v16  ;;  %v19883_v24 = vsub.f32 %v131_v14, %v19864_v17  ;;  %18153 = vmatpush3.msra.mxu0 %v19860_v15  ;;  %v19929_v43 = vand.u32 4294901760, %v128_v42  ;;  %s19756_s1 = smov 32   ;;  %s19763_s14 = smov 64  }
  0x2b   :  { %v19887_v25 = vsub.f32 %v130_v18, %v19872_v20  ;;  %v19890_v26 = vsub.f32 %v129_v19, %v19874_v21  ;;  %18154 = vmatprep.subr.mxu0 %v19862_v16  ;;  %v19937_v48 = vand.u32 4294901760, %v127_v45  ;;  %v19951_v54 = vand.u32 4294901760, %v126_v49  ;;  %s19764_s15 = smov 112   ;;  %s19765_s2 = smov 104  }
  0x2c   :  { %v19894_v27 = vand.u32 4294901760, %v19877_v22  ;;  %v19897_v28 = vand.u32 4294901760, %v19880_v23  ;;  %v19900_v29 = vand.u32 4294901760, %v19883_v24  ;;  %18155 = vmatpush3.msra.mxu0 %v19862_v16  ;;  %v19935_v47 = vsub.f32 %v128_v42, %v19929_v43  ;;  %s19766_s16 = smov 56   ;;  %s19767_s0 = smov 48  }
  0x2d   :  { %106 = vadd.xlane.f32.xlu0 %v105_v10  ;;  %v19904_v30 = vand.u32 4294901760, %v19887_v25  ;;  %v19914_v34 = vand.u32 4294901760, %v19890_v26  ;;  %18156 = vmatprep.subr.mxu0 %v19864_v17  ;;  %v19948_v52 = vsub.f32 %v127_v45, %v19937_v48  ;;  %v19960_v58 = vsub.f32 %v126_v49, %v19951_v54  ;;  %s19768_s5 = smov 40   ;;  %s19769_s19 = smov 80  }
  0x2e   :  { %89 = vadd.xlane.f32.xlu1 %v88_v11  ;;  %v254_v31 = vsub.f32 %v19877_v22, %v19894_v27  ;;  %v261_v32 = vsub.f32 %v19880_v23, %v19897_v28  ;;  %v268_v33 = vsub.f32 %v19883_v24, %v19900_v29  ;;  %18157 = vmatpush3.msra.mxu0 %v19864_v17  ;;  %v19945_v51 = vand.u32 4294901760, %v19935_v47  ;;  %s19771_s22 = smov 16  }
  0x2f   :  { %v275_v37 = vsub.f32 %v19887_v25, %v19904_v30  ;;  %18158 = vmatprep.subr.mxu0 %v19872_v20  ;;  %v282_v39 = vsub.f32 %v19890_v26, %v19914_v34  ;;  %v19957_v57 = vand.u32 4294901760, %v19948_v52  ;;  %v19967_v62 = vand.u32 4294901760, %v19960_v58 }
  0x30   :  { %v255_v35 = vand.u32 4294901760, %v254_v31  ;;  %v262_v36 = vand.u32 4294901760, %v261_v32  ;;  %18159 = vmatpush3.msra.mxu0 %v19872_v20  ;;  %v269_v38 = vand.u32 4294901760, %v268_v33  ;;  %v289_v56 = vsub.f32 %v19935_v47, %v19945_v51 }
  0x31   :  { %18160 = vmatprep.subr.mxu0 %v19874_v21  ;;  %v276_v40 = vand.u32 4294901760, %v275_v37  ;;  %v283_v41 = vand.u32 4294901760, %v282_v39  ;;  %v296_v61 = vsub.f32 %v19948_v52, %v19957_v57  ;;  %v303_v3 = vsub.f32 %v19960_v58, %v19967_v62 }
  0x32   :  { %18171 = vmatprep.subr.mxu1 %v255_v35  ;;  %18161 = vmatpush3.msra.mxu0 %v19874_v21  ;;  %v290_v60 = vand.u32 4294901760, %v289_v56  ;;  %v721_v56 = vld [vmem:[#allocation7] sm:$0xff]  ;;  %vm778_vm3 = vcmask 64512   ;;  %vm15419_vm4 = vcmask 130048   ;;  %vm15422_vm5 = vcmask 195584  }
  0x33   :  { %18172 = vmatpush3.msra.mxu1 %v255_v35  ;;  %18162 = vmatprep.subr.mxu0 %v19929_v43  ;;  %v297_v63 = vand.u32 4294901760, %v296_v61  ;;  %v304_v4 = vand.u32 4294901760, %v303_v3  ;;  %v725_v61 = vld [vmem:[#allocation7 + $0x20] sm:$0xff]  ;;  %vm15427_vm6 = vcmask 326656   ;;  %vm15430_vm7 = vcmask 392192  }
  0x34   :  { %18173 = vmatprep.subr.mxu1 %v262_v36  ;;  %18163 = vmatpush3.msra.mxu0 %v19929_v43  ;;  %vm15433_vm8 = vcmask 457728  }
  0x35   :  { %18174 = vmatpush3.msra.mxu1 %v262_v36  ;;  %18164 = vmatprep.subr.mxu0 %v19937_v48 }
  0x36   :  { %18175 = vmatprep.subr.mxu1 %v269_v38  ;;  %18165 = vmatpush3.msra.mxu0 %v19937_v48 }
  0x37   :  { %18176 = vmatpush3.msra.mxu1 %v269_v38  ;;  %18166 = vmatprep.subr.mxu0 %v19951_v54 }
  0x38   :  { %18177 = vmatprep.subr.mxu1 %v276_v40  ;;  %18167 = vmatpush3.msra.mxu0 %v19951_v54 }
  0x39   :  { %18178 = vmatpush3.msra.mxu1 %v276_v40  ;;  %18190 = vmatprep.subr.mxu0 %v19877_v22 }
  0x3a   :  { %18179 = vmatprep.subr.mxu1 %v283_v41 }
  0x3b   :  { %18180 = vmatpush3.msra.mxu1 %v283_v41 }
  0x3c   :  { %18181 = vmatprep.subr.mxu1 %v290_v60 }
  0x3d   :  { %18182 = vmatpush3.msra.mxu1 %v290_v60 }
  0x3e   :  { %18183 = vmatprep.subr.mxu1 %v297_v63 }
  0x3f   :  { %18184 = vmatpush3.msra.mxu1 %v297_v63  ;;  %v722_v63 = vld [vmem:[#allocation7 + $0x8] sm:$0xff] }
  0x40   :  { %18185 = vmatprep.subr.mxu1 %v304_v4 }
  0x41   :  { %18186 = vmatpush3.msra.mxu1 %v304_v4 }
  0x42   :  { %18209 = vmatprep.subr.mxu1 %v19860_v15 }
  0xb2   :  { %v104_v44 = vpop.xlane.xlu0 %103 }
  0xb3   :  { %v108_v46 = vmul.f32 0.03125, %v104_v44  ;;  %v87_v10 = vpop.xlane.xlu1 %86 }
  0xb4   :  { %v92_v11 = vmul.f32 0.03125, %v87_v10 }
  0xb5   :  { %v110_v50 = vadd.f32 1e-05, %v108_v46 }
  0xb6   :  { %v107_v53 = vpop.xlane.xlu0 %106  ;;  %v94_v13 = vadd.f32 1e-05, %v92_v11 }
  0xb7   :  { %19572 = vrsqrt.f32 %v110_v50  ;;  %v109_v55 = vmul.f32 0.03125, %v107_v53  ;;  %v90_v12 = vpop.xlane.xlu1 %89 }
  0xb8   :  { %v93_v14 = vmul.f32 0.03125, %v90_v12 }
  0xb9   :  { %v111_v59 = vadd.f32 1e-05, %v109_v55  ;;  %v19759_v55 = vmov 0.0  }
  0xba   :  { %v95_v18 = vadd.f32 1e-05, %v93_v14 }
  0xbb   :  { %19574 = vrsqrt.f32 %v111_v59  ;;  %v724_v59 = vld [vmem:[#allocation7 + $0x18] sm:$0xff] }
  0xbc   :  { %19576 = vrsqrt.f32 %v94_v13 }
  0xbd   :  { %19578 = vrsqrt.f32 %v95_v18 }
  0xc4   :  { %v19573_v5 = vpop.eup %19572 }
  0xc5   :  { %v114_v7 = vmul.f32 %v19573_v5, %v19831_v0 }
  0xc7   :  { %118 = vrot.lane.b32.xlu0 %v114_v7, %s19756_s1 }
  0xc8   :  { %v19575_v8 = vpop.eup %19574 }
  0xc9   :  { %v115_v9 = vmul.f32 %v19575_v8, %v19833_v1  ;;  %v19577_v19 = vpop.eup %19576  ;;  %v726_v8 = vld [vmem:[#allocation7 + $0x28] sm:$0xff] }
  0xca   :  { %v98_v31 = vmul.f32 %v19577_v19, %v19835_v2  ;;  %v19579_v0 = vpop.eup %19578 }
  0xcb   :  { %120 = vrot.lane.b32.xlu1 %v115_v9, %s19756_s1  ;;  %v99_v1 = vmul.f32 %v19579_v0, %v19843_v6 }
 0x139   :  { %v119_v32 = vpop.permute.xlu0 %118 }
 0x13a   :  { %v124_v33 = vsel %vm80_vm0, %v98_v31, %v119_v32 }
 0x13b   :  { %v136_v35 = vsel %vm134_vm1, %v124_v33, 0 }
 0x13c   :  { %v214_v36 = vand.u32 4294901760, %v136_v35 }
 0x13d   :  { %v121_v37 = vpop.permute.xlu1 %120 }
 0x13e   :  { %v215_v38 = vsub.f32 %v136_v35, %v214_v36  ;;  %v125_v39 = vsel %vm80_vm0, %v99_v1, %v121_v37  ;;  %18187 = vmatprep.mubr.f32.mxu1 %v214_v36 }
 0x13f   :  { %v139_v40 = vsel %vm134_vm1, %v125_v39, 0 }
 0x140   :  { %v19983_v41 = vand.u32 4294901760, %v139_v40  ;;  %v216_v2 = vand.u32 4294901760, %v215_v38 }
 0x142   :  { %v225_v42 = vsub.f32 %v139_v40, %v19983_v41  ;;  %18188 = vmatmul.mubr.f32.vlgmr.msra.gmra.mxu1 %v19983_v41  ;;  %v217_v44 = vsub.f32 %v215_v38, %v216_v2 }
 0x143   :  { %18210 = vmatpush3.msra.mxu1 %v19860_v15  ;;  %18225 = vmatprep.mubr.f32.mxu1 %v216_v2 }
 0x144   :  { %18211 = vmatprep.subr.mxu1 %v19862_v16  ;;  %v218_v6 = vand.u32 4294901760, %v217_v44  ;;  %v226_v45 = vand.u32 4294901760, %v225_v42 }
 0x145   :  { %18212 = vmatpush3.msra.mxu1 %v19862_v16 }
 0x146   :  { %18213 = vmatprep.subr.mxu1 %v19864_v17  ;;  %18168 = vmatprep.mubr.f32.mxu0 %v218_v6  ;;  %v227_v46 = vsub.f32 %v225_v42, %v226_v45 }
 0x147   :  { %18214 = vmatpush3.msra.mxu1 %v19864_v17 }
 0x148   :  { %18215 = vmatprep.subr.mxu1 %v19872_v20  ;;  %v228_v49 = vand.u32 4294901760, %v227_v46 }
 0x149   :  { %18216 = vmatpush3.msra.mxu1 %v19872_v20 }
 0x14a   :  { %18217 = vmatprep.subr.mxu1 %v19874_v21  ;;  %18169 = vmatmul.mubr.f32.vlgmr.msra.gmra.mxu0 %v228_v49 }
 0x14b   :  { %18191 = vmatpush3.msra.mxu0 %v19877_v22  ;;  %18218 = vmatpush3.msra.mxu1 %v19874_v21 }
 0x14c   :  { %18192 = vmatprep.subr.mxu0 %v19880_v23  ;;  %18206 = vmatprep.mubr.f32.mxu0 %v215_v38 }
 0x14d   :  { %18219 = vmatprep.subr.mxu1 %v19929_v43  ;;  %18193 = vmatpush3.msra.mxu0 %v19880_v23 }
 0x14e   :  { %18220 = vmatpush3.msra.mxu1 %v19929_v43  ;;  %18194 = vmatprep.subr.mxu0 %v19883_v24 }
 0x14f   :  { %18221 = vmatprep.subr.mxu1 %v19937_v48  ;;  %18195 = vmatpush3.msra.mxu0 %v19883_v24 }
 0x150   :  { %18222 = vmatpush3.msra.mxu1 %v19937_v48  ;;  %18196 = vmatprep.subr.mxu0 %v19887_v25 }
 0x151   :  { %18223 = vmatprep.subr.mxu1 %v19951_v54  ;;  %18197 = vmatpush3.msra.mxu0 %v19887_v25 }
 0x152   :  { %18224 = vmatpush3.msra.mxu1 %v19951_v54  ;;  %18198 = vmatprep.subr.mxu0 %v19890_v26 }
 0x153   :  { %18226 = vmatmul.mubr.f32.vlgmr.msra.gmra.mxu1 %v226_v45  ;;  %18247 = vmatprep.subr.mxu1 %v19860_v15 }
 0x154   :  { %18199 = vmatpush3.msra.mxu0 %v19890_v26  ;;  %18248 = vmatpush3.msra.mxu1 %v19860_v15 }
 0x155   :  { %18263 = vmatprep.mubr.f32.mxu1 %v214_v36  ;;  %18200 = vmatprep.subr.mxu0 %v19935_v47 }
 0x156   :  { %18249 = vmatprep.subr.mxu1 %v19862_v16  ;;  %18201 = vmatpush3.msra.mxu0 %v19935_v47 }
 0x157   :  { %18250 = vmatpush3.msra.mxu1 %v19862_v16  ;;  %18202 = vmatprep.subr.mxu0 %v19948_v52 }
 0x158   :  { %18251 = vmatprep.subr.mxu1 %v19864_v17  ;;  %18203 = vmatpush3.msra.mxu0 %v19948_v52 }
 0x159   :  { %18252 = vmatpush3.msra.mxu1 %v19864_v17  ;;  %18204 = vmatprep.subr.mxu0 %v19960_v58 }
 0x15a   :  { %18253 = vmatprep.subr.mxu1 %v19872_v20  ;;  %18205 = vmatpush3.msra.mxu0 %v19960_v58 }
 0x15b   :  { %18254 = vmatpush3.msra.mxu1 %v19872_v20  ;;  %18207 = vmatmul.mubr.f32.vlgmr.msra.gmra.mxu0 %v225_v42 }
 0x15c   :  { %18228 = vmatprep.subr.mxu0 %v19894_v27  ;;  %18255 = vmatprep.subr.mxu1 %v19874_v21 }
 0x15d   :  { %18229 = vmatpush3.msra.mxu0 %v19894_v27  ;;  %18244 = vmatprep.mubr.f32.mxu0 %v214_v36 }
 0x15e   :  { %18256 = vmatpush3.msra.mxu1 %v19874_v21  ;;  %18230 = vmatprep.subr.mxu0 %v19897_v28 }
 0x15f   :  { %18257 = vmatprep.subr.mxu1 %v19929_v43  ;;  %18231 = vmatpush3.msra.mxu0 %v19897_v28 }
 0x160   :  { %18258 = vmatpush3.msra.mxu1 %v19929_v43  ;;  %18232 = vmatprep.subr.mxu0 %v19900_v29 }
 0x161   :  { %18259 = vmatprep.subr.mxu1 %v19937_v48  ;;  %18233 = vmatpush3.msra.mxu0 %v19900_v29 }
 0x162   :  { %18260 = vmatpush3.msra.mxu1 %v19937_v48  ;;  %18234 = vmatprep.subr.mxu0 %v19904_v30 }
 0x163   :  { %18261 = vmatprep.subr.mxu1 %v19951_v54  ;;  %18235 = vmatpush3.msra.mxu0 %v19904_v30 }
 0x164   :  { %18262 = vmatpush3.msra.mxu1 %v19951_v54  ;;  %18236 = vmatprep.subr.mxu0 %v19914_v34  ;;  %v723_v54 = vld [vmem:[#allocation7 + $0x10] sm:$0xff] }
 0x165   :  { %18264 = vmatmul.mubr.f32.vlgmr.msra.gmra.mxu1 %v19983_v41  ;;  %18237 = vmatpush3.msra.mxu0 %v19914_v34 }
 0x166   :  { %18238 = vmatprep.subr.mxu0 %v19945_v51  ;;  %18271 = vmatprep.subr.mxu1 %v19759_v55 }
 0x167   :  { %18239 = vmatpush3.msra.mxu0 %v19945_v51  ;;  %18273 = vmatprep.mubr.msk.f32.mxu1 %vm19760_vm2, %v19759_v55 }
 0x168   :  { %18240 = vmatprep.subr.mxu0 %v19957_v57 }
 0x169   :  { %18241 = vmatpush3.msra.mxu0 %v19957_v57 }
 0x16a   :  { %18242 = vmatprep.subr.mxu0 %v19967_v62 }
 0x16b   :  { %18243 = vmatpush3.msra.mxu0 %v19967_v62 }
 0x16c   :  { %18245 = vmatmul.mubr.f32.vlgmr.msra.gmra.mxu0 %v19983_v41  ;;  %18266 = vmatprep.subr.mxu0 %v19759_v55 }
 0x16d   :  { %18268 = vmatprep.mubr.msk.f32.mxu0 %vm19760_vm2, %v19759_v55 }
 0x202   :  { %v18189_v16 = vpop.f32.mrf.mxu1 }
 0x204   :  { %v341_v21 = vpop.f32.mrf.mxu1 }
 0x20a   :  { %v18170_v15 = vpop.f32.mrf.mxu0 }
 0x20b   :  { %v348_v22 = vadd.f32 %v18189_v16, %v18170_v15 }
 0x20c   :  { %v220_v17 = vpop.f32.mrf.mxu0 }
 0x20d   :  { %v342_v25 = vadd.f32 %v341_v21, %v220_v17 }
 0x213   :  { %v18227_v23 = vpop.f32.mrf.mxu1 }
 0x215   :  { %v523_v28 = vpop.f32.mrf.mxu1 }
 0x21b   :  { %v18208_v20 = vpop.f32.mrf.mxu0 }
 0x21c   :  { %v443_v26 = vadd.f32 %v18208_v20, %v348_v22 }
 0x21d   :  { %v435_v24 = vpop.f32.mrf.mxu0 }
 0x21e   :  { %v436_v27 = vadd.f32 %v435_v24, %v342_v25  ;;  %v532_v29 = vadd.f32 %v18227_v23, %v443_v26 }
 0x220   :  { %v524_v47 = vadd.f32 %v523_v28, %v436_v27 }
 0x225   :  { %v18265_v30 = vpop.f32.mrf.mxu1 }
 0x227   :  { %v711_v52 = vpop.f32.mrf.mxu1 }
 0x22c   :  { %v18246_v34 = vpop.f32.mrf.mxu0 }
 0x22d   :  { %v633_v43 = vadd.f32 %v18246_v34, %v532_v29 }
 0x22e   :  { %v626_v48 = vpop.f32.mrf.mxu0 }
 0x22f   :  { %v718_v50 = vadd.f32 %v18265_v30, %v633_v43  ;;  %v627_v51 = vadd.f32 %v626_v48, %v524_v47 }
 0x231   :  { %v712_v53 = vadd.f32 %v711_v52, %v627_v51  ;;  %731 = vrot.lane.b32.xlu0 %v718_v50, %s19757_s10  ;;  %v728_v9 = vmul.f32 %v722_v63, %v718_v50 }
 0x233   :  { %729 = vrot.lane.b32.xlu1 %v712_v53, %s19757_s10  ;;  %v727_v62 = vmul.f32 %v721_v56, %v712_v53 }
 0x237   :  { %737 = vrot.lane.b32.xlu1 %v712_v53, %s19758_s11 }
 0x23b   :  { %739 = vrot.lane.b32.xlu1 %v718_v50, %s19758_s11 }
 0x2a3   :  { %v732_v60 = vpop.permute.xlu0 %731 }
 0x2a4   :  { %v734_v4 = vmul.f32 %v732_v60, %v724_v59 }
 0x2a5   :  { %v730_v57 = vpop.permute.xlu1 %729 }
 0x2a6   :  { %v733_v58 = vmul.f32 %v730_v57, %v723_v54  ;;  %v736_v12 = vadd.f32 %v734_v4, %v728_v9 }
 0x2a8   :  { %v735_v5 = vadd.f32 %v733_v58, %v727_v62 }
 0x2a9   :  { %v738_v3 = vpop.permute.xlu1 %737 }
 0x2aa   :  { %v741_v7 = vmul.f32 %v738_v3, %v725_v61 }
 0x2ac   :  { %v20057_v10 = vadd.f32 %v741_v7, %v735_v5 }
 0x2ad   :  { %v740_v11 = vpop.permute.xlu1 %739 }
 0x2ae   :  { %v742_v13 = vmul.f32 %v740_v11, %v726_v8  ;;  %776 = vrot.lane.b32.xlu1 %v20057_v10, %s19761_s12  ;;  %747 = vrot.lane.b32.xlu0 %v20057_v10, %s19762_s13  ;;  %v779_v18 = vsel %vm778_vm3, %v20057_v10, 0 }
 0x2af   :  { %v20072_v19 = vand.u32 4294901760, %v779_v18 }
 0x2b0   :  { %v20062_v14 = vadd.f32 %v742_v13, %v736_v12 }
 0x2b1   :  { %v850_v31 = vsub.f32 %v779_v18, %v20072_v19 }
 0x2b2   :  { %1229 = vrot.lane.b32.xlu1 %v20062_v14, %s19761_s12  ;;  %749 = vrot.lane.b32.xlu0 %v20062_v14, %s19762_s13  ;;  %v1231_v32 = vsel %vm778_vm3, %v20062_v14, 0 }
 0x2b3   :  { %v851_v0 = vand.u32 4294901760, %v850_v31  ;;  %v20084_v38 = vand.u32 4294901760, %v1231_v32 }
 0x2b5   :  { %v852_v36 = vsub.f32 %v850_v31, %v851_v0  ;;  %v20101_v6 = vsub.f32 %v1231_v32, %v20084_v38 }
 0x2b6   :  { %759 = vrot.lane.b32.xlu0 %v20057_v10, %s19763_s14 }
 0x2b7   :  { %v853_v42 = vand.u32 4294901760, %v852_v36  ;;  %v1303_v15 = vand.u32 4294901760, %v20101_v6 }
 0x2b9   :  { %v1304_v20 = vsub.f32 %v20101_v6, %v1303_v15 }
 0x2ba   :  { %751 = vrot.lane.b32.xlu0 %v20057_v10, %s19764_s15 }
 0x2bb   :  { %v1305_v24 = vand.u32 4294901760, %v1304_v20 }
 0x320   :  { %v777_v33 = vpop.permute.xlu1 %776  ;;  %v20077_v1 = vpop.permute.xlu0 %747 }
 0x321   :  { %v781_v35 = vsel %vm778_vm3, %v777_v33, 0  ;;  %2577 = vrot.lane.b32.xlu1 %v20077_v1, %s19761_s12  ;;  %v1681_v17 = vsel %vm778_vm3, %v20077_v1, 0 }
 0x322   :  { %v20082_v37 = vand.u32 4294901760, %v781_v35  ;;  %v20131_v21 = vand.u32 4294901760, %v1681_v17 }
 0x324   :  { %v20087_v39 = vsub.f32 %v781_v35, %v20082_v37  ;;  %18267 = vmatpush3.xpose.msra.mxu0 %v20082_v37  ;;  %v1230_v40 = vpop.permute.xlu1 %1229  ;;  %v20090_v41 = vpop.permute.xlu0 %749  ;;  %v1750_v25 = vsub.f32 %v1681_v17, %v20131_v21 }
 0x325   :  { %v1233_v2 = vsel %vm778_vm3, %v1230_v40, 0  ;;  %761 = vrot.lane.b32.xlu1 %v20062_v14, %s19763_s14  ;;  %3029 = vrot.lane.b32.xlu0 %v20090_v41, %s19761_s12  ;;  %v2129_v29 = vsel %vm778_vm3, %v20090_v41, 0 }
 0x326   :  { %v20097_v44 = vand.u32 4294901760, %v20087_v39  ;;  %18276 = vmatprep.subr.mxu0 %v19759_v55  ;;  %v20103_v45 = vand.u32 4294901760, %v1233_v2  ;;  %v1751_v27 = vand.u32 4294901760, %v1750_v25  ;;  %v20171_v30 = vand.u32 4294901760, %v2129_v29 }
 0x327   :  { %18269 = vmatmul.mubr.f32.vlgmr.msra.gmra.mxu0 %v853_v42 }
 0x328   :  { %18277 = vmatpush3.xpose.msra.mxu0 %v20087_v39  ;;  %18278 = vmatprep.mubr.msk.f32.mxu0 %vm19760_vm2, %v19759_v55  ;;  %v893_v46 = vsub.f32 %v20087_v39, %v20097_v44  ;;  %v20118_v16 = vsub.f32 %v1233_v2, %v20103_v45  ;;  %v20140_v23 = vpop.permute.xlu0 %759  ;;  %v1752_v34 = vsub.f32 %v1750_v25, %v1751_v27 }
 0x329   :  { %753 = vrot.lane.b32.xlu1 %v20062_v14, %s19764_s15  ;;  %755 = vrot.lane.b32.xlu0 %v20057_v10, %s19765_s2  ;;  %v2198_v43 = vsub.f32 %v2129_v29, %v20171_v30 }
 0x32a   :  { %18286 = vmatprep.subr.mxu0 %v19759_v55  ;;  %v20114_v49 = vand.u32 4294901760, %v893_v46  ;;  %v20134_v22 = vand.u32 4294901760, %v20118_v16  ;;  %v1753_v47 = vand.u32 4294901760, %v1752_v34 }
 0x32b   :  { %18279 = vmatmul.mubr.f32.vlgmr.msra.gmra.mxu0 %v850_v31  ;;  %v2199_v48 = vand.u32 4294901760, %v2198_v43 }
 0x32c   :  { %18272 = vmatpush3.xpose.msra.mxu1 %v20114_v49  ;;  %18287 = vmatpush3.xpose.msra.mxu0 %v20097_v44  ;;  %v1345_v26 = vsub.f32 %v20118_v16, %v20134_v22  ;;  %v752_v52 = vpop.permute.xlu0 %751 }
 0x32d   :  { %757 = vrot.lane.b32.xlu1 %v20062_v14, %s19765_s2  ;;  %763 = vrot.lane.b32.xlu0 %v20057_v10, %s19766_s16  ;;  %v2200_v50 = vsub.f32 %v2198_v43, %v2199_v48  ;;  %v2579_v53 = vsel %vm778_vm3, %v752_v52, 0 }
 0x32e   :  { %18288 = vmatprep.mubr.msk.f32.mxu0 %vm19760_vm2, %v19759_v55  ;;  %18281 = vmatprep.subr.mxu1 %v19759_v55  ;;  %v1346_v28 = vand.u32 4294901760, %v1345_v26  ;;  %v20247_v54 = vand.u32 4294901760, %v2579_v53 }
 0x32f   :  { %18274 = vmatmul.mubr.f32.vlgmr.msra.gmra.mxu1 %v20072_v19  ;;  %18289 = vmatmul.mubr.f32.vlgmr.msra.gmra.mxu0 %v20072_v19  ;;  %v2201_v51 = vand.u32 4294901760, %v2200_v50 }
 0x330   :  { %18296 = vmatprep.subr.mxu0 %v19759_v55  ;;  %18282 = vmatpush3.xpose.msra.mxu1 %v20082_v37  ;;  %v2650_v56 = vsub.f32 %v2579_v53, %v20247_v54 }
 0x331   :  { %18297 = vmatpush3.xpose.msra.mxu0 %v20103_v45  ;;  %765 = vrot.lane.b32.xlu0 %v20062_v14, %s19766_s16 }
 0x332   :  { %4377 = vrot.lane.b32.xlu1 %v20140_v23, %s19761_s12  ;;  %18283 = vmatprep.mubr.msk.f32.mxu1 %vm19760_vm2, %v19759_v55  ;;  %v2651_v57 = vand.u32 4294901760, %v2650_v56 }
 0x333   :  { %18298 = vmatprep.mubr.msk.f32.mxu0 %vm19760_vm2, %v19759_v55  ;;  %18284 = vmatmul.mubr.f32.vlgmr.msra.gmra.mxu1 %v851_v0 }
 0x334   :  { %18291 = vmatprep.subr.mxu1 %v19759_v55  ;;  %18299 = vmatmul.mubr.f32.vlgmr.msra.gmra.mxu0 %v1305_v24  ;;  %v2652_v59 = vsub.f32 %v2650_v56, %v2651_v57 }
 0x335   :  { %18306 = vmatprep.subr.mxu0 %v19759_v55  ;;  %18292 = vmatpush3.xpose.msra.mxu1 %v20082_v37 }
 0x336   :  { %18307 = vmatpush3.xpose.msra.mxu0 %v20118_v16  ;;  %18293 = vmatprep.mubr.msk.f32.mxu1 %vm19760_vm2, %v19759_v55  ;;  %v2653_v4 = vand.u32 4294901760, %v2652_v59 }
 0x337   :  { %18308 = vmatprep.mubr.msk.f32.mxu0 %vm19760_vm2, %v19759_v55  ;;  %18301 = vmatprep.subr.mxu1 %v19759_v55 }
 0x338   :  { %18294 = vmatmul.mubr.f32.vlgmr.msra.gmra.mxu1 %v20072_v19  ;;  %18316 = vmatprep.subr.mxu0 %v19759_v55 }
 0x339   :  { %18309 = vmatmul.mubr.f32.vlgmr.msra.gmra.mxu0 %v20101_v6  ;;  %18302 = vmatpush3.xpose.msra.mxu1 %v1346_v28 }
 0x33a   :  { %18317 = vmatpush3.xpose.msra.mxu0 %v20134_v22  ;;  %18303 = vmatprep.mubr.msk.f32.mxu1 %vm19760_vm2, %v19759_v55 }
 0x33b   :  { %18318 = vmatprep.mubr.msk.f32.mxu0 %vm19760_vm2, %v19759_v55  ;;  %18311 = vmatprep.subr.mxu1 %v19759_v55 }
 0x33c   :  { %18304 = vmatmul.mubr.f32.vlgmr.msra.gmra.mxu1 %v20084_v38  ;;  %18326 = vmatprep.subr.mxu0 %v19759_v55 }
 0x33d   :  { %18319 = vmatmul.mubr.f32.vlgmr.msra.gmra.mxu0 %v20084_v38  ;;  %18312 = vmatpush3.xpose.msra.mxu1 %v20103_v45 }
 0x33e   :  { %18327 = vmatpush3.xpose.msra.mxu0 %v20082_v37  ;;  %18313 = vmatprep.mubr.msk.f32.mxu1 %vm19760_vm2, %v19759_v55 }
 0x33f   :  { %18328 = vmatprep.mubr.msk.f32.mxu0 %vm19760_vm2, %v19759_v55  ;;  %18321 = vmatprep.subr.mxu1 %v19759_v55 }
 0x340   :  { %18314 = vmatmul.mubr.f32.vlgmr.msra.gmra.mxu1 %v1303_v15  ;;  %18336 = vmatprep.subr.mxu0 %v19759_v55 }
 0x341   :  { %18329 = vmatmul.mubr.f32.vlgmr.msra.gmra.mxu0 %v1753_v47  ;;  %18322 = vmatpush3.xpose.msra.mxu1 %v20103_v45 }
 0x342   :  { %18337 = vmatpush3.xpose.msra.mxu0 %v20087_v39  ;;  %18323 = vmatprep.mubr.msk.f32.mxu1 %vm19760_vm2, %v19759_v55 }
 0x343   :  { %18338 = vmatprep.mubr.msk.f32.mxu0 %vm19760_vm2, %v19759_v55  ;;  %18331 = vmatprep.subr.mxu1 %v19759_v55 }
 0x344   :  { %18324 = vmatmul.mubr.f32.vlgmr.msra.gmra.mxu1 %v20084_v38  ;;  %18346 = vmatprep.subr.mxu0 %v19759_v55 }
 0x345   :  { %18339 = vmatmul.mubr.f32.vlgmr.msra.gmra.mxu0 %v1750_v25  ;;  %18332 = vmatpush3.xpose.msra.mxu1 %v20114_v49 }
 0x346   :  { %18347 = vmatpush3.xpose.msra.mxu0 %v20097_v44  ;;  %18333 = vmatprep.mubr.msk.f32.mxu1 %vm19760_vm2, %v19759_v55 }
 0x347   :  { %18348 = vmatprep.mubr.msk.f32.mxu0 %vm19760_vm2, %v19759_v55  ;;  %18341 = vmatprep.subr.mxu1 %v19759_v55 }
 0x348   :  { %18334 = vmatmul.mubr.f32.vlgmr.msra.gmra.mxu1 %v20131_v21  ;;  %18356 = vmatprep.subr.mxu0 %v19759_v55 }
 0x349   :  { %18349 = vmatmul.mubr.f32.vlgmr.msra.gmra.mxu0 %v20131_v21  ;;  %18342 = vmatpush3.xpose.msra.mxu1 %v20082_v37 }
 0x34a   :  { %18357 = vmatpush3.xpose.msra.mxu0 %v20103_v45  ;;  %18343 = vmatprep.mubr.msk.f32.mxu1 %vm19760_vm2, %v19759_v55 }
 0x34b   :  { %18358 = vmatprep.mubr.msk.f32.mxu0 %vm19760_vm2, %v19759_v55  ;;  %18351 = vmatprep.subr.mxu1 %v19759_v55 }
 0x34c   :  { %18344 = vmatmul.mubr.f32.vlgmr.msra.gmra.mxu1 %v1751_v27  ;;  %18366 = vmatprep.subr.mxu0 %v19759_v55 }
 0x34d   :  { %18359 = vmatmul.mubr.f32.vlgmr.msra.gmra.mxu0 %v2201_v51  ;;  %18352 = vmatpush3.xpose.msra.mxu1 %v20082_v37 }
 0x34e   :  { %18367 = vmatpush3.xpose.msra.mxu0 %v20118_v16  ;;  %18353 = vmatprep.mubr.msk.f32.mxu1 %vm19760_vm2, %v19759_v55 }
 0x34f   :  { %18368 = vmatprep.mubr.msk.f32.mxu0 %vm19760_vm2, %v19759_v55  ;;  %18361 = vmatprep.subr.mxu1 %v19759_v55 }
 0x350   :  { %18354 = vmatmul.mubr.f32.vlgmr.msra.gmra.mxu1 %v20131_v21  ;;  %18376 = vmatprep.subr.mxu0 %v19759_v55  ;;  %v4379_v21 = vsel %vm778_vm3, %v20140_v23, 0 }
 0x351   :  { %18369 = vmatmul.mubr.f32.vlgmr.msra.gmra.mxu0 %v2198_v43  ;;  %18362 = vmatpush3.xpose.msra.mxu1 %v1346_v28  ;;  %v20380_v24 = vand.u32 4294901760, %v4379_v21 }
 0x352   :  { %18377 = vmatpush3.xpose.msra.mxu0 %v20134_v22  ;;  %18363 = vmatprep.mubr.msk.f32.mxu1 %vm19760_vm2, %v19759_v55 }
 0x353   :  { %18378 = vmatprep.mubr.msk.f32.mxu0 %vm19760_vm2, %v19759_v55  ;;  %18371 = vmatprep.subr.mxu1 %v19759_v55  ;;  %v4450_v27 = vsub.f32 %v4379_v21, %v20380_v24 }
 0x354   :  { %18364 = vmatmul.mubr.f32.vlgmr.msra.gmra.mxu1 %v20171_v30  ;;  %18386 = vmatprep.subr.mxu0 %v19759_v55 }
 0x355   :  { %18379 = vmatmul.mubr.f32.vlgmr.msra.gmra.mxu0 %v20171_v30  ;;  %18372 = vmatpush3.xpose.msra.mxu1 %v20103_v45 }
 0x356   :  { %18373 = vmatprep.mubr.msk.f32.mxu1 %vm19760_vm2, %v19759_v55  ;;  %18381 = vmatprep.subr.mxu1 %v19759_v55 }
 0x357   :  { %18388 = vmatprep.mubr.msk.f32.mxu0 %vm19760_vm2, %v19759_v55 }
 0x358   :  { %18374 = vmatmul.mubr.f32.vlgmr.msra.gmra.mxu1 %v2199_v48 }
 0x359   :  { %18382 = vmatpush3.xpose.msra.mxu1 %v20103_v45  ;;  %18383 = vmatprep.mubr.msk.f32.mxu1 %vm19760_vm2, %v19759_v55 }
 0x35a   :  { %18391 = vmatprep.subr.mxu1 %v19759_v55 }
 0x35c   :  { %18384 = vmatmul.mubr.f32.vlgmr.msra.gmra.mxu1 %v20171_v30  ;;  %v4451_v30 = vand.u32 4294901760, %v4450_v27 }
 0x35d   :  { %18393 = vmatprep.mubr.msk.f32.mxu1 %vm19760_vm2, %v19759_v55 }
 0x35e   :  { %v4452_v47 = vsub.f32 %v4450_v27, %v4451_v30 }
 0x360   :  { %v4453_v48 = vand.u32 4294901760, %v4452_v47 }
 0x393   :  { %v2578_v58 = vpop.permute.xlu1 %2577 }
 0x394   :  { %v2581_v60 = vsel %vm778_vm3, %v2578_v58, 0 }
 0x395   :  { %v20251_v61 = vand.u32 4294901760, %v2581_v60 }
 0x397   :  { %v20254_v62 = vsub.f32 %v2581_v60, %v20251_v61  ;;  %v20256_v63 = vpop.permute.xlu1 %761  ;;  %v3030_v3 = vpop.permute.xlu0 %3029  ;;  %18387 = vmatpush3.xpose.msra.mxu0 %v20251_v61 }
 0x398   :  { %v3033_v5 = vsel %vm778_vm3, %v3030_v3, 0  ;;  %4829 = vrot.lane.b32.xlu1 %v20256_v63, %s19761_s12  ;;  %18396 = vmatprep.subr.mxu0 %v19759_v55 }
 0x399   :  { %v20264_v7 = vand.u32 4294901760, %v20254_v62  ;;  %v20266_v8 = vand.u32 4294901760, %v3033_v5 }
 0x39a   :  { %18389 = vmatmul.mubr.f32.vlgmr.msra.gmra.mxu0 %v2653_v4 }
 0x39b   :  { %v754_v9 = vpop.permute.xlu1 %753  ;;  %v756_v11 = vpop.permute.xlu0 %755  ;;  %18397 = vmatpush3.xpose.msra.mxu0 %v20254_v62  ;;  %18398 = vmatprep.mubr.msk.f32.mxu0 %vm19760_vm2, %v19759_v55  ;;  %v2693_v12 = vsub.f32 %v20254_v62, %v20264_v7  ;;  %v20282_v31 = vsub.f32 %v3033_v5, %v20266_v8 }
 0x39c   :  { %v3031_v13 = vsel %vm778_vm3, %v754_v9, 0  ;;  %767 = vrot.lane.b32.xlu1 %v20057_v10, %s19767_s0  ;;  %18406 = vmatprep.subr.mxu0 %v19759_v55  ;;  %v3481_v33 = vsel %vm778_vm3, %v756_v11, 0 }
 0x39d   :  { %v20277_v18 = vand.u32 4294901760, %v3031_v13  ;;  %v20279_v19 = vand.u32 4294901760, %v2693_v12  ;;  %v20300_v36 = vand.u32 4294901760, %v20282_v31  ;;  %v20302_v38 = vand.u32 4294901760, %v3481_v33 }
 0x39e   :  { %18399 = vmatmul.mubr.f32.vlgmr.msra.gmra.mxu0 %v2650_v56 }
 0x39f   :  { %v3102_v0 = vsub.f32 %v3031_v13, %v20277_v18  ;;  %v20285_v32 = vpop.permute.xlu0 %763  ;;  %18407 = vmatpush3.xpose.msra.mxu0 %v20264_v7  ;;  %18408 = vmatprep.mubr.msk.f32.mxu0 %vm19760_vm2, %v19759_v55  ;;  %v20317_v2 = vsub.f32 %v3481_v33, %v20302_v38  ;;  %v3145_v42 = vsub.f32 %v20282_v31, %v20300_v36  ;;  %v758_v44 = vpop.permute.xlu1 %757 }
 0x3a0   :  { %18392 = vmatpush3.xpose.msra.mxu1 %v20279_v19  ;;  %769 = vrot.lane.b32.xlu1 %v20062_v14, %s19767_s0  ;;  %v3929_v46 = vsel %vm778_vm3, %v758_v44, 0  ;;  %v5281_v47 = vsel %vm778_vm3, %v20285_v32, 0 }
 0x3a1   :  { %v3103_v35 = vand.u32 4294901760, %v3102_v0  ;;  %6177 = vrot.lane.b32.xlu0 %v20285_v32, %s19761_s12  ;;  %18401 = vmatprep.subr.mxu1 %v19759_v55  ;;  %v3551_v6 = vand.u32 4294901760, %v20317_v2  ;;  %v20333_v45 = vand.u32 4294901760, %v3145_v42  ;;  %v20344_v15 = vand.u32 4294901760, %v3929_v46 }
 0x3a2   :  { %18409 = vmatmul.mubr.f32.vlgmr.msra.gmra.mxu0 %v20247_v54  ;;  %18416 = vmatprep.subr.mxu0 %v19759_v55 }
 0x3a3   :  { %v3104_v37 = vsub.f32 %v3102_v0, %v3103_v35  ;;  %18394 = vmatmul.mubr.f32.vlgmr.msra.gmra.mxu1 %v20247_v54  ;;  %v20305_v39 = vpop.permute.xlu0 %765  ;;  %18417 = vmatpush3.xpose.msra.mxu0 %v20266_v8  ;;  %v3552_v49 = vsub.f32 %v20317_v2, %v3551_v6  ;;  %v20357_v17 = vsub.f32 %v3929_v46, %v20344_v15 }
 0x3a4   :  { %18402 = vmatpush3.xpose.msra.mxu1 %v20251_v61  ;;  %773 = vrot.lane.b32.xlu1 %v20062_v14, %s19768_s5  ;;  %v4378_v22 = vpop.permute.xlu1 %4377 }
 0x3a5   :  { %v3105_v40 = vand.u32 4294901760, %v3104_v37  ;;  %6629 = vrot.lane.b32.xlu0 %v20305_v39, %s19761_s12  ;;  %18403 = vmatprep.mubr.msk.f32.mxu1 %vm19760_vm2, %v19759_v55  ;;  %v3553_v16 = vand.u32 4294901760, %v3552_v49  ;;  %v3999_v20 = vand.u32 4294901760, %v20357_v17  ;;  %v4381_v26 = vsel %vm778_vm3, %v4378_v22, 0 }
 0x3a6   :  { %18411 = vmatprep.subr.mxu1 %v19759_v55  ;;  %18418 = vmatprep.mubr.msk.f32.mxu0 %vm19760_vm2, %v19759_v55  ;;  %v20395_v29 = vand.u32 4294901760, %v4381_v26 }
 0x3a7   :  { %18404 = vmatmul.mubr.f32.vlgmr.msra.gmra.mxu1 %v2651_v57  ;;  %18426 = vmatprep.subr.mxu0 %v19759_v55  ;;  %v4000_v25 = vsub.f32 %v20357_v17, %v3999_v20 }
 0x3a8   :  { %18412 = vmatpush3.xpose.msra.mxu1 %v20251_v61  ;;  %18419 = vmatmul.mubr.f32.vlgmr.msra.gmra.mxu0 %v3105_v40  ;;  %v20406_v34 = vsub.f32 %v4381_v26, %v20395_v29 }
 0x3a9   :  { %771 = vrot.lane.b32.xlu0 %v20057_v10, %s19768_s5  ;;  %18427 = vmatpush3.xpose.msra.mxu0 %v20282_v31  ;;  %v4001_v28 = vand.u32 4294901760, %v4000_v25 }
 0x3aa   :  { %18413 = vmatprep.mubr.msk.f32.mxu1 %vm19760_vm2, %v19759_v55  ;;  %18421 = vmatprep.subr.mxu1 %v19759_v55  ;;  %v20419_v43 = vand.u32 4294901760, %v20406_v34 }
 0x3ab   :  { %18414 = vmatmul.mubr.f32.vlgmr.msra.gmra.mxu1 %v20247_v54  ;;  %18428 = vmatprep.mubr.msk.f32.mxu0 %vm19760_vm2, %v19759_v55  ;;  %v20474_v54 = vld [vmem:[%s22598_s6] sm:$0xff] }
 0x3ac   :  { %18436 = vmatprep.subr.mxu0 %v19759_v55  ;;  %18422 = vmatpush3.xpose.msra.mxu1 %v20333_v45  ;;  %v4493_v50 = vsub.f32 %v20406_v34, %v20419_v43 }
 0x3ad   :  { %18429 = vmatmul.mubr.f32.vlgmr.msra.gmra.mxu0 %v3102_v0  ;;  %18423 = vmatprep.mubr.msk.f32.mxu1 %vm19760_vm2, %v19759_v55 }
 0x3ae   :  { %18437 = vmatpush3.xpose.msra.mxu0 %v20300_v36  ;;  %18431 = vmatprep.subr.mxu1 %v19759_v55  ;;  %v20444_v51 = vand.u32 4294901760, %v4493_v50 }
 0x3af   :  { %18438 = vmatprep.mubr.msk.f32.mxu0 %vm19760_vm2, %v19759_v55  ;;  %18424 = vmatmul.mubr.f32.vlgmr.msra.gmra.mxu1 %v20277_v18 }
 0x3b0   :  { %18446 = vmatprep.subr.mxu0 %v19759_v55  ;;  %18432 = vmatpush3.xpose.msra.mxu1 %v20266_v8 }
 0x3b1   :  { %18439 = vmatmul.mubr.f32.vlgmr.msra.gmra.mxu0 %v20277_v18  ;;  %18433 = vmatprep.mubr.msk.f32.mxu1 %vm19760_vm2, %v19759_v55 }
 0x3b2   :  { %18447 = vmatpush3.xpose.msra.mxu0 %v20251_v61  ;;  %18441 = vmatprep.subr.mxu1 %v19759_v55 }
 0x3b3   :  { %18448 = vmatprep.mubr.msk.f32.mxu0 %vm19760_vm2, %v19759_v55  ;;  %18434 = vmatmul.mubr.f32.vlgmr.msra.gmra.mxu1 %v3103_v35 }
 0x3b4   :  { %18456 = vmatprep.subr.mxu0 %v19759_v55  ;;  %18442 = vmatpush3.xpose.msra.mxu1 %v20266_v8 }
 0x3b5   :  { %18449 = vmatmul.mubr.f32.vlgmr.msra.gmra.mxu0 %v3553_v16  ;;  %18443 = vmatprep.mubr.msk.f32.mxu1 %vm19760_vm2, %v19759_v55 }
 0x3b6   :  { %18457 = vmatpush3.xpose.msra.mxu0 %v20254_v62  ;;  %18451 = vmatprep.subr.mxu1 %v19759_v55 }
 0x3b7   :  { %18458 = vmatprep.mubr.msk.f32.mxu0 %vm19760_vm2, %v19759_v55  ;;  %18444 = vmatmul.mubr.f32.vlgmr.msra.gmra.mxu1 %v20277_v18 }
 0x3b8   :  { %18466 = vmatprep.subr.mxu0 %v19759_v55  ;;  %18452 = vmatpush3.xpose.msra.mxu1 %v20279_v19 }
 0x3b9   :  { %18459 = vmatmul.mubr.f32.vlgmr.msra.gmra.mxu0 %v20317_v2  ;;  %18453 = vmatprep.mubr.msk.f32.mxu1 %vm19760_vm2, %v19759_v55 }
 0x3ba   :  { %18467 = vmatpush3.xpose.msra.mxu0 %v20264_v7  ;;  %18461 = vmatprep.subr.mxu1 %v19759_v55 }
 0x3bb   :  { %18468 = vmatprep.mubr.msk.f32.mxu0 %vm19760_vm2, %v19759_v55  ;;  %18454 = vmatmul.mubr.f32.vlgmr.msra.gmra.mxu1 %v20302_v38 }
 0x3bc   :  { %18476 = vmatprep.subr.mxu0 %v19759_v55  ;;  %18462 = vmatpush3.xpose.msra.mxu1 %v20251_v61 }
 0x3bd   :  { %18469 = vmatmul.mubr.f32.vlgmr.msra.gmra.mxu0 %v20302_v38  ;;  %18463 = vmatprep.mubr.msk.f32.mxu1 %vm19760_vm2, %v19759_v55 }
 0x3be   :  { %18477 = vmatpush3.xpose.msra.mxu0 %v20266_v8  ;;  %18471 = vmatprep.subr.mxu1 %v19759_v55 }
 0x3bf   :  { %18478 = vmatprep.mubr.msk.f32.mxu0 %vm19760_vm2, %v19759_v55  ;;  %18464 = vmatmul.mubr.f32.vlgmr.msra.gmra.mxu1 %v3551_v6 }
 0x3c0   :  { %18486 = vmatprep.subr.mxu0 %v19759_v55  ;;  %18472 = vmatpush3.xpose.msra.mxu1 %v20251_v61 }
 0x3c1   :  { %18479 = vmatmul.mubr.f32.vlgmr.msra.gmra.mxu0 %v4001_v28  ;;  %18473 = vmatprep.mubr.msk.f32.mxu1 %vm19760_vm2, %v19759_v55 }
 0x3c2   :  { %18487 = vmatpush3.xpose.msra.mxu0 %v20282_v31  ;;  %18481 = vmatprep.subr.mxu1 %v19759_v55 }
 0x3c3   :  { %18488 = vmatprep.mubr.msk.f32.mxu0 %vm19760_vm2, %v19759_v55  ;;  %18474 = vmatmul.mubr.f32.vlgmr.msra.gmra.mxu1 %v20302_v38 }
 0x3c4   :  { %18496 = vmatprep.subr.mxu0 %v19759_v55  ;;  %18482 = vmatpush3.xpose.msra.mxu1 %v20333_v45 }
 0x3c5   :  { %18489 = vmatmul.mubr.f32.vlgmr.msra.gmra.mxu0 %v20357_v17  ;;  %18483 = vmatprep.mubr.msk.f32.mxu1 %vm19760_vm2, %v19759_v55 }
 0x3c6   :  { %18497 = vmatpush3.xpose.msra.mxu0 %v20300_v36  ;;  %18491 = vmatprep.subr.mxu1 %v19759_v55  ;;  %v4831_v36 = vsel %vm778_vm3, %v20256_v63, 0 }
 0x3c7   :  { %18498 = vmatprep.mubr.msk.f32.mxu0 %vm19760_vm2, %v19759_v55  ;;  %18484 = vmatmul.mubr.f32.vlgmr.msra.gmra.mxu1 %v20344_v15  ;;  %v20484_v42 = vand.u32 4294901760, %v4831_v36 }
 0x3c8   :  { %18506 = vmatprep.subr.mxu0 %v19759_v55  ;;  %18492 = vmatpush3.xpose.msra.mxu1 %v20266_v8 }
 0x3c9   :  { %18499 = vmatmul.mubr.f32.vlgmr.msra.gmra.mxu0 %v20344_v15  ;;  %18493 = vmatprep.mubr.msk.f32.mxu1 %vm19760_vm2, %v19759_v55  ;;  %v20487_v16 = vsub.f32 %v4831_v36, %v20484_v42 }
 0x3ca   :  { %18507 = vmatpush3.xpose.msra.mxu0 %v20395_v29  ;;  %18501 = vmatprep.subr.mxu1 %v19759_v55 }
 0x3cb   :  { %18508 = vmatprep.mubr.msk.f32.mxu0 %vm19760_vm2, %v19759_v55  ;;  %18494 = vmatmul.mubr.f32.vlgmr.msra.gmra.mxu1 %v3999_v20  ;;  %v4903_v26 = vand.u32 4294901760, %v20487_v16 }
 0x3cc   :  { %18516 = vmatprep.subr.mxu0 %v19759_v55  ;;  %18502 = vmatpush3.xpose.msra.mxu1 %v20266_v8 }
 0x3cd   :  { %18509 = vmatmul.mubr.f32.vlgmr.msra.gmra.mxu0 %v4453_v48  ;;  %18503 = vmatprep.mubr.msk.f32.mxu1 %vm19760_vm2, %v19759_v55 }
 0x3ce   :  { %18517 = vmatpush3.xpose.msra.mxu0 %v20406_v34  ;;  %18511 = vmatprep.subr.mxu1 %v19759_v55 }
 0x3cf   :  { %18518 = vmatprep.mubr.msk.f32.mxu0 %vm19760_vm2, %v19759_v55  ;;  %18504 = vmatmul.mubr.f32.vlgmr.msra.gmra.mxu1 %v20344_v15 }
 0x3d0   :  { %18526 = vmatprep.subr.mxu0 %v19759_v55  ;;  %18512 = vmatpush3.xpose.msra.mxu1 %v20444_v51 }
 0x3d1   :  { %18519 = vmatmul.mubr.f32.vlgmr.msra.gmra.mxu0 %v4450_v27  ;;  %18513 = vmatprep.mubr.msk.f32.mxu1 %vm19760_vm2, %v19759_v55 }
 0x3d2   :  { %18527 = vmatpush3.xpose.msra.mxu0 %v20419_v43  ;;  %18521 = vmatprep.subr.mxu1 %v19759_v55 }
 0x3d3   :  { %18528 = vmatprep.mubr.msk.f32.mxu0 %vm19760_vm2, %v19759_v55  ;;  %18514 = vmatmul.mubr.f32.vlgmr.msra.gmra.mxu1 %v20380_v24 }
 0x3d4   :  { %18536 = vmatprep.subr.mxu0 %v19759_v55  ;;  %18522 = vmatpush3.xpose.msra.mxu1 %v20395_v29 }
 0x3d5   :  { %18529 = vmatmul.mubr.f32.vlgmr.msra.gmra.mxu0 %v20380_v24  ;;  %18523 = vmatprep.mubr.msk.f32.mxu1 %vm19760_vm2, %v19759_v55 }
 0x3d6   :  { %18531 = vmatprep.subr.mxu1 %v19759_v55  ;;  %18538 = vmatprep.mubr.msk.f32.mxu0 %vm19760_vm2, %v19759_v55 }
 0x3d7   :  { %18524 = vmatmul.mubr.f32.vlgmr.msra.gmra.mxu1 %v4451_v30 }
 0x3d8   :  { %18532 = vmatpush3.xpose.msra.mxu1 %v20395_v29  ;;  %18533 = vmatprep.mubr.msk.f32.mxu1 %vm19760_vm2, %v19759_v55 }
 0x3d9   :  { %18541 = vmatprep.subr.mxu1 %v19759_v55 }
 0x3db   :  { %18534 = vmatmul.mubr.f32.vlgmr.msra.gmra.mxu1 %v20380_v24 }
 0x3dc   :  { %18543 = vmatprep.mubr.msk.f32.mxu1 %vm19760_vm2, %v19759_v55 }
 0x3e7   :  { %v855_v52 = vpop.f32.mrf.mxu0 }
 0x3e8   :  { %v856_v58 = vadd.f32 %v855_v52, %v20474_v54 }
 0x3e9   :  { %v18270_v53 = vpop.f32.mrf.mxu0 }
 0x3eb   :  { %v1005_v56 = vpop.f32.mrf.mxu0 }
 0x3ed   :  { %v18280_v57 = vpop.f32.mrf.mxu0 }
 0x3ee   :  { %v4904_v57 = vsub.f32 %v20487_v16, %v4903_v26 }
 0x3ef   :  { %v931_v59 = vpop.f32.mrf.mxu1  ;;  %v1153_v60 = vpop.f32.mrf.mxu0 }
 0x3f0   :  { %v932_v61 = vadd.f32 %v931_v59, %v856_v58  ;;  %v20504_v58 = vand.u32 4294901760, %v5281_v47 }
 0x3f1   :  { %v18275_v62 = vpop.f32.mrf.mxu1  ;;  %v18290_v3 = vpop.f32.mrf.mxu0 }
 0x3f2   :  { %v1006_v4 = vadd.f32 %v1005_v56, %v932_v61 }
 0x3f3   :  { %v1079_v5 = vpop.f32.mrf.mxu1 }
 0x3f4   :  { %v1080_v7 = vadd.f32 %v1079_v5, %v1006_v4  ;;  %v1307_v8 = vpop.f32.mrf.mxu0  ;;  %v4905_v5 = vand.u32 4294901760, %v4904_v57 }
 0x3f5   :  { %v18285_v9 = vpop.f32.mrf.mxu1  ;;  %v1308_v0 = vadd.f32 %v1307_v8, %v20474_v54 }
 0x3f6   :  { %v18300_v11 = vpop.f32.mrf.mxu0  ;;  %v1154_v12 = vadd.f32 %v1153_v60, %v1080_v7  ;;  %v20518_v7 = vsub.f32 %v5281_v47, %v20504_v58 }
 0x3f8   :  { %v1225_v13 = vpop.f32.mrf.mxu1 }
 0x3f9   :  { %v20477_v18 = vadd.f32 %v1225_v13, %v1154_v12  ;;  %v1457_v19 = vpop.f32.mrf.mxu0 }
 0x3fa   :  { %v18295_v31 = vpop.f32.mrf.mxu1 }
 0x3fb   :  { %v18310_v33 = vpop.f32.mrf.mxu0  ;;  %v7977_v35 = vsel %vm778_vm3, %v20477_v18, -inf  ;;  %v5351_v31 = vand.u32 4294901760, %v20518_v7 }
 0x3fc   :  { %v1383_v37 = vpop.f32.mrf.mxu1  ;;  %7978 = vmax.xlane.f32.xlu0 %v7977_v35 }
 0x3fd   :  { %v1384_v38 = vadd.f32 %v1383_v37, %v1308_v0  ;;  %v1605_v40 = vpop.f32.mrf.mxu0 }
 0x3fe   :  { %v18305_v2 = vpop.f32.mrf.mxu1 }
 0x3ff   :  { %v18320_v44 = vpop.f32.mrf.mxu0  ;;  %v1458_v6 = vadd.f32 %v1457_v19, %v1384_v38  ;;  %v5352_v2 = vsub.f32 %v20518_v7, %v5351_v31 }
 0x400   :  { %v1531_v45 = vpop.f32.mrf.mxu1 }
 0x401   :  { %v1532_v46 = vadd.f32 %v1531_v45, %v1458_v6  ;;  %v1755_v49 = vpop.f32.mrf.mxu0 }
 0x402   :  { %v18315_v15 = vpop.f32.mrf.mxu1  ;;  %v1756_v44 = vadd.f32 %v1755_v49, %v20474_v54 }
 0x403   :  { %v18330_v17 = vpop.f32.mrf.mxu0  ;;  %v1606_v20 = vadd.f32 %v1605_v40, %v1532_v46 }
 0x404   :  { %v1677_v21 = vpop.f32.mrf.mxu1 }
 0x405   :  { %v20489_v22 = vadd.f32 %v1677_v21, %v1606_v20  ;;  %v20491_v24 = vpop.f32.mrf.mxu0 }
 0x406   :  { %v18325_v25 = vpop.f32.mrf.mxu1 }
 0x407   :  { %v18340_v27 = vpop.f32.mrf.mxu0  ;;  %v7980_v28 = vsel %vm778_vm3, %v20489_v22, -inf }
 0x408   :  { %v1831_v30 = vpop.f32.mrf.mxu1  ;;  %7981 = vmax.xlane.f32.xlu1 %v7980_v28 }
 0x409   :  { %v20498_v48 = vpop.f32.mrf.mxu0  ;;  %v1832_v46 = vadd.f32 %v1831_v30, %v1756_v44 }
 0x40a   :  { %v18335_v50 = vpop.f32.mrf.mxu1  ;;  %v4830_v52 = vpop.permute.xlu1 %4829 }
 0x40b   :  { %v18350_v53 = vpop.f32.mrf.mxu0  ;;  %v4833_v56 = vsel %vm778_vm3, %v4830_v52, 0  ;;  %v1906_v21 = vadd.f32 %v20491_v24, %v1832_v46 }
 0x40c   :  { %v20506_v59 = vand.u32 4294901760, %v4833_v56  ;;  %v20508_v60 = vpop.f32.mrf.mxu1 }
 0x40d   :  { %v20510_v61 = vpop.f32.mrf.mxu0  ;;  %v1980_v24 = vadd.f32 %v20508_v60, %v1906_v21 }
 0x40e   :  { %v20513_v62 = vsub.f32 %v4833_v56, %v20506_v59  ;;  %v18345_v3 = vpop.f32.mrf.mxu1  ;;  %18537 = vmatpush3.xpose.msra.mxu0 %v20506_v59  ;;  %v768_v49 = vpop.permute.xlu1 %767 }
 0x40f   :  { %v18360_v4 = vpop.f32.mrf.mxu0  ;;  %18546 = vmatprep.subr.mxu0 %v19759_v55  ;;  %v2054_v27 = vadd.f32 %v20498_v48, %v1980_v24 }
 0x410   :  { %v20521_v8 = vand.u32 4294901760, %v20513_v62  ;;  %v20523_v9 = vpop.f32.mrf.mxu1 }
 0x411   :  { %v20525_v11 = vpop.f32.mrf.mxu0  ;;  %18539 = vmatmul.mubr.f32.vlgmr.msra.gmra.mxu0 %v4905_v5  ;;  %v20633_v52 = vadd.f32 %v20523_v9, %v2054_v27 }
 0x412   :  { %v18355_v12 = vpop.f32.mrf.mxu1  ;;  %8073 = vrot.lane.b32.xlu0 %v20057_v10, %s19769_s19  ;;  %18547 = vmatpush3.xpose.msra.mxu0 %v20513_v62  ;;  %v4945_v13 = vsub.f32 %v20513_v62, %v20521_v8  ;;  %v5729_v10 = vsel %vm778_vm3, %v20305_v39, 0  ;;  %v770_v50 = vpop.permute.xlu1 %769 }
 0x413   :  { %v18370_v19 = vpop.f32.mrf.mxu0  ;;  %18548 = vmatprep.mubr.msk.f32.mxu0 %vm19760_vm2, %v19759_v55  ;;  %18556 = vmatprep.subr.mxu0 %v19759_v55  ;;  %v20550_v38 = vand.u32 4294901760, %v5729_v10  ;;  %v6631_v56 = vsel %vm778_vm3, %v770_v50, 0 }
 0x414   :  { %v20536_v0 = vpop.f32.mrf.mxu1  ;;  %v20538_v33 = vand.u32 4294901760, %v4945_v13 }
 0x415   :  { %v20542_v35 = vpop.f32.mrf.mxu0  ;;  %18549 = vmatmul.mubr.f32.vlgmr.msra.gmra.mxu0 %v20487_v16  ;;  %v20568_v45 = vsub.f32 %v5729_v10, %v20550_v38  ;;  %v6179_v16 = vsel %vm778_vm3, %v768_v49, 0 }
 0x416   :  { %v18365_v36 = vpop.f32.mrf.mxu1  ;;  %18542 = vmatpush3.xpose.msra.mxu1 %v20538_v33  ;;  %18557 = vmatpush3.xpose.msra.mxu0 %v20521_v8  ;;  %v20596_v25 = vand.u32 4294901760, %v6179_v16 }
 0x417   :  { %v18380_v37 = vpop.f32.mrf.mxu0  ;;  %18558 = vmatprep.mubr.msk.f32.mxu0 %vm19760_vm2, %v19759_v55  ;;  %18551 = vmatprep.subr.mxu1 %v19759_v55  ;;  %v5799_v20 = vand.u32 4294901760, %v20568_v45 }
 0x418   :  { %v20552_v40 = vpop.f32.mrf.mxu1  ;;  %18566 = vmatprep.subr.mxu0 %v19759_v55 }
 0x419   :  { %8525 = vrot.lane.b32.xlu1 %v20062_v14, %s19769_s19  ;;  %18544 = vmatmul.mubr.f32.vlgmr.msra.gmra.mxu1 %v20484_v42  ;;  %v5353_v14 = vand.u32 4294901760, %v5352_v2  ;;  %v774_v2 = vpop.permute.xlu1 %773 }
 0x41a   :  { %v18375_v6 = vpop.f32.mrf.mxu1  ;;  %18559 = vmatmul.mubr.f32.vlgmr.msra.gmra.mxu0 %v20484_v42  ;;  %18552 = vmatpush3.xpose.msra.mxu1 %v20506_v59 }
 0x41b   :  { %18567 = vmatpush3.xpose.msra.mxu0 %v20395_v29  ;;  %18553 = vmatprep.mubr.msk.f32.mxu1 %vm19760_vm2, %v19759_v55 }
 0x41c   :  { %v20570_v15 = vpop.f32.mrf.mxu1  ;;  %18568 = vmatprep.mubr.msk.f32.mxu0 %vm19760_vm2, %v19759_v55  ;;  %18561 = vmatprep.subr.mxu1 %v19759_v55 }
 0x41d   :  { %18554 = vmatmul.mubr.f32.vlgmr.msra.gmra.mxu1 %v4903_v26  ;;  %18576 = vmatprep.subr.mxu0 %v19759_v55  ;;  %v20615_v26 = vsub.f32 %v6179_v16, %v20596_v25 }
 0x41e   :  { %v18385_v17 = vpop.f32.mrf.mxu1  ;;  %18569 = vmatmul.mubr.f32.vlgmr.msra.gmra.mxu0 %v5353_v14  ;;  %18562 = vmatpush3.xpose.msra.mxu1 %v20506_v59 }
 0x41f   :  { %18577 = vmatpush3.xpose.msra.mxu0 %v20406_v34  ;;  %18563 = vmatprep.mubr.msk.f32.mxu1 %vm19760_vm2, %v19759_v55  ;;  %v6178_v34 = vpop.permute.xlu0 %6177  ;;  %v6251_v48 = vand.u32 4294901760, %v20615_v26 }
 0x420   :  { %18578 = vmatprep.mubr.msk.f32.mxu0 %vm19760_vm2, %v19759_v55  ;;  %18571 = vmatprep.subr.mxu1 %v19759_v55 }
 0x421   :  { %18564 = vmatmul.mubr.f32.vlgmr.msra.gmra.mxu1 %v20484_v42  ;;  %18586 = vmatprep.subr.mxu0 %v19759_v55  ;;  %v5800_v42 = vsub.f32 %v20568_v45, %v5799_v20  ;;  %v6252_v60 = vsub.f32 %v20615_v26, %v6251_v48 }
 0x422   :  { %18579 = vmatmul.mubr.f32.vlgmr.msra.gmra.mxu0 %v20518_v7  ;;  %18572 = vmatpush3.xpose.msra.mxu1 %v20444_v51  ;;  %v6181_v51 = vsel %vm778_vm3, %v6178_v34, 0 }
 0x423   :  { %18587 = vmatpush3.xpose.msra.mxu0 %v20419_v43  ;;  %18573 = vmatprep.mubr.msk.f32.mxu1 %vm19760_vm2, %v19759_v55  ;;  %v2204_v43 = vadd.f32 %v20510_v61, %v20474_v54  ;;  %v5801_v30 = vand.u32 4294901760, %v5800_v42  ;;  %v20622_v47 = vand.u32 4294901760, %v6181_v51  ;;  %v6630_v57 = vpop.permute.xlu0 %6629  ;;  %v7983_v61 = vsel %vm778_vm3, %v20633_v52, -inf }
 0x424   :  { %18588 = vmatprep.mubr.msk.f32.mxu0 %vm19760_vm2, %v19759_v55  ;;  %18581 = vmatprep.subr.mxu1 %v19759_v55  ;;  %v6633_v4 = vsel %vm778_vm3, %v6630_v57, 0  ;;  %v6253_v5 = vand.u32 4294901760, %v6252_v60 }
 0x425   :  { %18574 = vmatmul.mubr.f32.vlgmr.msra.gmra.mxu1 %v20504_v58  ;;  %18596 = vmatprep.subr.mxu0 %v19759_v55  ;;  %v2280_v28 = vadd.f32 %v20536_v0, %v2204_v43  ;;  %v20678_v9 = vand.u32 4294901760, %v6633_v4 }
 0x426   :  { %18589 = vmatmul.mubr.f32.vlgmr.msra.gmra.mxu0 %v20504_v58  ;;  %18582 = vmatpush3.xpose.msra.mxu1 %v20395_v29 }
 0x427   :  { %18597 = vmatpush3.xpose.msra.mxu0 %v20506_v59  ;;  %18583 = vmatprep.mubr.msk.f32.mxu1 %vm19760_vm2, %v19759_v55  ;;  %v2354_v53 = vadd.f32 %v20525_v11, %v2280_v28  ;;  %v772_v12 = vpop.permute.xlu0 %771 }
 0x428   :  { %18598 = vmatprep.mubr.msk.f32.mxu0 %vm19760_vm2, %v19759_v55  ;;  %18591 = vmatprep.subr.mxu1 %v19759_v55  ;;  %v7081_v0 = vsel %vm778_vm3, %v772_v12, 0 }
 0x429   :  { %18584 = vmatmul.mubr.f32.vlgmr.msra.gmra.mxu1 %v5351_v31  ;;  %18606 = vmatprep.subr.mxu0 %v19759_v55  ;;  %v20697_v31 = vsub.f32 %v6633_v4, %v20678_v9  ;;  %v20718_v36 = vand.u32 4294901760, %v7081_v0 }
 0x42a   :  { %18599 = vmatmul.mubr.f32.vlgmr.msra.gmra.mxu0 %v5801_v30  ;;  %18592 = vmatpush3.xpose.msra.mxu1 %v20395_v29  ;;  %v20640_v29 = vsub.f32 %v6181_v51, %v20622_v47 }
 0x42b   :  { %18607 = vmatpush3.xpose.msra.mxu0 %v20513_v62  ;;  %18593 = vmatprep.mubr.msk.f32.mxu1 %vm19760_vm2, %v19759_v55  ;;  %v20659_v62 = vand.u32 4294901760, %v6631_v56 }
 0x42c   :  { %18608 = vmatprep.mubr.msk.f32.mxu0 %vm19760_vm2, %v19759_v55  ;;  %18601 = vmatprep.subr.mxu1 %v19759_v55  ;;  %v20662_v3 = vand.u32 4294901760, %v20640_v29 }
 0x42d   :  { %18594 = vmatmul.mubr.f32.vlgmr.msra.gmra.mxu1 %v20504_v58  ;;  %18616 = vmatprep.subr.mxu0 %v19759_v55  ;;  %v2428_v58 = vadd.f32 %v20552_v40, %v2354_v53 }
 0x42e   :  { %18609 = vmatmul.mubr.f32.vlgmr.msra.gmra.mxu0 %v20568_v45  ;;  %18602 = vmatpush3.xpose.msra.mxu1 %v20538_v33  ;;  %v6293_v11 = vsub.f32 %v20640_v29, %v20662_v3  ;;  %v7529_v45 = vsel %vm778_vm3, %v774_v2, 0 }
 0x42f   :  { %18617 = vmatpush3.xpose.msra.mxu0 %v20521_v8  ;;  %18603 = vmatprep.mubr.msk.f32.mxu1 %vm19760_vm2, %v19759_v55  ;;  %v2502_v7 = vadd.f32 %v20542_v35, %v2428_v58  ;;  %v20676_v8 = vsub.f32 %v6631_v56, %v20659_v62  ;;  %v20716_v35 = vand.u32 4294901760, %v20697_v31  ;;  %v20754_v46 = vand.u32 4294901760, %v7529_v45 }
 0x430   :  { %18618 = vmatprep.mubr.msk.f32.mxu0 %vm19760_vm2, %v19759_v55  ;;  %18611 = vmatprep.subr.mxu1 %v19759_v55 }
 0x431   :  { %7984 = vmax.xlane.f32.xlu0 %v7983_v61  ;;  %18604 = vmatmul.mubr.f32.vlgmr.msra.gmra.mxu1 %v20550_v38  ;;  %v20689_v13 = vadd.f32 %v20570_v15, %v2502_v7  ;;  %v6703_v19 = vand.u32 4294901760, %v20676_v8  ;;  %v6745_v40 = vsub.f32 %v20697_v31, %v20716_v35  ;;  %v20768_v14 = vsub.f32 %v7529_v45, %v20754_v46 }
 0x432   :  { %18619 = vmatmul.mubr.f32.vlgmr.msra.gmra.mxu0 %v20550_v38  ;;  %18626 = vmatprep.subr.mxu0 %v19759_v55 }
 0x433   :  { %18612 = vmatpush3.xpose.msra.mxu1 %v20506_v59  ;;  %18627 = vmatpush3.xpose.msra.mxu0 %v20622_v47  ;;  %v7986_v33 = vsel %vm778_vm3, %v20689_v13, -inf  ;;  %v6704_v10 = vsub.f32 %v20676_v8, %v6703_v19  ;;  %v6746_v6 = vand.u32 4294901760, %v6745_v40  ;;  %v7599_v17 = vand.u32 4294901760, %v20768_v14 }
 0x434   :  { %18613 = vmatprep.mubr.msk.f32.mxu1 %vm19760_vm2, %v19759_v55  ;;  %18628 = vmatprep.mubr.msk.f32.mxu0 %vm19760_vm2, %v19759_v55 }
 0x435   :  { %18621 = vmatprep.subr.mxu1 %v19759_v55  ;;  %18636 = vmatprep.subr.mxu0 %v19759_v55  ;;  %v6705_v37 = vand.u32 4294901760, %v6704_v10 }
 0x436   :  { %18614 = vmatmul.mubr.f32.vlgmr.msra.gmra.mxu1 %v5799_v20  ;;  %18629 = vmatmul.mubr.f32.vlgmr.msra.gmra.mxu0 %v6253_v5  ;;  %v7600_v20 = vsub.f32 %v20768_v14, %v7599_v17 }
 0x437   :  { %18622 = vmatpush3.xpose.msra.mxu1 %v20506_v59  ;;  %18637 = vmatpush3.xpose.msra.mxu0 %v20640_v29  ;;  %v20701_v59 = vand.u32 4294901760, %v6293_v11 }
 0x438   :  { %18623 = vmatprep.mubr.msk.f32.mxu1 %vm19760_vm2, %v19759_v55  ;;  %18638 = vmatprep.mubr.msk.f32.mxu0 %vm19760_vm2, %v19759_v55  ;;  %v7601_v21 = vand.u32 4294901760, %v7600_v20 }
 0x439   :  { %18631 = vmatprep.subr.mxu1 %v19759_v55  ;;  %18646 = vmatprep.subr.mxu0 %v19759_v55 }
 0x43a   :  { %18624 = vmatmul.mubr.f32.vlgmr.msra.gmra.mxu1 %v20550_v38  ;;  %18639 = vmatmul.mubr.f32.vlgmr.msra.gmra.mxu0 %v20615_v26  ;;  %v20729_v38 = vsub.f32 %v7081_v0, %v20718_v36 }
 0x43b   :  { %18632 = vmatpush3.xpose.msra.mxu1 %v20701_v59  ;;  %18647 = vmatpush3.xpose.msra.mxu0 %v20662_v3 }
 0x43c   :  { %18633 = vmatprep.mubr.msk.f32.mxu1 %vm19760_vm2, %v19759_v55  ;;  %18648 = vmatprep.mubr.msk.f32.mxu0 %vm19760_vm2, %v19759_v55  ;;  %v7151_v44 = vand.u32 4294901760, %v20729_v38 }
 0x43d   :  { %7987 = vmax.xlane.f32.xlu1 %v7986_v33  ;;  %18641 = vmatprep.subr.mxu1 %v19759_v55 }
 0x43e   :  { %18634 = vmatmul.mubr.f32.vlgmr.msra.gmra.mxu1 %v20596_v25  ;;  %18649 = vmatmul.mubr.f32.vlgmr.msra.gmra.mxu0 %v20596_v25  ;;  %v7152_v15 = vsub.f32 %v20729_v38, %v7151_v44 }
 0x43f   :  { %18656 = vmatprep.subr.mxu0 %v19759_v55  ;;  %18642 = vmatpush3.xpose.msra.mxu1 %v20622_v47 }
 0x440   :  { %18657 = vmatpush3.xpose.msra.mxu0 %v20678_v9  ;;  %18643 = vmatprep.mubr.msk.f32.mxu1 %vm19760_vm2, %v19759_v55  ;;  %v7153_v49 = vand.u32 4294901760, %v7152_v15 }
 0x441   :  { %18658 = vmatprep.mubr.msk.f32.mxu0 %vm19760_vm2, %v19759_v55  ;;  %18651 = vmatprep.subr.mxu1 %v19759_v55 }
 0x442   :  { %18644 = vmatmul.mubr.f32.vlgmr.msra.gmra.mxu1 %v6251_v48  ;;  %18666 = vmatprep.subr.mxu0 %v19759_v55 }
 0x443   :  { %18659 = vmatmul.mubr.f32.vlgmr.msra.gmra.mxu0 %v6705_v37  ;;  %18652 = vmatpush3.xpose.msra.mxu1 %v20622_v47 }
 0x444   :  { %18667 = vmatpush3.xpose.msra.mxu0 %v20697_v31  ;;  %18653 = vmatprep.mubr.msk.f32.mxu1 %vm19760_vm2, %v19759_v55 }
 0x445   :  { %18668 = vmatprep.mubr.msk.f32.mxu0 %vm19760_vm2, %v19759_v55  ;;  %18661 = vmatprep.subr.mxu1 %v19759_v55 }
 0x446   :  { %18654 = vmatmul.mubr.f32.vlgmr.msra.gmra.mxu1 %v20596_v25  ;;  %18676 = vmatprep.subr.mxu0 %v19759_v55 }
 0x447   :  { %18669 = vmatmul.mubr.f32.vlgmr.msra.gmra.mxu0 %v20676_v8  ;;  %18662 = vmatpush3.xpose.msra.mxu1 %v6746_v6 }
 0x448   :  { %18677 = vmatpush3.xpose.msra.mxu0 %v20716_v35  ;;  %18663 = vmatprep.mubr.msk.f32.mxu1 %vm19760_vm2, %v19759_v55 }
 0x449   :  { %18678 = vmatprep.mubr.msk.f32.mxu0 %vm19760_vm2, %v19759_v55  ;;  %18671 = vmatprep.subr.mxu1 %v19759_v55 }
 0x44a   :  { %18664 = vmatmul.mubr.f32.vlgmr.msra.gmra.mxu1 %v20659_v62  ;;  %18686 = vmatprep.subr.mxu0 %v19759_v55 }
 0x44b   :  { %18679 = vmatmul.mubr.f32.vlgmr.msra.gmra.mxu0 %v20659_v62  ;;  %18672 = vmatpush3.xpose.msra.mxu1 %v20678_v9 }
 0x44c   :  { %18687 = vmatpush3.xpose.msra.mxu0 %v20622_v47  ;;  %18673 = vmatprep.mubr.msk.f32.mxu1 %vm19760_vm2, %v19759_v55 }
 0x44d   :  { %18688 = vmatprep.mubr.msk.f32.mxu0 %vm19760_vm2, %v19759_v55  ;;  %18681 = vmatprep.subr.mxu1 %v19759_v55 }
 0x44e   :  { %18674 = vmatmul.mubr.f32.vlgmr.msra.gmra.mxu1 %v6703_v19  ;;  %18696 = vmatprep.subr.mxu0 %v19759_v55 }
 0x44f   :  { %18689 = vmatmul.mubr.f32.vlgmr.msra.gmra.mxu0 %v7153_v49  ;;  %18682 = vmatpush3.xpose.msra.mxu1 %v20678_v9 }
 0x450   :  { %18697 = vmatpush3.xpose.msra.mxu0 %v20640_v29  ;;  %18683 = vmatprep.mubr.msk.f32.mxu1 %vm19760_vm2, %v19759_v55 }
 0x451   :  { %18698 = vmatprep.mubr.msk.f32.mxu0 %vm19760_vm2, %v19759_v55  ;;  %18691 = vmatprep.subr.mxu1 %v19759_v55 }
 0x452   :  { %18684 = vmatmul.mubr.f32.vlgmr.msra.gmra.mxu1 %v20659_v62  ;;  %18706 = vmatprep.subr.mxu0 %v19759_v55 }
 0x453   :  { %18699 = vmatmul.mubr.f32.vlgmr.msra.gmra.mxu0 %v20729_v38  ;;  %18692 = vmatpush3.xpose.msra.mxu1 %v20701_v59 }
 0x454   :  { %18707 = vmatpush3.xpose.msra.mxu0 %v20662_v3  ;;  %18693 = vmatprep.mubr.msk.f32.mxu1 %vm19760_vm2, %v19759_v55 }
 0x455   :  { %18708 = vmatprep.mubr.msk.f32.mxu0 %vm19760_vm2, %v19759_v55  ;;  %18701 = vmatprep.subr.mxu1 %v19759_v55 }
 0x456   :  { %18694 = vmatmul.mubr.f32.vlgmr.msra.gmra.mxu1 %v20718_v36  ;;  %18716 = vmatprep.subr.mxu0 %v19759_v55 }
 0x457   :  { %18709 = vmatmul.mubr.f32.vlgmr.msra.gmra.mxu0 %v20718_v36  ;;  %18702 = vmatpush3.xpose.msra.mxu1 %v20622_v47 }
 0x458   :  { %18717 = vmatpush3.xpose.msra.mxu0 %v20678_v9  ;;  %18703 = vmatprep.mubr.msk.f32.mxu1 %vm19760_vm2, %v19759_v55 }
 0x459   :  { %18718 = vmatprep.mubr.msk.f32.mxu0 %vm19760_vm2, %v19759_v55  ;;  %18711 = vmatprep.subr.mxu1 %v19759_v55 }
 0x45a   :  { %18704 = vmatmul.mubr.f32.vlgmr.msra.gmra.mxu1 %v7151_v44  ;;  %18726 = vmatprep.subr.mxu0 %v19759_v55  ;;  %v2655_v16 = vpop.f32.mrf.mxu0 }
 0x45b   :  { %18719 = vmatmul.mubr.f32.vlgmr.msra.gmra.mxu0 %v7601_v21  ;;  %18712 = vmatpush3.xpose.msra.mxu1 %v20622_v47  ;;  %v2656_v42 = vadd.f32 %v2655_v16, %v20474_v54 }
 0x45c   :  { %18727 = vmatpush3.xpose.msra.mxu0 %v20697_v31  ;;  %v18390_v34 = vpop.f32.mrf.mxu0  ;;  %18713 = vmatprep.mubr.msk.f32.mxu1 %vm19760_vm2, %v19759_v55 }
 0x45d   :  { %18728 = vmatprep.mubr.msk.f32.mxu0 %vm19760_vm2, %v19759_v55  ;;  %18721 = vmatprep.subr.mxu1 %v19759_v55 }
 0x45e   :  { %18714 = vmatmul.mubr.f32.vlgmr.msra.gmra.mxu1 %v20718_v36  ;;  %18736 = vmatprep.subr.mxu0 %v19759_v55  ;;  %v2805_v24 = vpop.f32.mrf.mxu0 }
 0x45f   :  { %18729 = vmatmul.mubr.f32.vlgmr.msra.gmra.mxu0 %v20768_v14  ;;  %18722 = vmatpush3.xpose.msra.mxu1 %v6746_v6 }
 0x460   :  { %18737 = vmatpush3.xpose.msra.mxu0 %v20716_v35  ;;  %v18400_v25 = vpop.f32.mrf.mxu0  ;;  %18723 = vmatprep.mubr.msk.f32.mxu1 %vm19760_vm2, %v19759_v55 }
 0x461   :  { %18738 = vmatprep.mubr.msk.f32.mxu0 %vm19760_vm2, %v19759_v55  ;;  %18731 = vmatprep.subr.mxu1 %v19759_v55 }
 0x462   :  { %18724 = vmatmul.mubr.f32.vlgmr.msra.gmra.mxu1 %v20754_v46  ;;  %v2953_v43 = vpop.f32.mrf.mxu0  ;;  %18746 = vmatprep.subr.mxu0 %v19759_v55 }
 0x463   :  { %18739 = vmatmul.mubr.f32.vlgmr.msra.gmra.mxu0 %v20754_v46  ;;  %v2731_v51 = vpop.f32.mrf.mxu1  ;;  %18732 = vmatpush3.xpose.msra.mxu1 %v20678_v9 }
 0x464   :  { %v2732_v26 = vadd.f32 %v2731_v51, %v2656_v42  ;;  %v18410_v27 = vpop.f32.mrf.mxu0  ;;  %18733 = vmatprep.mubr.msk.f32.mxu1 %vm19760_vm2, %v19759_v55  ;;  %18741 = vmatprep.subr.mxu1 %v19759_v55 }
 0x465   :  { %v18395_v28 = vpop.f32.mrf.mxu1  ;;  %18748 = vmatprep.mubr.msk.f32.mxu0 %vm19760_vm2, %v19759_v55 }
 0x466   :  { %18734 = vmatmul.mubr.f32.vlgmr.msra.gmra.mxu1 %v7599_v17  ;;  %v2806_v30 = vadd.f32 %v2805_v24, %v2732_v26 }
 0x467   :  { %v2879_v47 = vpop.f32.mrf.mxu1  ;;  %18742 = vmatpush3.xpose.msra.mxu1 %v20678_v9  ;;  %18743 = vmatprep.mubr.msk.f32.mxu1 %vm19760_vm2, %v19759_v55 }
 0x468   :  { %v2880_v50 = vadd.f32 %v2879_v47, %v2806_v30  ;;  %18751 = vmatprep.subr.mxu1 %v19759_v55  ;;  %v3107_v48 = vpop.f32.mrf.mxu0 }
 0x469   :  { %v18405_v53 = vpop.f32.mrf.mxu1  ;;  %v3108_v3 = vadd.f32 %v3107_v48, %v20474_v54 }
 0x46a   :  { %18744 = vmatmul.mubr.f32.vlgmr.msra.gmra.mxu1 %v20754_v46  ;;  %v2954_v29 = vadd.f32 %v2953_v43, %v2880_v50  ;;  %v18420_v56 = vpop.f32.mrf.mxu0 }
 0x46b   :  { %v3025_v57 = vpop.f32.mrf.mxu1  ;;  %18753 = vmatprep.mubr.msk.f32.mxu1 %vm19760_vm2, %v19759_v55 }
 0x46c   :  { %v20837_v60 = vadd.f32 %v3025_v57, %v2954_v29 }
 0x46d   :  { %v3257_v58 = vpop.f32.mrf.mxu0  ;;  %v18415_v61 = vpop.f32.mrf.mxu1 }
 0x46e   :  { %v7989_v62 = vsel %vm778_vm3, %v20837_v60, -inf }
 0x46f   :  { %v18430_v4 = vpop.f32.mrf.mxu0  ;;  %7990 = vmax.xlane.f32.xlu0 %v7989_v62  ;;  %v3183_v5 = vpop.f32.mrf.mxu1 }
 0x470   :  { %v3184_v7 = vadd.f32 %v3183_v5, %v3108_v3 }
 0x471   :  { %v3405_v8 = vpop.f32.mrf.mxu0  ;;  %v18425_v9 = vpop.f32.mrf.mxu1 }
 0x472   :  { %v3258_v12 = vadd.f32 %v3257_v58, %v3184_v7 }
 0x473   :  { %v18440_v11 = vpop.f32.mrf.mxu0  ;;  %v3331_v19 = vpop.f32.mrf.mxu1 }
 0x474   :  { %v3332_v31 = vadd.f32 %v3331_v19, %v3258_v12 }
 0x475   :  { %v3555_v59 = vpop.f32.mrf.mxu0  ;;  %v18435_v0 = vpop.f32.mrf.mxu1 }
 0x476   :  { %v3406_v10 = vadd.f32 %v3405_v8, %v3332_v31  ;;  %v3556_v40 = vadd.f32 %v3555_v59, %v20474_v54 }
 0x477   :  { %v18450_v33 = vpop.f32.mrf.mxu0  ;;  %v3477_v35 = vpop.f32.mrf.mxu1 }
 0x478   :  { %v20842_v36 = vadd.f32 %v3477_v35, %v3406_v10 }
 0x479   :  { %v3705_v37 = vpop.f32.mrf.mxu0  ;;  %v18445_v38 = vpop.f32.mrf.mxu1 }
 0x47a   :  { %v7992_v44 = vsel %vm778_vm3, %v20842_v36, -inf }
 0x47b   :  { %v18460_v2 = vpop.f32.mrf.mxu0  ;;  %v3631_v6 = vpop.f32.mrf.mxu1  ;;  %7993 = vmax.xlane.f32.xlu1 %v7992_v44 }
 0x47c   :  { %v3632_v45 = vadd.f32 %v3631_v6, %v3556_v40 }
 0x47d   :  { %v3853_v46 = vpop.f32.mrf.mxu0  ;;  %v18455_v15 = vpop.f32.mrf.mxu1 }
 0x47e   :  { %v3706_v49 = vadd.f32 %v3705_v37, %v3632_v45 }
 0x47f   :  { %v18470_v14 = vpop.f32.mrf.mxu0  ;;  %v3779_v17 = vpop.f32.mrf.mxu1 }
 0x480   :  { %v3780_v20 = vadd.f32 %v3779_v17, %v3706_v49 }
 0x481   :  { %v4003_v21 = vpop.f32.mrf.mxu0  ;;  %v18465_v16 = vpop.f32.mrf.mxu1 }
 0x482   :  { %v3854_v24 = vadd.f32 %v3853_v46, %v3780_v20  ;;  %v4004_v28 = vadd.f32 %v4003_v21, %v20474_v54 }
 0x483   :  { %v18480_v34 = vpop.f32.mrf.mxu0  ;;  %v3925_v25 = vpop.f32.mrf.mxu1 }
 0x484   :  { %v20847_v42 = vadd.f32 %v3925_v25, %v3854_v24 }
 0x485   :  { %v4153_v43 = vpop.f32.mrf.mxu0  ;;  %v7979_v51 = vpop.xlane.xlu0 %7978 }
 0x486   :  { %v18475_v26 = vpop.f32.mrf.mxu1  ;;  %v8025_v27 = vsub.f32 %v20477_v18, %v7979_v51  ;;  %v7995_v47 = vsel %vm778_vm3, %v20847_v42, -inf }
 0x487   :  { %v18490_v30 = vpop.f32.mrf.mxu0  ;;  %7996 = vmax.xlane.f32.xlu0 %v7995_v47 }
 0x488   :  { %v8041_v50 = vmul.f32 1.442695, %v8025_v27  ;;  %v4079_v48 = vpop.f32.mrf.mxu1 }
 0x489   :  { %v4080_v53 = vadd.f32 %v4079_v48, %v4004_v28  ;;  %v4301_v29 = vpop.f32.mrf.mxu0  ;;  %v8074_v56 = vpop.permute.xlu0 %8073 }
 0x48a   :  { %19580 = vpow2.f32 %v8041_v50  ;;  %v18485_v57 = vpop.f32.mrf.mxu1  ;;  %v20853_v58 = vand.u32 4294901760, %v8074_v56 }
 0x48b   :  { %v18500_v61 = vpop.f32.mrf.mxu0  ;;  %v4154_v62 = vadd.f32 %v4153_v43, %v4080_v53 }
 0x48c   :  { %v20856_v18 = vsub.f32 %v8074_v56, %v20853_v58  ;;  %v4227_v3 = vpop.f32.mrf.mxu1  ;;  %18747 = vmatpush3.msra.mxu0 %v20853_v58 }
 0x48d   :  { %v4228_v4 = vadd.f32 %v4227_v3, %v4154_v62  ;;  %v4455_v5 = vpop.f32.mrf.mxu0  ;;  %18756 = vmatprep.subr.mxu0 %v19759_v55 }
 0x48e   :  { %v20861_v7 = vand.u32 4294901760, %v20856_v18  ;;  %v18495_v8 = vpop.f32.mrf.mxu1  ;;  %v4456_v50 = vadd.f32 %v4455_v5, %v20474_v54 }
 0x48f   :  { %v18510_v9 = vpop.f32.mrf.mxu0  ;;  %v4302_v11 = vadd.f32 %v4301_v29, %v4228_v4 }
 0x490   :  { %v4373_v12 = vpop.f32.mrf.mxu1  ;;  %v8189_v19 = vsub.f32 %v20856_v18, %v20861_v7 }
 0x491   :  { %v20865_v31 = vadd.f32 %v4373_v12, %v4302_v11  ;;  %v20867_v59 = vpop.f32.mrf.mxu0  ;;  %v7982_v0 = vpop.xlane.xlu1 %7981 }
 0x492   :  { %v18505_v33 = vpop.f32.mrf.mxu1  ;;  %v8026_v10 = vsub.f32 %v20489_v22, %v7982_v0  ;;  %v20870_v35 = vand.u32 4294901760, %v8189_v19 }
 0x493   :  { %v18520_v37 = vpop.f32.mrf.mxu0  ;;  %v7998_v38 = vsel %vm778_vm3, %v20865_v31, -inf }
 0x494   :  { %v8043_v40 = vmul.f32 1.442695, %v8026_v10  ;;  %v4531_v2 = vpop.f32.mrf.mxu1  ;;  %7999 = vmax.xlane.f32.xlu1 %v7998_v38  ;;  %18752 = vmatpush3.msra.mxu1 %v20870_v35 }
 0x495   :  { %v20875_v44 = vpop.f32.mrf.mxu0  ;;  %v8526_v6 = vpop.permute.xlu1 %8525  ;;  %18761 = vmatprep.subr.mxu1 %v19759_v55  ;;  %v4532_v53 = vadd.f32 %v4531_v2, %v4456_v50 }
 0x496   :  { %19582 = vpow2.f32 %v8043_v40  ;;  %v18515_v45 = vpop.f32.mrf.mxu1  ;;  %v20878_v46 = vand.u32 4294901760, %v8526_v6 }
 0x497   :  { %v20880_v22 = vpop.eup %19580  ;;  %v18530_v15 = vpop.f32.mrf.mxu0  ;;  %v4606_v29 = vadd.f32 %v20867_v59, %v4532_v53 }
 0x498   :  { %v20883_v14 = vsub.f32 %v8526_v6, %v20878_v46  ;;  %v4679_v49 = vpop.f32.mrf.mxu1  ;;  %v8077_v17 = vsel %vm778_vm3, %v20880_v22, 0 }
 0x499   :  { %v8145_v20 = vand.u32 4294901760, %v8077_v17  ;;  %v4680_v57 = vadd.f32 %v4679_v49, %v4606_v29 }
 0x49a   :  { %v20888_v21 = vand.u32 4294901760, %v20883_v14  ;;  %v18525_v16 = vpop.f32.mrf.mxu1 }
 0x49b   :  { %v8146_v34 = vsub.f32 %v8077_v17, %v8145_v20  ;;  %18754 = vmatmul.mubr.f32.vlgmr.msra.gmra.mxu1 %v8145_v20  ;;  %v4754_v61 = vadd.f32 %v20875_v44, %v4680_v57  ;;  %v20979_v44 = vld [vmem:[%s22598_s6] sm:$0xff]  ;;  %s19770_s6 = smov 24  }
 0x49c   :  { %v20890_v24 = vpop.f32.mrf.mxu1  ;;  %18762 = vmatpush3.msra.mxu1 %v20853_v58  ;;  %18763 = vmatprep.mubr.msk.f32.mxu1 %vm19760_vm2, %v19759_v55  ;;  %v8641_v51 = vsub.f32 %v20883_v14, %v20888_v21 }
 0x49d   :  { %18771 = vmatprep.subr.mxu1 %v19759_v55  ;;  %v8147_v25 = vand.u32 4294901760, %v8146_v34  ;;  %9875 = vrot.lane.b32.xlu0 %v20077_v1, %s19769_s19  ;;  %v20952_v62 = vadd.f32 %v20890_v24, %v4754_v61 }
 0x49e   :  { %v18535_v43 = vpop.f32.mrf.mxu1  ;;  %v20904_v28 = vand.u32 4294901760, %v8641_v51 }
 0x49f   :  { %18764 = vmatmul.mubr.f32.vlgmr.msra.gmra.mxu1 %v8147_v25  ;;  %v8148_v26 = vsub.f32 %v8146_v34, %v8147_v25  ;;  %v8001_v5 = vsel %vm778_vm3, %v20952_v62, -inf }
 0x4a0   :  { %18772 = vmatpush3.msra.mxu1 %v20853_v58  ;;  %18773 = vmatprep.mubr.msk.f32.mxu1 %vm19760_vm2, %v19759_v55 }
 0x4a1   :  { %18781 = vmatprep.subr.mxu1 %v19759_v55  ;;  %v8149_v27 = vand.u32 4294901760, %v8148_v26 }
 0x4a3   :  { %v20906_v30 = vpop.eup %19582  ;;  %18749 = vmatmul.mubr.f32.vlgmr.msra.gmra.mxu0 %v8149_v27  ;;  %18774 = vmatmul.mubr.f32.vlgmr.msra.gmra.mxu1 %v8145_v20 }
 0x4a4   :  { %18757 = vmatpush3.msra.mxu0 %v20856_v18  ;;  %18782 = vmatpush3.msra.mxu1 %v20904_v28  ;;  %v8529_v1 = vsel %vm778_vm3, %v20906_v30, 0 }
 0x4a5   :  { %10327 = vrot.lane.b32.xlu1 %v20090_v41, %s19769_s19  ;;  %18758 = vmatprep.mubr.msk.f32.mxu0 %vm19760_vm2, %v19759_v55  ;;  %v8597_v47 = vand.u32 4294901760, %v8529_v1 }
 0x4a6   :  { %18766 = vmatprep.subr.mxu0 %v19759_v55  ;;  %18783 = vmatprep.mubr.msk.f32.mxu1 %vm19760_vm2, %v19759_v55 }
 0x4a7   :  { %18791 = vmatprep.subr.mxu1 %v19759_v55  ;;  %18759 = vmatmul.mubr.f32.vlgmr.msra.gmra.mxu0 %v8146_v34  ;;  %v8598_v48 = vsub.f32 %v8529_v1, %v8597_v47 }
 0x4a8   :  { %18767 = vmatpush3.msra.mxu0 %v20861_v7  ;;  %18784 = vmatmul.mubr.f32.vlgmr.msra.gmra.mxu1 %v8597_v47 }
 0x4a9   :  { %18792 = vmatpush3.msra.mxu1 %v20878_v46  ;;  %18768 = vmatprep.mubr.msk.f32.mxu0 %vm19760_vm2, %v19759_v55  ;;  %v8599_v41 = vand.u32 4294901760, %v8598_v48 }
 0x4aa   :  { %18776 = vmatprep.subr.mxu0 %v19759_v55  ;;  %18793 = vmatprep.mubr.msk.f32.mxu1 %vm19760_vm2, %v19759_v55 }
 0x4ab   :  { %18801 = vmatprep.subr.mxu1 %v19759_v55  ;;  %18769 = vmatmul.mubr.f32.vlgmr.msra.gmra.mxu0 %v8145_v20  ;;  %v8600_v54 = vsub.f32 %v8598_v48, %v8599_v41 }
 0x4ac   :  { %18777 = vmatpush3.msra.mxu0 %v20878_v46  ;;  %18794 = vmatmul.mubr.f32.vlgmr.msra.gmra.mxu1 %v8599_v41 }
 0x4ad   :  { %18802 = vmatpush3.msra.mxu1 %v20878_v46  ;;  %18778 = vmatprep.mubr.msk.f32.mxu0 %vm19760_vm2, %v19759_v55  ;;  %v8601_v56 = vand.u32 4294901760, %v8600_v54 }
 0x4ae   :  { %18786 = vmatprep.subr.mxu0 %v19759_v55  ;;  %18803 = vmatprep.mubr.msk.f32.mxu1 %vm19760_vm2, %v19759_v55 }
 0x4af   :  { %18811 = vmatprep.subr.mxu1 %v19759_v55  ;;  %18779 = vmatmul.mubr.f32.vlgmr.msra.gmra.mxu0 %v8601_v56 }
 0x4b0   :  { %18787 = vmatpush3.msra.mxu0 %v20883_v14  ;;  %18804 = vmatmul.mubr.f32.vlgmr.msra.gmra.mxu1 %v8597_v47 }
 0x4b1   :  { %18812 = vmatpush3.msra.mxu1 %v20870_v35  ;;  %18788 = vmatprep.mubr.msk.f32.mxu0 %vm19760_vm2, %v19759_v55 }
 0x4b2   :  { %18796 = vmatprep.subr.mxu0 %v19759_v55  ;;  %18813 = vmatprep.mubr.msk.f32.mxu1 %vm19760_vm2, %v19759_v55 }
 0x4b3   :  { %18789 = vmatmul.mubr.f32.vlgmr.msra.gmra.mxu0 %v8598_v48  ;;  %18821 = vmatprep.subr.mxu1 %v19759_v55 }
 0x4b4   :  { %18797 = vmatpush3.msra.mxu0 %v20888_v21  ;;  %18798 = vmatprep.mubr.msk.f32.mxu0 %vm19760_vm2, %v19759_v55 }
 0x4b5   :  { %18806 = vmatprep.subr.mxu0 %v19759_v55 }
 0x4b7   :  { %18799 = vmatmul.mubr.f32.vlgmr.msra.gmra.mxu0 %v8597_v47 }
 0x4b8   :  { %18807 = vmatpush3.msra.mxu0 %v20853_v58  ;;  %18808 = vmatprep.mubr.msk.f32.mxu0 %vm19760_vm2, %v19759_v55 }
 0x4b9   :  { %18816 = vmatprep.subr.mxu0 %v19759_v55 }
 0x4ba   :  { %v7985_v3 = vpop.xlane.xlu0 %7984 }
 0x4bb   :  { %v8027_v4 = vsub.f32 %v20633_v52, %v7985_v3 }
 0x4bc   :  { %8002 = vmax.xlane.f32.xlu0 %v8001_v5 }
 0x4bd   :  { %v8045_v8 = vmul.f32 1.442695, %v8027_v4 }
 0x4bf   :  { %19584 = vpow2.f32 %v8045_v8 }
 0x4c6   :  { %v7988_v9 = vpop.xlane.xlu1 %7987 }
 0x4c7   :  { %v8028_v11 = vsub.f32 %v20689_v13, %v7988_v9 }
 0x4c9   :  { %v8047_v12 = vmul.f32 1.442695, %v8028_v11 }
 0x4cb   :  { %19586 = vpow2.f32 %v8047_v12 }
 0x4cc   :  { %v20962_v19 = vpop.eup %19584 }
 0x4cd   :  { %v8978_v59 = vsel %vm778_vm3, %v20962_v19, 0 }
 0x4ce   :  { %v9046_v0 = vand.u32 4294901760, %v8978_v59 }
 0x4d0   :  { %v9047_v33 = vsub.f32 %v8978_v59, %v9046_v0  ;;  %18814 = vmatmul.mubr.f32.vlgmr.msra.gmra.mxu1 %v9046_v0 }
 0x4d1   :  { %18822 = vmatpush3.msra.mxu1 %v20853_v58  ;;  %v4907_v52 = vpop.f32.mrf.mxu0  ;;  %18823 = vmatprep.mubr.msk.f32.mxu1 %vm19760_vm2, %v19759_v55 }
 0x4d2   :  { %18831 = vmatprep.subr.mxu1 %v19759_v55  ;;  %v9048_v10 = vand.u32 4294901760, %v9047_v33  ;;  %v4908_v6 = vadd.f32 %v20979_v44, %v4907_v52 }
 0x4d3   :  { %v18540_v13 = vpop.f32.mrf.mxu0 }
 0x4d4   :  { %18824 = vmatmul.mubr.f32.vlgmr.msra.gmra.mxu1 %v9048_v10  ;;  %v9049_v35 = vsub.f32 %v9047_v33, %v9048_v10 }
 0x4d5   :  { %18832 = vmatpush3.msra.mxu1 %v20853_v58  ;;  %v5057_v37 = vpop.f32.mrf.mxu0  ;;  %18833 = vmatprep.mubr.msk.f32.mxu1 %vm19760_vm2, %v19759_v55 }
 0x4d6   :  { %18841 = vmatprep.subr.mxu1 %v19759_v55  ;;  %v9050_v38 = vand.u32 4294901760, %v9049_v35 }
 0x4d7   :  { %v18550_v40 = vpop.f32.mrf.mxu0 }
 0x4d8   :  { %v20974_v2 = vpop.eup %19586  ;;  %18809 = vmatmul.mubr.f32.vlgmr.msra.gmra.mxu0 %v9050_v38  ;;  %18834 = vmatmul.mubr.f32.vlgmr.msra.gmra.mxu1 %v9046_v0 }
 0x4d9   :  { %18817 = vmatpush3.msra.mxu0 %v20856_v18  ;;  %18842 = vmatpush3.msra.mxu1 %v20904_v28  ;;  %v4983_v58 = vpop.f32.mrf.mxu1  ;;  %v9427_v45 = vsel %vm778_vm3, %v20974_v2, 0 }
 0x4da   :  { %v4984_v15 = vadd.f32 %v4983_v58, %v4908_v6  ;;  %v5205_v49 = vpop.f32.mrf.mxu0  ;;  %18818 = vmatprep.mubr.msk.f32.mxu0 %vm19760_vm2, %v19759_v55  ;;  %18826 = vmatprep.subr.mxu0 %v19759_v55  ;;  %v9495_v17 = vand.u32 4294901760, %v9427_v45 }
 0x4db   :  { %18843 = vmatprep.mubr.msk.f32.mxu1 %vm19760_vm2, %v19759_v55  ;;  %18851 = vmatprep.subr.mxu1 %v19759_v55  ;;  %v18545_v18 = vpop.f32.mrf.mxu1 }
 0x4dc   :  { %v18560_v20 = vpop.f32.mrf.mxu0  ;;  %18819 = vmatmul.mubr.f32.vlgmr.msra.gmra.mxu0 %v9047_v33  ;;  %v9496_v16 = vsub.f32 %v9427_v45, %v9495_v17  ;;  %18844 = vmatmul.mubr.f32.vlgmr.msra.gmra.mxu1 %v9495_v17  ;;  %v5058_v34 = vadd.f32 %v5057_v37, %v4984_v15 }
 0x4dd   :  { %18827 = vmatpush3.msra.mxu0 %v20861_v7  ;;  %18852 = vmatpush3.msra.mxu1 %v20878_v46  ;;  %v5131_v24 = vpop.f32.mrf.mxu1 }
 0x4de   :  { %v5132_v25 = vadd.f32 %v5131_v24, %v5058_v34  ;;  %v5355_v43 = vpop.f32.mrf.mxu0  ;;  %18828 = vmatprep.mubr.msk.f32.mxu0 %vm19760_vm2, %v19759_v55  ;;  %18836 = vmatprep.subr.mxu0 %v19759_v55  ;;  %v9497_v51 = vand.u32 4294901760, %v9496_v16 }
 0x4df   :  { %18853 = vmatprep.mubr.msk.f32.mxu1 %vm19760_vm2, %v19759_v55  ;;  %18861 = vmatprep.subr.mxu1 %v19759_v55  ;;  %v18555_v26 = vpop.f32.mrf.mxu1  ;;  %v5356_v41 = vadd.f32 %v20979_v44, %v5355_v43 }
 0x4e0   :  { %v18570_v27 = vpop.f32.mrf.mxu0  ;;  %18829 = vmatmul.mubr.f32.vlgmr.msra.gmra.mxu0 %v9046_v0  ;;  %18854 = vmatmul.mubr.f32.vlgmr.msra.gmra.mxu1 %v9497_v51  ;;  %v5206_v7 = vadd.f32 %v5205_v49, %v5132_v25  ;;  %v9498_v28 = vsub.f32 %v9496_v16, %v9497_v51 }
 0x4e1   :  { %18837 = vmatpush3.msra.mxu0 %v20878_v46  ;;  %18862 = vmatpush3.msra.mxu1 %v20878_v46  ;;  %v5277_v1 = vpop.f32.mrf.mxu1 }
 0x4e2   :  { %v21002_v47 = vadd.f32 %v5277_v1, %v5206_v7  ;;  %v5505_v50 = vpop.f32.mrf.mxu0  ;;  %18838 = vmatprep.mubr.msk.f32.mxu0 %vm19760_vm2, %v19759_v55  ;;  %18846 = vmatprep.subr.mxu0 %v19759_v55  ;;  %v9499_v48 = vand.u32 4294901760, %v9498_v28 }
 0x4e3   :  { %18863 = vmatprep.mubr.msk.f32.mxu1 %vm19760_vm2, %v19759_v55  ;;  %v18565_v53 = vpop.f32.mrf.mxu1  ;;  %18871 = vmatprep.subr.mxu1 %v19759_v55 }
 0x4e4   :  { %v18580_v54 = vpop.f32.mrf.mxu0  ;;  %18839 = vmatmul.mubr.f32.vlgmr.msra.gmra.mxu0 %v9499_v48  ;;  %18864 = vmatmul.mubr.f32.vlgmr.msra.gmra.mxu1 %v9495_v17  ;;  %v8004_v46 = vsel %vm778_vm3, %v21002_v47, -inf }
 0x4e5   :  { %18847 = vmatpush3.msra.mxu0 %v20883_v14  ;;  %v5431_v29 = vpop.f32.mrf.mxu1  ;;  %8005 = vmax.xlane.f32.xlu1 %v8004_v46 }
 0x4e6   :  { %v5432_v56 = vadd.f32 %v5431_v29, %v5356_v41  ;;  %v5653_v57 = vpop.f32.mrf.mxu0  ;;  %18848 = vmatprep.mubr.msk.f32.mxu0 %vm19760_vm2, %v19759_v55  ;;  %18856 = vmatprep.subr.mxu0 %v19759_v55 }
 0x4e7   :  { %v18575_v61 = vpop.f32.mrf.mxu1  ;;  %18873 = vmatprep.mubr.msk.f32.mxu1 %vm19760_vm2, %v19759_v55 }
 0x4e8   :  { %v18590_v3 = vpop.f32.mrf.mxu0  ;;  %18849 = vmatmul.mubr.f32.vlgmr.msra.gmra.mxu0 %v9496_v16  ;;  %v5506_v4 = vadd.f32 %v5505_v50, %v5432_v56 }
 0x4e9   :  { %18857 = vmatpush3.msra.mxu0 %v20888_v21  ;;  %v5579_v5 = vpop.f32.mrf.mxu1  ;;  %18858 = vmatprep.mubr.msk.f32.mxu0 %vm19760_vm2, %v19759_v55 }
 0x4ea   :  { %v5580_v14 = vadd.f32 %v5579_v5, %v5506_v4  ;;  %v5803_v8 = vpop.f32.mrf.mxu0  ;;  %18866 = vmatprep.subr.mxu0 %v19759_v55 }
 0x4eb   :  { %v18585_v9 = vpop.f32.mrf.mxu1  ;;  %v5804_v52 = vadd.f32 %v20979_v44, %v5803_v8 }
 0x4ec   :  { %v18600_v11 = vpop.f32.mrf.mxu0  ;;  %18859 = vmatmul.mubr.f32.vlgmr.msra.gmra.mxu0 %v9495_v17  ;;  %v5654_v12 = vadd.f32 %v5653_v57, %v5580_v14 }
 0x4ed   :  { %v5725_v59 = vpop.f32.mrf.mxu1  ;;  %18868 = vmatprep.mubr.msk.f32.mxu0 %vm19760_vm2, %v19759_v55 }
 0x4ee   :  { %v21025_v0 = vadd.f32 %v5725_v59, %v5654_v12  ;;  %v5953_v33 = vpop.f32.mrf.mxu0 }
 0x4ef   :  { %v18595_v21 = vpop.f32.mrf.mxu1 }
 0x4f0   :  { %v18610_v10 = vpop.f32.mrf.mxu0  ;;  %v8007_v13 = vsel %vm778_vm3, %v21025_v0, -inf }
 0x4f1   :  { %v5879_v35 = vpop.f32.mrf.mxu1  ;;  %8008 = vmax.xlane.f32.xlu0 %v8007_v13 }
 0x4f2   :  { %v5880_v37 = vadd.f32 %v5879_v35, %v5804_v52  ;;  %v6101_v38 = vpop.f32.mrf.mxu0 }
 0x4f3   :  { %v18605_v40 = vpop.f32.mrf.mxu1 }
 0x4f4   :  { %v18620_v6 = vpop.f32.mrf.mxu0  ;;  %v5954_v58 = vadd.f32 %v5953_v33, %v5880_v37 }
 0x4f6   :  { %v6027_v45 = vpop.f32.mrf.mxu1  ;;  %v6255_v15 = vpop.f32.mrf.mxu0 }
 0x4f7   :  { %v6028_v49 = vadd.f32 %v6027_v45, %v5954_v58  ;;  %v6256_v10 = vadd.f32 %v20979_v44, %v6255_v15 }
 0x4f8   :  { %v18615_v17 = vpop.f32.mrf.mxu1  ;;  %v7991_v18 = vpop.xlane.xlu0 %7990 }
 0x4f9   :  { %v8029_v20 = vsub.f32 %v20837_v60, %v7991_v18  ;;  %v18630_v16 = vpop.f32.mrf.mxu0  ;;  %v6102_v34 = vadd.f32 %v6101_v38, %v6028_v49 }
 0x4fa   :  { %v6173_v24 = vpop.f32.mrf.mxu1 }
 0x4fb   :  { %v8049_v25 = vmul.f32 1.442695, %v8029_v20  ;;  %v21031_v43 = vadd.f32 %v6173_v24, %v6102_v34  ;;  %v6405_v51 = vpop.f32.mrf.mxu0 }
 0x4fc   :  { %v18625_v26 = vpop.f32.mrf.mxu1 }
 0x4fd   :  { %19588 = vpow2.f32 %v8049_v25  ;;  %v18640_v27 = vpop.f32.mrf.mxu0  ;;  %v8010_v7 = vsel %vm778_vm3, %v21031_v43, -inf }
 0x4fe   :  { %v6331_v28 = vpop.f32.mrf.mxu1  ;;  %8011 = vmax.xlane.f32.xlu1 %v8010_v7 }
 0x4ff   :  { %v21035_v1 = vpop.f32.mrf.mxu0  ;;  %v6332_v40 = vadd.f32 %v6331_v28, %v6256_v10 }
 0x500   :  { %v18635_v50 = vpop.f32.mrf.mxu1 }
 0x501   :  { %v18650_v48 = vpop.f32.mrf.mxu0 }
 0x502   :  { %v6479_v60 = vpop.f32.mrf.mxu1 }
 0x503   :  { %v21037_v53 = vpop.f32.mrf.mxu0 }
 0x504   :  { %v18645_v41 = vpop.f32.mrf.mxu1  ;;  %v7994_v54 = vpop.xlane.xlu1 %7993 }
 0x505   :  { %v18660_v46 = vpop.f32.mrf.mxu0  ;;  %v8030_v29 = vsub.f32 %v20842_v36, %v7994_v54 }
 0x506   :  { %v21040_v56 = vpop.f32.mrf.mxu1 }
 0x507   :  { %v21042_v57 = vpop.f32.mrf.mxu0  ;;  %11677 = vrot.lane.b32.xlu0 %v20140_v23, %s19769_s19  ;;  %v8051_v61 = vmul.f32 1.442695, %v8030_v29 }
 0x508   :  { %v18655_v3 = vpop.f32.mrf.mxu1 }
 0x509   :  { %v18670_v4 = vpop.f32.mrf.mxu0  ;;  %19590 = vpow2.f32 %v8051_v61 }
 0x50a   :  { %v21046_v5 = vpop.eup %19588  ;;  %v21048_v14 = vpop.f32.mrf.mxu1 }
 0x50b   :  { %v9879_v8 = vsel %vm778_vm3, %v21046_v5, 0  ;;  %v21052_v9 = vpop.f32.mrf.mxu0 }
 0x50c   :  { %v21054_v36 = vand.u32 4294901760, %v9879_v8  ;;  %v18665_v11 = vpop.f32.mrf.mxu1 }
 0x50d   :  { %v18680_v12 = vpop.f32.mrf.mxu0 }
 0x50e   :  { %v21057_v59 = vsub.f32 %v9879_v8, %v21054_v36  ;;  %v21059_v23 = vpop.f32.mrf.mxu1 }
 0x50f   :  { %v7155_v33 = vpop.f32.mrf.mxu0  ;;  %12129 = vrot.lane.b32.xlu1 %v20256_v63, %s19769_s19 }
 0x510   :  { %v18675_v21 = vpop.f32.mrf.mxu1  ;;  %v9949_v52 = vand.u32 4294901760, %v21057_v59  ;;  %v7997_v13 = vpop.xlane.xlu0 %7996  ;;  %v7156_v18 = vadd.f32 %v20979_v44, %v7155_v33 }
 0x511   :  { %v18690_v35 = vpop.f32.mrf.mxu0  ;;  %v8031_v37 = vsub.f32 %v20847_v42, %v7997_v13  ;;  %v6406_v42 = vadd.f32 %v6405_v51, %v6332_v40  ;;  %v6708_v21 = vadd.f32 %v20979_v44, %v21037_v53 }
 0x512   :  { %v21066_v38 = vpop.f32.mrf.mxu1  ;;  %v9950_v58 = vsub.f32 %v21057_v59, %v9949_v52 }
 0x513   :  { %v7305_v6 = vpop.f32.mrf.mxu0  ;;  %v8053_v45 = vmul.f32 1.442695, %v8031_v37  ;;  %v6480_v41 = vadd.f32 %v6479_v60, %v6406_v42 }
 0x514   :  { %v18685_v49 = vpop.f32.mrf.mxu1  ;;  %v9876_v63 = vpop.permute.xlu0 %9875  ;;  %v9951_v24 = vand.u32 4294901760, %v9950_v58 }
 0x515   :  { %v18700_v17 = vpop.f32.mrf.mxu0  ;;  %19592 = vpow2.f32 %v8053_v45  ;;  %v21072_v15 = vand.u32 4294901760, %v9876_v63  ;;  %v6554_v10 = vadd.f32 %v21035_v1, %v6480_v41 }
 0x516   :  { %v7231_v20 = vpop.f32.mrf.mxu1  ;;  %v21074_v16 = vpop.eup %19590 }
 0x517   :  { %v7453_v34 = vpop.f32.mrf.mxu0  ;;  %v10331_v25 = vsel %vm778_vm3, %v21074_v16, 0  ;;  %v21079_v26 = vsub.f32 %v9876_v63, %v21072_v15  ;;  %v7232_v27 = vadd.f32 %v7231_v20, %v7156_v18  ;;  %18867 = vmatpush3.msra.mxu0 %v21072_v15  ;;  %v21123_v63 = vadd.f32 %v21040_v56, %v6554_v10 }
 0x518   :  { %v18695_v7 = vpop.f32.mrf.mxu1  ;;  %v21082_v28 = vand.u32 4294901760, %v10331_v25  ;;  %18869 = vmatmul.mubr.f32.vlgmr.msra.gmra.mxu0 %v9951_v24  ;;  %18876 = vmatprep.subr.mxu0 %v19759_v55 }
 0x519   :  { %v18710_v50 = vpop.f32.mrf.mxu0  ;;  %18877 = vmatpush3.msra.mxu0 %v21079_v26  ;;  %18878 = vmatprep.mubr.msk.f32.mxu0 %vm19760_vm2, %v19759_v55  ;;  %v21089_v48 = vand.u32 4294901760, %v21079_v26  ;;  %v7306_v29 = vadd.f32 %v7305_v6, %v7232_v27  ;;  %v6784_v6 = vadd.f32 %v21048_v14, %v6708_v21 }
 0x51a   :  { %v7379_v51 = vpop.f32.mrf.mxu1  ;;  %v21092_v54 = vsub.f32 %v10331_v25, %v21082_v28  ;;  %18886 = vmatprep.subr.mxu0 %v19759_v55 }
 0x51b   :  { %v7603_v46 = vpop.f32.mrf.mxu0  ;;  %v9991_v3 = vsub.f32 %v21079_v26, %v21089_v48  ;;  %v7380_v35 = vadd.f32 %v7379_v51, %v7306_v29  ;;  %v6858_v24 = vadd.f32 %v21042_v57, %v6784_v6 }
 0x51c   :  { %v18705_v61 = vpop.f32.mrf.mxu1  ;;  %18879 = vmatmul.mubr.f32.vlgmr.msra.gmra.mxu0 %v21057_v59  ;;  %v10401_v11 = vand.u32 4294901760, %v21092_v54  ;;  %v7604_v14 = vadd.f32 %v20979_v44, %v7603_v46  ;;  %v8013_v59 = vsel %vm778_vm3, %v21123_v63, -inf }
 0x51d   :  { %v8000_v4 = vpop.xlane.xlu1 %7999  ;;  %v18720_v8 = vpop.f32.mrf.mxu0  ;;  %18887 = vmatpush3.msra.mxu0 %v21089_v48  ;;  %v21101_v33 = vand.u32 4294901760, %v9991_v3  ;;  %18888 = vmatprep.mubr.msk.f32.mxu0 %vm19760_vm2, %v19759_v55  ;;  %v7454_v20 = vadd.f32 %v7453_v34, %v7380_v35  ;;  %v6932_v46 = vadd.f32 %v21059_v23, %v6858_v24 }
 0x51e   :  { %v8032_v60 = vsub.f32 %v20865_v31, %v8000_v4  ;;  %v7525_v12 = vpop.f32.mrf.mxu1  ;;  %18896 = vmatprep.subr.mxu0 %v19759_v55  ;;  %v10402_v31 = vsub.f32 %v21092_v54, %v10401_v11 }
 0x51f   :  { %v7753_v13 = vpop.f32.mrf.mxu0  ;;  %18872 = vmatpush3.msra.mxu1 %v21101_v33  ;;  %v21153_v57 = vadd.f32 %v7525_v12, %v7454_v20  ;;  %v7006_v8 = vadd.f32 %v21052_v9, %v6932_v46  ;;  %v15293_v20 = vsel %vm778_vm3, %v21046_v5, 0.0 }
 0x520   :  { %v8055_v37 = vmul.f32 1.442695, %v8032_v60  ;;  %v18715_v40 = vpop.f32.mrf.mxu1  ;;  %18874 = vmatmul.mubr.f32.vlgmr.msra.gmra.mxu1 %v21054_v36  ;;  %18881 = vmatprep.subr.mxu1 %v19759_v55  ;;  %v10403_v44 = vand.u32 4294901760, %v10402_v31 }
 0x521   :  { %v10328_v53 = vpop.permute.xlu1 %10327  ;;  %v18730_v1 = vpop.f32.mrf.mxu0  ;;  %18889 = vmatmul.mubr.f32.vlgmr.msra.gmra.mxu0 %v21054_v36  ;;  %18882 = vmatpush3.msra.mxu1 %v21072_v15  ;;  %v21194_v10 = vadd.f32 %v21066_v38, %v7006_v8 }
 0x522   :  { %19594 = vpow2.f32 %v8055_v37  ;;  %v21117_v58 = vand.u32 4294901760, %v10328_v53  ;;  %v7679_v45 = vpop.f32.mrf.mxu1  ;;  %v21120_v49 = vpop.eup %19592  ;;  %18883 = vmatprep.mubr.msk.f32.mxu1 %vm19760_vm2, %v19759_v55  ;;  %18891 = vmatprep.subr.mxu1 %v19759_v55 }
 0x523   :  { %v7901_v17 = vpop.f32.mrf.mxu0  ;;  %v10780_v18 = vsel %vm778_vm3, %v21120_v49, 0  ;;  %18898 = vmatprep.mubr.msk.f32.mxu0 %vm19760_vm2, %v19759_v55  ;;  %v7680_v34 = vadd.f32 %v7679_v45, %v7604_v14  ;;  %v8016_v38 = vsel %vm778_vm3, %v21194_v10, -inf  ;;  %v15299_v46 = vsel %vm778_vm3, %v21120_v49, 0.0 }
 0x524   :  { %v21132_v42 = vsub.f32 %v10328_v53, %v21117_v58  ;;  %18897 = vmatpush3.msra.mxu0 %v21117_v58  ;;  %v18725_v56 = vpop.f32.mrf.mxu1  ;;  %v21138_v25 = vand.u32 4294901760, %v10780_v18  ;;  %18884 = vmatmul.mubr.f32.vlgmr.msra.gmra.mxu1 %v9949_v52 }
 0x525   :  { %v18740_v27 = vpop.f32.mrf.mxu0  ;;  %18906 = vmatprep.subr.mxu0 %v19759_v55  ;;  %18892 = vmatpush3.msra.mxu1 %v21072_v15  ;;  %v7754_v61 = vadd.f32 %v7753_v13, %v7680_v34 }
 0x526   :  { %18899 = vmatmul.mubr.f32.vlgmr.msra.gmra.mxu0 %v10403_v44  ;;  %v7827_v7 = vpop.f32.mrf.mxu1  ;;  %v21145_v50 = vand.u32 4294901760, %v21132_v42  ;;  %v21148_v51 = vsub.f32 %v10780_v18, %v21138_v25  ;;  %18893 = vmatprep.mubr.msk.f32.mxu1 %vm19760_vm2, %v19759_v55 }
 0x527   :  { %18907 = vmatpush3.msra.mxu0 %v21132_v42  ;;  %18908 = vmatprep.mubr.msk.f32.mxu0 %vm19760_vm2, %v19759_v55  ;;  %v7828_v12 = vadd.f32 %v7827_v7, %v7754_v61 }
 0x528   :  { %18916 = vmatprep.subr.mxu0 %v19759_v55  ;;  %v18735_v52 = vpop.f32.mrf.mxu1  ;;  %v10443_v41 = vsub.f32 %v21132_v42, %v21145_v50  ;;  %8014 = vmax.xlane.f32.xlu0 %v8013_v59  ;;  %v10850_v29 = vand.u32 4294901760, %v21148_v51 }
 0x529   :  { %18894 = vmatmul.mubr.f32.vlgmr.msra.gmra.mxu1 %v21054_v36  ;;  %18901 = vmatprep.subr.mxu1 %v19759_v55  ;;  %v8019_v36 = vsel %vm778_vm3, %v21153_v57, -inf  ;;  %v7902_v37 = vadd.f32 %v7901_v17, %v7828_v12 }
 0x52a   :  { %18909 = vmatmul.mubr.f32.vlgmr.msra.gmra.mxu0 %v21092_v54  ;;  %v7973_v3 = vpop.f32.mrf.mxu1  ;;  %v21167_v4 = vand.u32 4294901760, %v10443_v41  ;;  %18903 = vmatprep.mubr.msk.f32.mxu1 %vm19760_vm2, %v19759_v55  ;;  %v10851_v60 = vsub.f32 %v21148_v51, %v10850_v29 }
 0x52b   :  { %18917 = vmatpush3.msra.mxu0 %v21145_v50  ;;  %18918 = vmatprep.mubr.msk.f32.mxu0 %vm19760_vm2, %v19759_v55  ;;  %v21214_v54 = vadd.f32 %v7973_v3, %v7902_v37 }
 0x52c   :  { %18902 = vmatpush3.msra.mxu1 %v21167_v4  ;;  %v18745_v23 = vpop.f32.mrf.mxu1  ;;  %18926 = vmatprep.subr.mxu0 %v19759_v55  ;;  %v10852_v35 = vand.u32 4294901760, %v10851_v60 }
 0x52d   :  { %8020 = vmax.xlane.f32.xlu0 %v8019_v36  ;;  %18904 = vmatmul.mubr.f32.vlgmr.msra.gmra.mxu1 %v21082_v28 }
 0x52e   :  { %18911 = vmatprep.subr.mxu1 %v19759_v55  ;;  %18919 = vmatmul.mubr.f32.vlgmr.msra.gmra.mxu0 %v21082_v28 }
 0x52f   :  { %v21184_v21 = vpop.eup %19594  ;;  %18912 = vmatpush3.msra.mxu1 %v21117_v58  ;;  %18927 = vmatpush3.msra.mxu0 %v21072_v15 }
 0x530   :  { %v11229_v9 = vsel %vm778_vm3, %v21184_v21, 0  ;;  %18913 = vmatprep.mubr.msk.f32.mxu1 %vm19760_vm2, %v19759_v55  ;;  %18921 = vmatprep.subr.mxu1 %v19759_v55  ;;  %v15302_v49 = vsel %vm778_vm3, %v21184_v21, 0.0 }
 0x531   :  { %v21196_v13 = vand.u32 4294901760, %v11229_v9  ;;  %18928 = vmatprep.mubr.msk.f32.mxu0 %vm19760_vm2, %v19759_v55  ;;  %18936 = vmatprep.subr.mxu0 %v19759_v55 }
 0x532   :  { %18914 = vmatmul.mubr.f32.vlgmr.msra.gmra.mxu1 %v10401_v11  ;;  %18929 = vmatmul.mubr.f32.vlgmr.msra.gmra.mxu0 %v10852_v35 }
 0x533   :  { %v11298_v40 = vsub.f32 %v11229_v9, %v21196_v13  ;;  %18922 = vmatpush3.msra.mxu1 %v21117_v58  ;;  %18937 = vmatpush3.msra.mxu0 %v21079_v26  ;;  %v8022_v26 = vsel %vm778_vm3, %v21214_v54, -inf }
 0x534   :  { %18923 = vmatprep.mubr.msk.f32.mxu1 %vm19760_vm2, %v19759_v55  ;;  %18931 = vmatprep.subr.mxu1 %v19759_v55 }
 0x535   :  { %18938 = vmatprep.mubr.msk.f32.mxu0 %vm19760_vm2, %v19759_v55  ;;  %18946 = vmatprep.subr.mxu0 %v19759_v55  ;;  %v11299_v11 = vand.u32 4294901760, %v11298_v40 }
 0x536   :  { %8017 = vmax.xlane.f32.xlu1 %v8016_v38  ;;  %18924 = vmatmul.mubr.f32.vlgmr.msra.gmra.mxu1 %v21082_v28 }
 0x537   :  { %18939 = vmatmul.mubr.f32.vlgmr.msra.gmra.mxu0 %v21148_v51  ;;  %18932 = vmatpush3.msra.mxu1 %v21101_v33  ;;  %v11300_v28 = vsub.f32 %v11298_v40, %v11299_v11 }
 0x538   :  { %18947 = vmatpush3.msra.mxu0 %v21089_v48  ;;  %18933 = vmatprep.mubr.msk.f32.mxu1 %vm19760_vm2, %v19759_v55 }
 0x539   :  { %18941 = vmatprep.subr.mxu1 %v19759_v55  ;;  %18948 = vmatprep.mubr.msk.f32.mxu0 %vm19760_vm2, %v19759_v55  ;;  %v11301_v48 = vand.u32 4294901760, %v11300_v28 }
 0x53a   :  { %18956 = vmatprep.subr.mxu0 %v19759_v55  ;;  %8023 = vmax.xlane.f32.xlu1 %v8022_v26 }
 0x53b   :  { %18934 = vmatmul.mubr.f32.vlgmr.msra.gmra.mxu1 %v21138_v25  ;;  %18949 = vmatmul.mubr.f32.vlgmr.msra.gmra.mxu0 %v21138_v25 }
 0x53c   :  { %18942 = vmatpush3.msra.mxu1 %v21072_v15  ;;  %18957 = vmatpush3.msra.mxu0 %v21117_v58 }
 0x53d   :  { %18943 = vmatprep.mubr.msk.f32.mxu1 %vm19760_vm2, %v19759_v55  ;;  %18951 = vmatprep.subr.mxu1 %v19759_v55 }
 0x53e   :  { %18958 = vmatprep.mubr.msk.f32.mxu0 %vm19760_vm2, %v19759_v55  ;;  %18966 = vmatprep.subr.mxu0 %v19759_v55 }
 0x53f   :  { %18944 = vmatmul.mubr.f32.vlgmr.msra.gmra.mxu1 %v10850_v29  ;;  %18959 = vmatmul.mubr.f32.vlgmr.msra.gmra.mxu0 %v11301_v48  ;;  %v15290_v29 = vsel %vm778_vm3, %v20974_v2, 0.0 }
 0x540   :  { %18952 = vmatpush3.msra.mxu1 %v21072_v15  ;;  %18967 = vmatpush3.msra.mxu0 %v21132_v42 }
 0x541   :  { %18953 = vmatprep.mubr.msk.f32.mxu1 %vm19760_vm2, %v19759_v55  ;;  %18961 = vmatprep.subr.mxu1 %v19759_v55 }
 0x542   :  { %18968 = vmatprep.mubr.msk.f32.mxu0 %vm19760_vm2, %v19759_v55  ;;  %18976 = vmatprep.subr.mxu0 %v19759_v55 }
 0x543   :  { %18954 = vmatmul.mubr.f32.vlgmr.msra.gmra.mxu1 %v21138_v25  ;;  %18969 = vmatmul.mubr.f32.vlgmr.msra.gmra.mxu0 %v11298_v40 }
 0x544   :  { %18962 = vmatpush3.msra.mxu1 %v21167_v4  ;;  %18977 = vmatpush3.msra.mxu0 %v21145_v50 }
 0x545   :  { %13479 = vrot.lane.b32.xlu0 %v20285_v32, %s19769_s19  ;;  %18963 = vmatprep.mubr.msk.f32.mxu1 %vm19760_vm2, %v19759_v55  ;;  %v8003_v32 = vpop.xlane.xlu0 %8002 }
 0x546   :  { %18971 = vmatprep.subr.mxu1 %v19759_v55  ;;  %18978 = vmatprep.mubr.msk.f32.mxu0 %vm19760_vm2, %v19759_v55  ;;  %v8033_v15 = vsub.f32 %v20952_v62, %v8003_v32 }
 0x547   :  { %18964 = vmatmul.mubr.f32.vlgmr.msra.gmra.mxu1 %v21196_v13  ;;  %18979 = vmatmul.mubr.f32.vlgmr.msra.gmra.mxu0 %v21196_v13 }
 0x548   :  { %18972 = vmatpush3.msra.mxu1 %v21117_v58  ;;  %18973 = vmatprep.mubr.msk.f32.mxu1 %vm19760_vm2, %v19759_v55  ;;  %v8057_v33 = vmul.f32 1.442695, %v8033_v15 }
 0x549   :  { %18981 = vmatprep.subr.mxu1 %v19759_v55  ;;  %18986 = vmatprep.subr.mxu0 %v19759_v55 }
 0x54a   :  { %18988 = vmatprep.mubr.msk.f32.mxu0 %vm19760_vm2, %v19759_v55  ;;  %19596 = vpow2.f32 %v8057_v33 }
 0x54b   :  { %18974 = vmatmul.mubr.f32.vlgmr.msra.gmra.mxu1 %v11299_v11  ;;  %13931 = vrot.lane.b32.xlu1 %v20305_v39, %s19769_s19  ;;  %v15287_v39 = vsel %vm778_vm3, %v20962_v19, 0.0  ;;  %v15296_v19 = vsel %vm778_vm3, %v21074_v16, 0.0 }
 0x54c   :  { %18982 = vmatpush3.msra.mxu1 %v21117_v58  ;;  %18983 = vmatprep.mubr.msk.f32.mxu1 %vm19760_vm2, %v19759_v55 }
 0x54d   :  { %18991 = vmatprep.subr.mxu1 %v19759_v55 }
 0x54f   :  { %18984 = vmatmul.mubr.f32.vlgmr.msra.gmra.mxu1 %v21196_v13 }
 0x550   :  { %18993 = vmatprep.mubr.msk.f32.mxu1 %vm19760_vm2, %v19759_v55 }
 0x557   :  { %v19597_v24 = vpop.eup %19596 }
 0x558   :  { %v11681_v51 = vsel %vm778_vm3, %v19597_v24, 0  ;;  %v15305_v12 = vsel %vm778_vm3, %v19597_v24, 0.0 }
 0x559   :  { %v21292_v3 = vand.u32 4294901760, %v11681_v51 }
 0x55b   :  { %v8227_v31 = vpop.f32.mrf.mxu1  ;;  %v11750_v2 = vsub.f32 %v11681_v51, %v21292_v3 }
 0x55d   :  { %v18755_v6 = vpop.f32.mrf.mxu1  ;;  %v11751_v38 = vand.u32 4294901760, %v11750_v2 }
 0x55f   :  { %v8375_v53 = vpop.f32.mrf.mxu1  ;;  %v11752_v32 = vsub.f32 %v11750_v2, %v11751_v38 }
 0x561   :  { %v18765_v1 = vpop.f32.mrf.mxu1  ;;  %v11753_v6 = vand.u32 4294901760, %v11752_v32 }
 0x563   :  { %v8151_v58 = vpop.f32.mrf.mxu0  ;;  %v8521_v45 = vpop.f32.mrf.mxu1 }
 0x564   :  { %15288 = vadd.xlane.f32.xlu0 %v15287_v39  ;;  %v8228_v14 = vadd.f32 %v8227_v31, %v8151_v58 }
 0x565   :  { %v18750_v17 = vpop.f32.mrf.mxu0  ;;  %v18775_v18 = vpop.f32.mrf.mxu1 }
 0x567   :  { %v8301_v42 = vpop.f32.mrf.mxu0 }
 0x568   :  { %15294 = vadd.xlane.f32.xlu0 %v15293_v20  ;;  %v8302_v62 = vadd.f32 %v8301_v42, %v8228_v14  ;;  %v8679_v56 = vpop.f32.mrf.mxu1 }
 0x569   :  { %v18760_v44 = vpop.f32.mrf.mxu0 }
 0x56a   :  { %v18785_v25 = vpop.f32.mrf.mxu1  ;;  %v8376_v27 = vadd.f32 %v8375_v53, %v8302_v62 }
 0x56b   :  { %v8449_v34 = vpop.f32.mrf.mxu0 }
 0x56c   :  { %15297 = vadd.xlane.f32.xlu0 %v15296_v19  ;;  %v8450_v7 = vadd.f32 %v8449_v34, %v8376_v27  ;;  %v8827_v50 = vpop.f32.mrf.mxu1 }
 0x56d   :  { %v18770_v59 = vpop.f32.mrf.mxu0 }
 0x56e   :  { %v21285_v52 = vadd.f32 %v8521_v45, %v8450_v7  ;;  %v18795_v5 = vpop.f32.mrf.mxu1  ;;  %v8006_v41 = vpop.xlane.xlu1 %8005 }
 0x56f   :  { %v8034_v61 = vsub.f32 %v21002_v47, %v8006_v41  ;;  %v8603_v16 = vpop.f32.mrf.mxu0  ;;  %15291 = vadd.xlane.f32.xlu1 %v15290_v29 }
 0x570   :  { %15300 = vadd.xlane.f32.xlu0 %v15299_v46  ;;  %v8973_v4 = vpop.f32.mrf.mxu1  ;;  %v8680_v36 = vadd.f32 %v8679_v56, %v8603_v16 }
 0x571   :  { %v8059_v23 = vmul.f32 1.442695, %v8034_v61  ;;  %v18780_v8 = vpop.f32.mrf.mxu0 }
 0x572   :  { %v18805_v60 = vpop.f32.mrf.mxu1 }
 0x573   :  { %19598 = vpow2.f32 %v8059_v23  ;;  %v8753_v9 = vpop.f32.mrf.mxu0  ;;  %15303 = vadd.xlane.f32.xlu1 %v15302_v49 }
 0x574   :  { %15306 = vadd.xlane.f32.xlu0 %v15305_v12  ;;  %v8754_v47 = vadd.f32 %v8753_v9, %v8680_v36 }
 0x575   :  { %v18790_v13 = vpop.f32.mrf.mxu0 }
 0x576   :  { %v8828_v35 = vadd.f32 %v8827_v50, %v8754_v47 }
 0x577   :  { %v8901_v37 = vpop.f32.mrf.mxu0 }
 0x578   :  { %v8902_v40 = vadd.f32 %v8901_v37, %v8828_v35 }
 0x579   :  { %v18800_v11 = vpop.f32.mrf.mxu0 }
 0x57a   :  { %v21298_v26 = vadd.f32 %v8973_v4, %v8902_v40  ;;  %v8009_v28 = vpop.xlane.xlu0 %8008 }
 0x57b   :  { %v8035_v48 = vsub.f32 %v21025_v0, %v8009_v28 }
 0x57d   :  { %v8061_v15 = vmul.f32 1.442695, %v8035_v48 }
 0x57e   :  { %v11678_v21 = vpop.permute.xlu0 %11677 }
 0x57f   :  { %19600 = vpow2.f32 %v8061_v15  ;;  %v21301_v33 = vand.u32 4294901760, %v11678_v21 }
 0x580   :  { %v19599_v31 = vpop.eup %19598 }
 0x581   :  { %v12133_v53 = vsel %vm778_vm3, %v19599_v31, 0  ;;  %v21305_v1 = vsub.f32 %v11678_v21, %v21301_v33  ;;  %18987 = vmatpush3.msra.mxu0 %v21301_v33  ;;  %v15308_v39 = vsel %vm778_vm3, %v19599_v31, 0.0 }
 0x582   :  { %v21309_v58 = vand.u32 4294901760, %v12133_v53  ;;  %18989 = vmatmul.mubr.f32.vlgmr.msra.gmra.mxu0 %v11753_v6  ;;  %18996 = vmatprep.subr.mxu0 %v19759_v55 }
 0x583   :  { %15309 = vadd.xlane.f32.xlu1 %v15308_v39  ;;  %18997 = vmatpush3.msra.mxu0 %v21305_v1  ;;  %v21314_v0 = vand.u32 4294901760, %v21305_v1 }
 0x584   :  { %v21317_v45 = vsub.f32 %v12133_v53, %v21309_v58  ;;  %18998 = vmatprep.mubr.msk.f32.mxu0 %vm19760_vm2, %v19759_v55  ;;  %19006 = vmatprep.subr.mxu0 %v19759_v55 }
 0x585   :  { %v11793_v14 = vsub.f32 %v21305_v1, %v21314_v0 }
 0x586   :  { %18999 = vmatmul.mubr.f32.vlgmr.msra.gmra.mxu0 %v11750_v2  ;;  %v12203_v17 = vand.u32 4294901760, %v21317_v45 }
 0x587   :  { %19007 = vmatpush3.msra.mxu0 %v21314_v0  ;;  %v8012_v18 = vpop.xlane.xlu1 %8011  ;;  %v21326_v20 = vand.u32 4294901760, %v11793_v14  ;;  %19008 = vmatprep.mubr.msk.f32.mxu0 %vm19760_vm2, %v19759_v55 }
 0x588   :  { %v8036_v42 = vsub.f32 %v21031_v43, %v8012_v18  ;;  %19016 = vmatprep.subr.mxu0 %v19759_v55  ;;  %v12204_v62 = vsub.f32 %v21317_v45, %v12203_v17 }
 0x589   :  { %18992 = vmatpush3.msra.mxu1 %v21326_v20 }
 0x58a   :  { %v8063_v56 = vmul.f32 1.442695, %v8036_v42  ;;  %18994 = vmatmul.mubr.f32.vlgmr.msra.gmra.mxu1 %v21292_v3  ;;  %19001 = vmatprep.subr.mxu1 %v19759_v55  ;;  %v12205_v27 = vand.u32 4294901760, %v12204_v62 }
 0x58b   :  { %19009 = vmatmul.mubr.f32.vlgmr.msra.gmra.mxu0 %v21292_v3  ;;  %v12130_v44 = vpop.permute.xlu1 %12129  ;;  %19002 = vmatpush3.msra.mxu1 %v21301_v33 }
 0x58c   :  { %v19601_v24 = vpop.eup %19600  ;;  %19602 = vpow2.f32 %v8063_v56  ;;  %v21340_v43 = vand.u32 4294901760, %v12130_v44  ;;  %19003 = vmatprep.mubr.msk.f32.mxu1 %vm19760_vm2, %v19759_v55  ;;  %19011 = vmatprep.subr.mxu1 %v19759_v55 }
 0x58d   :  { %v12582_v25 = vsel %vm778_vm3, %v19601_v24, 0  ;;  %19018 = vmatprep.mubr.msk.f32.mxu0 %vm19760_vm2, %v19759_v55  ;;  %v15311_v19 = vsel %vm778_vm3, %v19601_v24, 0.0 }
 0x58e   :  { %v21349_v34 = vand.u32 4294901760, %v12582_v25  ;;  %v21352_v7 = vsub.f32 %v12130_v44, %v21340_v43  ;;  %19017 = vmatpush3.msra.mxu0 %v21340_v43  ;;  %19004 = vmatmul.mubr.f32.vlgmr.msra.gmra.mxu1 %v11751_v38 }
 0x58f   :  { %19012 = vmatpush3.msra.mxu1 %v21301_v33  ;;  %19019 = vmatmul.mubr.f32.vlgmr.msra.gmra.mxu0 %v12205_v27 }
 0x590   :  { %v21357_v50 = vsub.f32 %v12582_v25, %v21349_v34  ;;  %19026 = vmatprep.subr.mxu0 %v19759_v55  ;;  %15312 = vadd.xlane.f32.xlu0 %v15311_v19  ;;  %v9128_v51 = vpop.f32.mrf.mxu1  ;;  %v21361_v59 = vand.u32 4294901760, %v21352_v7 }
 0x591   :  { %19027 = vmatpush3.msra.mxu0 %v21352_v7  ;;  %19013 = vmatprep.mubr.msk.f32.mxu1 %vm19760_vm2, %v19759_v55 }
 0x592   :  { %v18815_v5 = vpop.f32.mrf.mxu1  ;;  %19028 = vmatprep.mubr.msk.f32.mxu0 %vm19760_vm2, %v19759_v55  ;;  %19036 = vmatprep.subr.mxu0 %v19759_v55  ;;  %v12245_v41 = vsub.f32 %v21352_v7, %v21361_v59  ;;  %v12652_v46 = vand.u32 4294901760, %v21357_v50 }
 0x593   :  { %19014 = vmatmul.mubr.f32.vlgmr.msra.gmra.mxu1 %v21292_v3  ;;  %19029 = vmatmul.mubr.f32.vlgmr.msra.gmra.mxu0 %v21317_v45 }
 0x594   :  { %19037 = vmatpush3.msra.mxu0 %v21361_v59  ;;  %v9276_v29 = vpop.f32.mrf.mxu1  ;;  %19021 = vmatprep.subr.mxu1 %v19759_v55  ;;  %v21376_v61 = vand.u32 4294901760, %v12245_v41  ;;  %v12653_v3 = vsub.f32 %v21357_v50, %v12652_v46 }
 0x595   :  { %19023 = vmatprep.mubr.msk.f32.mxu1 %vm19760_vm2, %v19759_v55  ;;  %19038 = vmatprep.mubr.msk.f32.mxu0 %vm19760_vm2, %v19759_v55 }
 0x596   :  { %v18825_v16 = vpop.f32.mrf.mxu1  ;;  %19022 = vmatpush3.msra.mxu1 %v21376_v61  ;;  %19046 = vmatprep.subr.mxu0 %v19759_v55  ;;  %v12654_v9 = vand.u32 4294901760, %v12653_v3 }
 0x597   :  { %19024 = vmatmul.mubr.f32.vlgmr.msra.gmra.mxu1 %v21309_v58  ;;  %19031 = vmatprep.subr.mxu1 %v19759_v55 }
 0x598   :  { %19039 = vmatmul.mubr.f32.vlgmr.msra.gmra.mxu0 %v21309_v58  ;;  %v9052_v4 = vpop.f32.mrf.mxu0  ;;  %v9422_v36 = vpop.f32.mrf.mxu1  ;;  %19032 = vmatpush3.msra.mxu1 %v21340_v43 }
 0x599   :  { %v19603_v23 = vpop.eup %19602  ;;  %19047 = vmatpush3.msra.mxu0 %v21301_v33  ;;  %v9129_v8 = vadd.f32 %v9128_v51, %v9052_v4  ;;  %19033 = vmatprep.mubr.msk.f32.mxu1 %vm19760_vm2, %v19759_v55 }
 0x59a   :  { %v13031_v60 = vsel %vm778_vm3, %v19603_v23, 0  ;;  %v18810_v12 = vpop.f32.mrf.mxu0  ;;  %v18835_v49 = vpop.f32.mrf.mxu1  ;;  %19041 = vmatprep.subr.mxu1 %v19759_v55  ;;  %19048 = vmatprep.mubr.msk.f32.mxu0 %vm19760_vm2, %v19759_v55  ;;  %v15314_v2 = vsel %vm778_vm3, %v19603_v23, 0.0 }
 0x59b   :  { %v21399_v47 = vand.u32 4294901760, %v13031_v60  ;;  %19056 = vmatprep.subr.mxu0 %v19759_v55  ;;  %19034 = vmatmul.mubr.f32.vlgmr.msra.gmra.mxu1 %v12203_v17 }
 0x59c   :  { %19042 = vmatpush3.msra.mxu1 %v21340_v43  ;;  %19049 = vmatmul.mubr.f32.vlgmr.msra.gmra.mxu0 %v12654_v9  ;;  %v9202_v13 = vpop.f32.mrf.mxu0  ;;  %v9577_v35 = vpop.f32.mrf.mxu1 }
 0x59d   :  { %v21406_v37 = vsub.f32 %v13031_v60, %v21399_v47  ;;  %19057 = vmatpush3.msra.mxu0 %v21305_v1  ;;  %15315 = vadd.xlane.f32.xlu1 %v15314_v2  ;;  %v9203_v40 = vadd.f32 %v9202_v13, %v9129_v8 }
 0x59e   :  { %v18820_v38 = vpop.f32.mrf.mxu0  ;;  %v18845_v11 = vpop.f32.mrf.mxu1  ;;  %19043 = vmatprep.mubr.msk.f32.mxu1 %vm19760_vm2, %v19759_v55  ;;  %19051 = vmatprep.subr.mxu1 %v19759_v55 }
 0x59f   :  { %19058 = vmatprep.mubr.msk.f32.mxu0 %vm19760_vm2, %v19759_v55  ;;  %19066 = vmatprep.subr.mxu0 %v19759_v55  ;;  %v9277_v28 = vadd.f32 %v9276_v29, %v9203_v40  ;;  %v13101_v48 = vand.u32 4294901760, %v21406_v37 }
 0x5a0   :  { %19044 = vmatmul.mubr.f32.vlgmr.msra.gmra.mxu1 %v21309_v58  ;;  %19059 = vmatmul.mubr.f32.vlgmr.msra.gmra.mxu0 %v21357_v50  ;;  %v9350_v32 = vpop.f32.mrf.mxu0  ;;  %v9725_v15 = vpop.f32.mrf.mxu1 }
 0x5a1   :  { %19052 = vmatpush3.msra.mxu1 %v21326_v20  ;;  %19067 = vmatpush3.msra.mxu0 %v21314_v0  ;;  %v9351_v21 = vadd.f32 %v9350_v32, %v9277_v28  ;;  %v13102_v53 = vsub.f32 %v21406_v37, %v13101_v48 }
 0x5a2   :  { %v18830_v31 = vpop.f32.mrf.mxu0  ;;  %v18855_v6 = vpop.f32.mrf.mxu1  ;;  %19053 = vmatprep.mubr.msk.f32.mxu1 %vm19760_vm2, %v19759_v55  ;;  %19061 = vmatprep.subr.mxu1 %v19759_v55 }
 0x5a3   :  { %v21424_v1 = vadd.f32 %v9422_v36, %v9351_v21  ;;  %19068 = vmatprep.mubr.msk.f32.mxu0 %vm19760_vm2, %v19759_v55  ;;  %19076 = vmatprep.subr.mxu0 %v19759_v55  ;;  %v13103_v17 = vand.u32 4294901760, %v13102_v53 }
 0x5a4   :  { %19054 = vmatmul.mubr.f32.vlgmr.msra.gmra.mxu1 %v21349_v34  ;;  %19069 = vmatmul.mubr.f32.vlgmr.msra.gmra.mxu0 %v21349_v34  ;;  %v9501_v39 = vpop.f32.mrf.mxu0  ;;  %v9871_v58 = vpop.f32.mrf.mxu1 }
 0x5a5   :  { %19062 = vmatpush3.msra.mxu1 %v21301_v33  ;;  %19077 = vmatpush3.msra.mxu0 %v21340_v43  ;;  %v9578_v0 = vadd.f32 %v9577_v35, %v9501_v39  ;;  %v15281_v35 = vsel %vm778_vm3, %v20880_v22, 0.0 }
 0x5a6   :  { %v18840_v45 = vpop.f32.mrf.mxu0  ;;  %v18865_v14 = vpop.f32.mrf.mxu1  ;;  %19063 = vmatprep.mubr.msk.f32.mxu1 %vm19760_vm2, %v19759_v55  ;;  %19071 = vmatprep.subr.mxu1 %v19759_v55 }
 0x5a7   :  { %19078 = vmatprep.mubr.msk.f32.mxu0 %vm19760_vm2, %v19759_v55  ;;  %19086 = vmatprep.subr.mxu0 %v19759_v55 }
 0x5a8   :  { %19064 = vmatmul.mubr.f32.vlgmr.msra.gmra.mxu1 %v12652_v46  ;;  %19079 = vmatmul.mubr.f32.vlgmr.msra.gmra.mxu0 %v13103_v17  ;;  %v9651_v18 = vpop.f32.mrf.mxu0 }
 0x5a9   :  { %19072 = vmatpush3.msra.mxu1 %v21301_v33  ;;  %19087 = vmatpush3.msra.mxu0 %v21352_v7  ;;  %v9652_v20 = vadd.f32 %v9651_v18, %v9578_v0  ;;  %v15284_v0 = vsel %vm778_vm3, %v20906_v30, 0.0 }
 0x5aa   :  { %v18850_v42 = vpop.f32.mrf.mxu0  ;;  %19073 = vmatprep.mubr.msk.f32.mxu1 %vm19760_vm2, %v19759_v55  ;;  %19081 = vmatprep.subr.mxu1 %v19759_v55 }
 0x5ab   :  { %19088 = vmatprep.mubr.msk.f32.mxu0 %vm19760_vm2, %v19759_v55  ;;  %19096 = vmatprep.subr.mxu0 %v19759_v55  ;;  %v9726_v62 = vadd.f32 %v9725_v15, %v9652_v20 }
 0x5ac   :  { %19074 = vmatmul.mubr.f32.vlgmr.msra.gmra.mxu1 %v21349_v34  ;;  %19089 = vmatmul.mubr.f32.vlgmr.msra.gmra.mxu0 %v21406_v37  ;;  %v9799_v33 = vpop.f32.mrf.mxu0 }
 0x5ad   :  { %19082 = vmatpush3.msra.mxu1 %v21376_v61  ;;  %19097 = vmatpush3.msra.mxu0 %v21361_v59  ;;  %v9800_v56 = vadd.f32 %v9799_v33, %v9726_v62 }
 0x5ae   :  { %v18860_v44 = vpop.f32.mrf.mxu0  ;;  %19083 = vmatprep.mubr.msk.f32.mxu1 %vm19760_vm2, %v19759_v55  ;;  %19091 = vmatprep.subr.mxu1 %v19759_v55 }
 0x5af   :  { %v21456_v24 = vadd.f32 %v9871_v58, %v9800_v56  ;;  %19098 = vmatprep.mubr.msk.f32.mxu0 %vm19760_vm2, %v19759_v55  ;;  %19106 = vmatprep.subr.mxu0 %v19759_v55 }
 0x5b0   :  { %19084 = vmatmul.mubr.f32.vlgmr.msra.gmra.mxu1 %v21399_v47  ;;  %19099 = vmatmul.mubr.f32.vlgmr.msra.gmra.mxu0 %v21399_v47 }
 0x5b1   :  { %19092 = vmatpush3.msra.mxu1 %v21340_v43  ;;  %19093 = vmatprep.mubr.msk.f32.mxu1 %vm19760_vm2, %v19759_v55  ;;  %v8015_v25 = vpop.xlane.xlu0 %8014 }
 0x5b2   :  { %19101 = vmatprep.subr.mxu1 %v19759_v55  ;;  %19108 = vmatprep.mubr.msk.f32.mxu0 %vm19760_vm2, %v19759_v55  ;;  %v8037_v27 = vsub.f32 %v21123_v63, %v8015_v25 }
 0x5b4   :  { %19094 = vmatmul.mubr.f32.vlgmr.msra.gmra.mxu1 %v13101_v48  ;;  %v8065_v19 = vmul.f32 1.442695, %v8037_v27 }
 0x5b5   :  { %19102 = vmatpush3.msra.mxu1 %v21340_v43  ;;  %19103 = vmatprep.mubr.msk.f32.mxu1 %vm19760_vm2, %v19759_v55 }
 0x5b6   :  { %v8021_v34 = vpop.xlane.xlu0 %8020  ;;  %19111 = vmatprep.subr.mxu1 %v19759_v55  ;;  %19604 = vpow2.f32 %v8065_v19 }
 0x5b7   :  { %v8039_v7 = vsub.f32 %v21153_v57, %v8021_v34 }
 0x5b8   :  { %19104 = vmatmul.mubr.f32.vlgmr.msra.gmra.mxu1 %v21399_v47 }
 0x5b9   :  { %v8069_v50 = vmul.f32 1.442695, %v8039_v7  ;;  %19113 = vmatprep.mubr.msk.f32.mxu1 %vm19760_vm2, %v19759_v55 }
 0x5ba   :  { %v13480_v63 = vpop.permute.xlu0 %13479 }
 0x5bb   :  { %19606 = vpow2.f32 %v8069_v50  ;;  %v21478_v51 = vand.u32 4294901760, %v13480_v63 }
 0x5bd   :  { %v21481_v43 = vsub.f32 %v13480_v63, %v21478_v51  ;;  %19107 = vmatpush3.msra.mxu0 %v21478_v51 }
 0x5be   :  { %19116 = vmatprep.subr.mxu0 %v19759_v55 }
 0x5bf   :  { %v21486_v59 = vand.u32 4294901760, %v21481_v43  ;;  %v8018_v57 = vpop.xlane.xlu1 %8017 }
 0x5c0   :  { %v8038_v5 = vsub.f32 %v21194_v10, %v8018_v57 }
 0x5c1   :  { %v13595_v41 = vsub.f32 %v21481_v43, %v21486_v59 }
 0x5c2   :  { %v8067_v46 = vmul.f32 1.442695, %v8038_v5 }
 0x5c3   :  { %v21491_v29 = vand.u32 4294901760, %v13595_v41  ;;  %v19605_v61 = vpop.eup %19604  ;;  %v8024_v16 = vpop.xlane.xlu1 %8023 }
 0x5c4   :  { %19608 = vpow2.f32 %v8067_v46  ;;  %v8040_v3 = vsub.f32 %v21214_v54, %v8024_v16  ;;  %v15317_v4 = vsel %vm778_vm3, %v19605_v61, 0.0  ;;  %v13483_v36 = vsel %vm778_vm3, %v19605_v61, 0 }
 0x5c5   :  { %19112 = vmatpush3.msra.mxu1 %v21491_v29  ;;  %15318 = vadd.xlane.f32.xlu0 %v15317_v4  ;;  %v13551_v10 = vand.u32 4294901760, %v13483_v36 }
 0x5c6   :  { %19121 = vmatprep.subr.mxu1 %v19759_v55  ;;  %v8071_v23 = vmul.f32 1.442695, %v8040_v3 }
 0x5c7   :  { %v13932_v60 = vpop.permute.xlu1 %13931  ;;  %v13552_v12 = vsub.f32 %v13483_v36, %v13551_v10  ;;  %19114 = vmatmul.mubr.f32.vlgmr.msra.gmra.mxu1 %v13551_v10 }
 0x5c8   :  { %v19607_v8 = vpop.eup %19606  ;;  %19610 = vpow2.f32 %v8071_v23  ;;  %v21498_v49 = vand.u32 4294901760, %v13932_v60  ;;  %19122 = vmatpush3.msra.mxu1 %v21478_v51  ;;  %19123 = vmatprep.mubr.msk.f32.mxu1 %vm19760_vm2, %v19759_v55 }
 0x5c9   :  { %v15323_v54 = vsel %vm778_vm3, %v19607_v8, 0.0  ;;  %19131 = vmatprep.subr.mxu1 %v19759_v55  ;;  %v13553_v9 = vand.u32 4294901760, %v13552_v12  ;;  %v14384_v32 = vsel %vm778_vm3, %v19607_v8, 0 }
 0x5ca   :  { %15324 = vadd.xlane.f32.xlu0 %v15323_v54  ;;  %v21506_v2 = vsub.f32 %v13932_v60, %v21498_v49  ;;  %v21540_v53 = vand.u32 4294901760, %v14384_v32 }
 0x5cb   :  { %19124 = vmatmul.mubr.f32.vlgmr.msra.gmra.mxu1 %v13553_v9  ;;  %v13554_v47 = vsub.f32 %v13552_v12, %v13553_v9 }
 0x5cc   :  { %v21509_v13 = vand.u32 4294901760, %v21506_v2  ;;  %19132 = vmatpush3.msra.mxu1 %v21478_v51  ;;  %19133 = vmatprep.mubr.msk.f32.mxu1 %vm19760_vm2, %v19759_v55  ;;  %v14453_v17 = vsub.f32 %v14384_v32, %v21540_v53 }
 0x5cd   :  { %v13555_v37 = vand.u32 4294901760, %v13554_v47  ;;  %19141 = vmatprep.subr.mxu1 %v19759_v55 }
 0x5ce   :  { %15282 = vadd.xlane.f32.xlu0 %v15281_v35  ;;  %v14047_v40 = vsub.f32 %v21506_v2, %v21509_v13  ;;  %v14454_v20 = vand.u32 4294901760, %v14453_v17 }
 0x5cf   :  { %19109 = vmatmul.mubr.f32.vlgmr.msra.gmra.mxu0 %v13555_v37  ;;  %19134 = vmatmul.mubr.f32.vlgmr.msra.gmra.mxu1 %v13551_v10 }
 0x5d0   :  { %19117 = vmatpush3.msra.mxu0 %v21481_v43  ;;  %v21520_v11 = vand.u32 4294901760, %v14047_v40  ;;  %19118 = vmatprep.mubr.msk.f32.mxu0 %vm19760_vm2, %v19759_v55  ;;  %v14455_v44 = vsub.f32 %v14453_v17, %v14454_v20 }
 0x5d1   :  { %v19609_v38 = vpop.eup %19608  ;;  %19126 = vmatprep.subr.mxu0 %v19759_v55  ;;  %19143 = vmatprep.mubr.msk.f32.mxu1 %vm19760_vm2, %v19759_v55 }
 0x5d2   :  { %v15320_v22 = vsel %vm778_vm3, %v19609_v38, 0.0  ;;  %v13935_v28 = vsel %vm778_vm3, %v19609_v38, 0  ;;  %19142 = vmatpush3.msra.mxu1 %v21520_v11  ;;  %v14456_v50 = vand.u32 4294901760, %v14455_v44 }
 0x5d3   :  { %15321 = vadd.xlane.f32.xlu1 %v15320_v22  ;;  %v14003_v48 = vand.u32 4294901760, %v13935_v28  ;;  %19151 = vmatprep.subr.mxu1 %v19759_v55 }
 0x5d4   :  { %19119 = vmatmul.mubr.f32.vlgmr.msra.gmra.mxu0 %v13552_v12 }
 0x5d5   :  { %19127 = vmatpush3.msra.mxu0 %v21486_v59  ;;  %v14004_v15 = vsub.f32 %v13935_v28, %v14003_v48  ;;  %19144 = vmatmul.mubr.f32.vlgmr.msra.gmra.mxu1 %v14003_v48  ;;  %v19611_v21 = vpop.eup %19610 }
 0x5d6   :  { %19152 = vmatpush3.msra.mxu1 %v21498_v49  ;;  %19128 = vmatprep.mubr.msk.f32.mxu0 %vm19760_vm2, %v19759_v55  ;;  %v15326_v31 = vsel %vm778_vm3, %v19611_v21, 0.0  ;;  %v14833_v42 = vsel %vm778_vm3, %v19611_v21, 0 }
 0x5d7   :  { %19136 = vmatprep.subr.mxu0 %v19759_v55  ;;  %19153 = vmatprep.mubr.msk.f32.mxu1 %vm19760_vm2, %v19759_v55  ;;  %v14005_v6 = vand.u32 4294901760, %v14004_v15  ;;  %v21576_v25 = vand.u32 4294901760, %v14833_v42 }
 0x5d8   :  { %15327 = vadd.xlane.f32.xlu1 %v15326_v31  ;;  %19161 = vmatprep.subr.mxu1 %v19759_v55  ;;  %v21543_v39 = vpop.f32.mrf.mxu0 }
 0x5d9   :  { %19129 = vmatmul.mubr.f32.vlgmr.msra.gmra.mxu0 %v13551_v10  ;;  %19154 = vmatmul.mubr.f32.vlgmr.msra.gmra.mxu1 %v14005_v6  ;;  %v14006_v58 = vsub.f32 %v14004_v15, %v14005_v6  ;;  %v14902_v63 = vsub.f32 %v14833_v42, %v21576_v25 }
 0x5da   :  { %19137 = vmatpush3.msra.mxu0 %v21498_v49  ;;  %19162 = vmatpush3.msra.mxu1 %v21498_v49  ;;  %v18870_v45 = vpop.f32.mrf.mxu0 }
 0x5db   :  { %19138 = vmatprep.mubr.msk.f32.mxu0 %vm19760_vm2, %v19759_v55  ;;  %19146 = vmatprep.subr.mxu0 %v19759_v55  ;;  %v14007_v14 = vand.u32 4294901760, %v14006_v58  ;;  %v14903_v46 = vand.u32 4294901760, %v14902_v63 }
 0x5dc   :  { %15285 = vadd.xlane.f32.xlu1 %v15284_v0  ;;  %19163 = vmatprep.mubr.msk.f32.mxu1 %vm19760_vm2, %v19759_v55  ;;  %v21556_v18 = vpop.f32.mrf.mxu0 }
 0x5dd   :  { %19171 = vmatprep.subr.mxu1 %v19759_v55  ;;  %19139 = vmatmul.mubr.f32.vlgmr.msra.gmra.mxu0 %v14007_v14  ;;  %v14904_v3 = vsub.f32 %v14902_v63, %v14903_v46 }
 0x5de   :  { %19147 = vmatpush3.msra.mxu0 %v21506_v2  ;;  %19164 = vmatmul.mubr.f32.vlgmr.msra.gmra.mxu1 %v14003_v48  ;;  %v18880_v30 = vpop.f32.mrf.mxu0 }
 0x5df   :  { %19172 = vmatpush3.msra.mxu1 %v21491_v29  ;;  %19148 = vmatprep.mubr.msk.f32.mxu0 %vm19760_vm2, %v19759_v55  ;;  %v14905_v8 = vand.u32 4294901760, %v14904_v3 }
 0x5e0   :  { %19156 = vmatprep.subr.mxu0 %v19759_v55  ;;  %19173 = vmatprep.mubr.msk.f32.mxu1 %vm19760_vm2, %v19759_v55  ;;  %v21567_v62 = vpop.f32.mrf.mxu1 }
 0x5e1   :  { %19181 = vmatprep.subr.mxu1 %v19759_v55  ;;  %19149 = vmatmul.mubr.f32.vlgmr.msra.gmra.mxu0 %v14004_v15  ;;  %v21571_v33 = vpop.f32.mrf.mxu0  ;;  %v10030_v38 = vadd.f32 %v21567_v62, %v21543_v39 }
 0x5e2   :  { %19157 = vmatpush3.msra.mxu0 %v21509_v13  ;;  %19174 = vmatmul.mubr.f32.vlgmr.msra.gmra.mxu1 %v21540_v53  ;;  %v18875_v56 = vpop.f32.mrf.mxu1 }
 0x5e3   :  { %19182 = vmatpush3.msra.mxu1 %v21478_v51  ;;  %19158 = vmatprep.mubr.msk.f32.mxu0 %vm19760_vm2, %v19759_v55  ;;  %v18890_v27 = vpop.f32.mrf.mxu0  ;;  %v10104_v15 = vadd.f32 %v21556_v18, %v10030_v38 }
 0x5e4   :  { %19166 = vmatprep.subr.mxu0 %v19759_v55  ;;  %19183 = vmatprep.mubr.msk.f32.mxu1 %vm19760_vm2, %v19759_v55  ;;  %v21582_v19 = vpop.f32.mrf.mxu1 }
 0x5e5   :  { %19191 = vmatprep.subr.mxu1 %v19759_v55  ;;  %19159 = vmatmul.mubr.f32.vlgmr.msra.gmra.mxu0 %v14003_v48  ;;  %v10178_v45 = vadd.f32 %v21582_v19, %v10104_v15 }
 0x5e6   :  { %19167 = vmatpush3.msra.mxu0 %v21478_v51  ;;  %19184 = vmatmul.mubr.f32.vlgmr.msra.gmra.mxu1 %v14454_v20  ;;  %v21585_v34 = vpop.f32.mrf.mxu0  ;;  %v18885_v7 = vpop.f32.mrf.mxu1 }
 0x5e7   :  { %19192 = vmatpush3.msra.mxu1 %v21478_v51  ;;  %19168 = vmatprep.mubr.msk.f32.mxu0 %vm19760_vm2, %v19759_v55  ;;  %v10252_v44 = vadd.f32 %v21571_v33, %v10178_v45 }
 0x5e8   :  { %19176 = vmatprep.subr.mxu0 %v19759_v55  ;;  %19193 = vmatprep.mubr.msk.f32.mxu1 %vm19760_vm2, %v19759_v55  ;;  %v18900_v57 = vpop.f32.mrf.mxu0 }
 0x5e9   :  { %19201 = vmatprep.subr.mxu1 %v19759_v55  ;;  %19169 = vmatmul.mubr.f32.vlgmr.msra.gmra.mxu0 %v14456_v50  ;;  %v21595_v5 = vpop.f32.mrf.mxu1 }
 0x5ea   :  { %19177 = vmatpush3.msra.mxu0 %v21481_v43  ;;  %19194 = vmatmul.mubr.f32.vlgmr.msra.gmra.mxu1 %v21540_v53  ;;  %v21599_v51 = vpop.f32.mrf.mxu0 }
 0x5eb   :  { %19202 = vmatpush3.msra.mxu1 %v21520_v11  ;;  %19178 = vmatprep.mubr.msk.f32.mxu0 %vm19760_vm2, %v19759_v55  ;;  %v18895_v41 = vpop.f32.mrf.mxu1 }
 0x5ec   :  { %19186 = vmatprep.subr.mxu0 %v19759_v55  ;;  %19203 = vmatprep.mubr.msk.f32.mxu1 %vm19760_vm2, %v19759_v55  ;;  %v18910_v29 = vpop.f32.mrf.mxu0 }
 0x5ed   :  { %v15289_v61 = vpop.xlane.xlu0 %15288  ;;  %19211 = vmatprep.subr.mxu1 %v19759_v55  ;;  %19179 = vmatmul.mubr.f32.vlgmr.msra.gmra.mxu0 %v14453_v17  ;;  %v10481_v43 = vpop.f32.mrf.mxu1 }
 0x5ee   :  { %19612 = vrcp.f32 %v15289_v61  ;;  %19187 = vmatpush3.msra.mxu0 %v21486_v59  ;;  %19204 = vmatmul.mubr.f32.vlgmr.msra.gmra.mxu1 %v21576_v25  ;;  %v21611_v16 = vpop.f32.mrf.mxu0  ;;  %v10482_v21 = vadd.f32 %v10481_v43, %v21585_v34 }
 0x5ef   :  { %19212 = vmatpush3.msra.mxu1 %v21498_v49  ;;  %19188 = vmatprep.mubr.msk.f32.mxu0 %vm19760_vm2, %v19759_v55  ;;  %v18905_v4 = vpop.f32.mrf.mxu1 }
 0x5f0   :  { %19196 = vmatprep.subr.mxu0 %v19759_v55  ;;  %19213 = vmatprep.mubr.msk.f32.mxu1 %vm19760_vm2, %v19759_v55  ;;  %v18920_v59 = vpop.f32.mrf.mxu0  ;;  %v10556_v14 = vadd.f32 %v21599_v51, %v10482_v21 }
 0x5f1   :  { %v15295_v36 = vpop.xlane.xlu0 %15294  ;;  %19221 = vmatprep.subr.mxu1 %v19759_v55  ;;  %19189 = vmatmul.mubr.f32.vlgmr.msra.gmra.mxu0 %v21540_v53 }
 0x5f2   :  { %19197 = vmatpush3.msra.mxu0 %v21498_v49  ;;  %19214 = vmatmul.mubr.f32.vlgmr.msra.gmra.mxu1 %v14903_v46  ;;  %v10629_v10 = vpop.f32.mrf.mxu1  ;;  %v10854_v23 = vpop.f32.mrf.mxu0  ;;  %v10324_v46 = vadd.f32 %v21595_v5, %v10252_v44 }
 0x5f3   :  { %19222 = vmatpush3.msra.mxu1 %v21498_v49  ;;  %19198 = vmatprep.mubr.msk.f32.mxu0 %vm19760_vm2, %v19759_v55 }
 0x5f4   :  { %19206 = vmatprep.subr.mxu0 %v19759_v55  ;;  %19223 = vmatprep.mubr.msk.f32.mxu1 %vm19760_vm2, %v19759_v55  ;;  %v18915_v60 = vpop.f32.mrf.mxu1  ;;  %v18930_v54 = vpop.f32.mrf.mxu0 }
 0x5f5   :  { %v15298_v12 = vpop.xlane.xlu0 %15297  ;;  %19199 = vmatmul.mubr.f32.vlgmr.msra.gmra.mxu0 %v14905_v8 }
 0x5f6   :  { %19207 = vmatpush3.msra.mxu0 %v21506_v2  ;;  %19224 = vmatmul.mubr.f32.vlgmr.msra.gmra.mxu1 %v21576_v25  ;;  %v21629_v9 = vpop.f32.mrf.mxu1 }
 0x5f7   :  { %v11004_v49 = vpop.f32.mrf.mxu0  ;;  %19208 = vmatprep.mubr.msk.f32.mxu0 %vm19760_vm2, %v19759_v55  ;;  %19216 = vmatprep.subr.mxu0 %v19759_v55 }
 0x5f8   :  { %v15292_v35 = vpop.xlane.xlu1 %15291  ;;  %v18925_v37 = vpop.f32.mrf.mxu1 }
 0x5f9   :  { %v15301_v47 = vpop.xlane.xlu0 %15300  ;;  %19209 = vmatmul.mubr.f32.vlgmr.msra.gmra.mxu0 %v14902_v63  ;;  %v18940_v40 = vpop.f32.mrf.mxu0 }
 0x5fa   :  { %19614 = vrcp.f32 %v15301_v47  ;;  %19217 = vmatpush3.msra.mxu0 %v21509_v13  ;;  %19218 = vmatprep.mubr.msk.f32.mxu0 %vm19760_vm2, %v19759_v55 }
 0x5fb   :  { %v19613_v2 = vpop.eup %19612  ;;  %19616 = vrcp.f32 %v15292_v35  ;;  %v10930_v11 = vpop.f32.mrf.mxu1 }
 0x5fc   :  { %v11152_v22 = vpop.f32.mrf.mxu0  ;;  %v15334_v28 = vmul.f32 %v19613_v2, %v21424_v1  ;;  %19618 = vrcp.f32 %v15295_v36  ;;  %v10931_v48 = vadd.f32 %v10930_v11, %v10854_v23  ;;  %v15304_v39 = vpop.xlane.xlu1 %15303 }
 0x5fd   :  { %19219 = vmatmul.mubr.f32.vlgmr.msra.gmra.mxu0 %v21576_v25  ;;  %v18935_v32 = vpop.f32.mrf.mxu1  ;;  %19620 = vrcp.f32 %v15298_v12  ;;  %v10630_v25 = vadd.f32 %v10629_v10, %v10556_v14 }
 0x5fe   :  { %15363 = vrot.lane.b32.xlu0 %v15334_v28, %s19754_s30  ;;  %v18950_v13 = vpop.f32.mrf.mxu0  ;;  %v11005_v31 = vadd.f32 %v11004_v49, %v10931_v48  ;;  %19622 = vrcp.f32 %v15304_v39  ;;  %v15307_v49 = vpop.xlane.xlu0 %15306 }
 0x5ff   :  { %v11078_v6 = vpop.f32.mrf.mxu1  ;;  %v10704_v29 = vadd.f32 %v21611_v16, %v10630_v25  ;;  %19624 = vrcp.f32 %v15307_v49 }
 0x600   :  { %v11303_v53 = vpop.f32.mrf.mxu0  ;;  %v11079_v58 = vadd.f32 %v11078_v6, %v11005_v31 }
 0x601   :  { %v18945_v0 = vpop.f32.mrf.mxu1  ;;  %v10776_v59 = vadd.f32 %v21629_v9, %v10704_v29 }
 0x602   :  { %v18960_v1 = vpop.f32.mrf.mxu0  ;;  %v11153_v17 = vadd.f32 %v11152_v22, %v11079_v58 }
 0x603   :  { %v11224_v30 = vpop.f32.mrf.mxu1 }
 0x604   :  { %v11453_v20 = vpop.f32.mrf.mxu0  ;;  %v11225_v42 = vadd.f32 %v11224_v30, %v11153_v17 }
 0x605   :  { %v18955_v18 = vpop.f32.mrf.mxu1 }
 0x606   :  { %v18970_v62 = vpop.f32.mrf.mxu0 }
 0x607   :  { %v19615_v56 = vpop.eup %19614  ;;  %v11379_v7 = vpop.f32.mrf.mxu1 }
 0x608   :  { %v19617_v27 = vpop.eup %19616  ;;  %v15342_v34 = vmul.f32 %v19615_v56, %v11225_v42  ;;  %v11601_v50 = vpop.f32.mrf.mxu0  ;;  %v11380_v63 = vadd.f32 %v11379_v7, %v11303_v53 }
 0x609   :  { %v15336_v19 = vmul.f32 %v19617_v27, %v21456_v24  ;;  %v19619_v57 = vpop.eup %19618  ;;  %v18965_v51 = vpop.f32.mrf.mxu1 }
 0x60a   :  { %15379 = vrot.lane.b32.xlu0 %v15342_v34, %s19770_s6  ;;  %v18980_v41 = vpop.f32.mrf.mxu0  ;;  %v11454_v33 = vadd.f32 %v11453_v20, %v11380_v63  ;;  %v15338_v3 = vmul.f32 %v19619_v57, %v10324_v46  ;;  %v19621_v4 = vpop.eup %19620 }
 0x60b   :  { %15365 = vrot.lane.b32.xlu1 %v15336_v19, %s19754_s30  ;;  %v11527_v61 = vpop.f32.mrf.mxu1  ;;  %v15340_v23 = vmul.f32 %v19621_v4, %v10776_v59  ;;  %v19623_v60 = vpop.eup %19622 }
 0x60c   :  { %v11528_v43 = vadd.f32 %v11527_v61, %v11454_v33  ;;  %v15310_v21 = vpop.xlane.xlu1 %15309  ;;  %v19625_v39 = vpop.eup %19624 }
 0x60d   :  { %v18975_v36 = vpop.f32.mrf.mxu1  ;;  %19626 = vrcp.f32 %v15310_v21 }
 0x60e   :  { %v11602_v24 = vadd.f32 %v11601_v50, %v11528_v43 }
 0x60f   :  { %15371 = vrot.lane.b32.xlu1 %v15338_v3, %s19771_s22  ;;  %v11673_v10 = vpop.f32.mrf.mxu1 }
 0x610   :  { %v11674_v8 = vadd.f32 %v11673_v10, %v11602_v24 }
 0x611   :  { %v18985_v5 = vpop.f32.mrf.mxu1 }
 0x612   :  { %v15344_v12 = vmul.f32 %v19623_v60, %v11674_v8 }
 0x613   :  { %15373 = vrot.lane.b32.xlu1 %v15340_v23, %s19771_s22 }
 0x617   :  { %15381 = vrot.lane.b32.xlu1 %v15344_v12, %s19770_s6 }
 0x619   :  { %v15313_v25 = vpop.xlane.xlu0 %15312 }
 0x61a   :  { %19628 = vrcp.f32 %v15313_v25  ;;  %v19627_v19 = vpop.eup %19626 }
 0x626   :  { %v15316_v59 = vpop.xlane.xlu1 %15315 }
 0x627   :  { %19630 = vrcp.f32 %v15316_v59 }
 0x642   :  { %v11755_v16 = vpop.f32.mrf.mxu0 }
 0x644   :  { %v18990_v54 = vpop.f32.mrf.mxu0 }
 0x646   :  { %v11905_v47 = vpop.f32.mrf.mxu0 }
 0x648   :  { %v19000_v35 = vpop.f32.mrf.mxu0 }
 0x64a   :  { %v11831_v37 = vpop.f32.mrf.mxu1 }
 0x64b   :  { %v11832_v40 = vadd.f32 %v11831_v37, %v11755_v16  ;;  %v12053_v9 = vpop.f32.mrf.mxu0  ;;  %v19629_v16 = vpop.eup %19628 }
 0x64c   :  { %v18995_v2 = vpop.f32.mrf.mxu1 }
 0x64d   :  { %v19010_v38 = vpop.f32.mrf.mxu0  ;;  %v11906_v11 = vadd.f32 %v11905_v47, %v11832_v40 }
 0x64e   :  { %v11979_v22 = vpop.f32.mrf.mxu1 }
 0x64f   :  { %v11980_v28 = vadd.f32 %v11979_v22, %v11906_v11  ;;  %v12207_v48 = vpop.f32.mrf.mxu0 }
 0x650   :  { %v19005_v32 = vpop.f32.mrf.mxu1 }
 0x651   :  { %v19020_v13 = vpop.f32.mrf.mxu0  ;;  %v12054_v15 = vadd.f32 %v12053_v9, %v11980_v28 }
 0x653   :  { %v12125_v31 = vpop.f32.mrf.mxu1  ;;  %v12357_v53 = vpop.f32.mrf.mxu0 }
 0x654   :  { %v12126_v6 = vadd.f32 %v12125_v31, %v12054_v15  ;;  %v19631_v15 = vpop.eup %19630 }
 0x655   :  { %v19015_v58 = vpop.f32.mrf.mxu1  ;;  %v19030_v1 = vpop.f32.mrf.mxu0 }
 0x656   :  { %v15346_v0 = vmul.f32 %v19625_v39, %v12126_v6  ;;  %v15319_v58 = vpop.xlane.xlu0 %15318 }
 0x657   :  { %v12283_v45 = vpop.f32.mrf.mxu1  ;;  %19632 = vrcp.f32 %v15319_v58 }
 0x658   :  { %v12284_v14 = vadd.f32 %v12283_v45, %v12207_v48  ;;  %v12505_v17 = vpop.f32.mrf.mxu0  ;;  %15387 = vrot.lane.b32.xlu0 %v15346_v0, %s19756_s1 }
 0x659   :  { %v19025_v30 = vpop.f32.mrf.mxu1 }
 0x65a   :  { %v19040_v20 = vpop.f32.mrf.mxu0  ;;  %v12358_v42 = vadd.f32 %v12357_v53, %v12284_v14 }
 0x65b   :  { %v12431_v18 = vpop.f32.mrf.mxu1 }
 0x65c   :  { %v12432_v62 = vadd.f32 %v12431_v18, %v12358_v42  ;;  %v12656_v56 = vpop.f32.mrf.mxu0  ;;  %v15322_v25 = vpop.xlane.xlu1 %15321 }
 0x65d   :  { %v19035_v44 = vpop.f32.mrf.mxu1  ;;  %19634 = vrcp.f32 %v15322_v25  ;;  %v15437_v25 = vld [vmem:[#allocation5 + $0x8] sm:$0xff] }
 0x65e   :  { %v19050_v27 = vpop.f32.mrf.mxu0  ;;  %v12506_v34 = vadd.f32 %v12505_v17, %v12432_v62 }
 0x660   :  { %v12577_v7 = vpop.f32.mrf.mxu1  ;;  %v12806_v50 = vpop.f32.mrf.mxu0 }
 0x661   :  { %v12578_v63 = vadd.f32 %v12577_v7, %v12506_v34 }
 0x662   :  { %v19045_v57 = vpop.f32.mrf.mxu1  ;;  %v19060_v51 = vpop.f32.mrf.mxu0 }
 0x663   :  { %v15348_v41 = vmul.f32 %v19627_v19, %v12578_v63 }
 0x664   :  { %v12732_v46 = vpop.f32.mrf.mxu1  ;;  %v12954_v29 = vpop.f32.mrf.mxu0 }
 0x665   :  { %v12733_v33 = vadd.f32 %v12732_v46, %v12656_v56  ;;  %15389 = vrot.lane.b32.xlu1 %v15348_v41, %s19756_s1  ;;  %v19633_v57 = vpop.eup %19632 }
 0x666   :  { %v19055_v61 = vpop.f32.mrf.mxu1  ;;  %v19070_v43 = vpop.f32.mrf.mxu0 }
 0x667   :  { %v12807_v3 = vadd.f32 %v12806_v50, %v12733_v33  ;;  %v15443_v33 = vld [vmem:[#allocation5 + $0x38] sm:$0xff] }
 0x668   :  { %v12880_v4 = vpop.f32.mrf.mxu1  ;;  %v13105_v36 = vpop.f32.mrf.mxu0 }
 0x669   :  { %v12881_v24 = vadd.f32 %v12880_v4, %v12807_v3  ;;  %v21657_v3 = vand.u32 4294901760, %v15443_v33 }
 0x66a   :  { %v19065_v10 = vpop.f32.mrf.mxu1  ;;  %v19080_v23 = vpop.f32.mrf.mxu0 }
 0x66b   :  { %v12955_v8 = vadd.f32 %v12954_v29, %v12881_v24  ;;  %v21660_v24 = vsub.f32 %v15443_v33, %v21657_v3  ;;  %19226 = vmatprep.subr.mxu0 %v21657_v3  ;;  %v15442_v23 = vld [vmem:[#allocation5 + $0x30] sm:$0xff] }
 0x66c   :  { %v13026_v60 = vpop.f32.mrf.mxu1  ;;  %v13255_v5 = vpop.f32.mrf.mxu0  ;;  %19227 = vmatpush3.msra.mxu0 %v21657_v3 }
 0x66d   :  { %v13027_v12 = vadd.f32 %v13026_v60, %v12955_v8  ;;  %v15325_v8 = vpop.xlane.xlu0 %15324 }
 0x66e   :  { %v19075_v54 = vpop.f32.mrf.mxu1  ;;  %v19090_v49 = vpop.f32.mrf.mxu0  ;;  %19636 = vrcp.f32 %v15325_v8 }
 0x66f   :  { %v15350_v47 = vmul.f32 %v19629_v16, %v13027_v12  ;;  %v21665_v12 = vand.u32 4294901760, %v21660_v24  ;;  %v21667_v16 = vand.u32 4294901760, %v15442_v23  ;;  %v15441_v49 = vld [vmem:[#allocation5 + $0x28] sm:$0xff] }
 0x670   :  { %v13181_v35 = vpop.f32.mrf.mxu1  ;;  %v13403_v40 = vpop.f32.mrf.mxu0 }
 0x671   :  { %v13182_v37 = vadd.f32 %v13181_v35, %v13105_v36  ;;  %15395 = vrot.lane.b32.xlu0 %v15350_v47, %s19768_s5  ;;  %19228 = vmatprep.subr.mxu0 %v21667_v16 }
 0x672   :  { %v19085_v9 = vpop.f32.mrf.mxu1  ;;  %v19100_v2 = vpop.f32.mrf.mxu0  ;;  %19229 = vmatpush3.msra.mxu0 %v21667_v16 }
 0x673   :  { %v13256_v38 = vadd.f32 %v13255_v5, %v13182_v37  ;;  %v15563_v37 = vsub.f32 %v21660_v24, %v21665_v12  ;;  %v21674_v9 = vand.u32 4294901760, %v15441_v49 }
 0x674   :  { %v13329_v11 = vpop.f32.mrf.mxu1 }
 0x675   :  { %v13330_v22 = vadd.f32 %v13329_v11, %v13256_v38  ;;  %v15440_v38 = vld [vmem:[#allocation5 + $0x20] sm:$0xff]  ;;  %19230 = vmatprep.subr.mxu0 %v21674_v9 }
 0x676   :  { %v19095_v28 = vpop.f32.mrf.mxu1  ;;  %19231 = vmatpush3.msra.mxu0 %v21674_v9 }
 0x677   :  { %v13404_v48 = vadd.f32 %v13403_v40, %v13330_v22  ;;  %v21672_v40 = vsub.f32 %v15442_v23, %v21667_v16  ;;  %v15564_v28 = vand.u32 4294901760, %v15563_v37 }
 0x678   :  { %v13475_v32 = vpop.f32.mrf.mxu1 }
 0x679   :  { %v13476_v13 = vadd.f32 %v13475_v32, %v13404_v48  ;;  %v21679_v48 = vand.u32 4294901760, %v21672_v40  ;;  %v21682_v32 = vsub.f32 %v15441_v49, %v21674_v9  ;;  %19245 = vmatprep.subr.mxu1 %v15564_v28 }
 0x67a   :  { %v19105_v21 = vpop.f32.mrf.mxu1  ;;  %19246 = vmatpush3.msra.mxu1 %v15564_v28 }
 0x67b   :  { %v15352_v31 = vmul.f32 %v19631_v15, %v13476_v13  ;;  %v19635_v13 = vpop.eup %19634  ;;  %v21685_v21 = vand.u32 4294901760, %v15440_v38  ;;  %v21691_v58 = vand.u32 4294901760, %v21682_v32 }
 0x67d   :  { %15397 = vrot.lane.b32.xlu1 %v15352_v31, %s19768_s5  ;;  %v15439_v31 = vld [vmem:[#allocation5 + $0x18] sm:$0xff]  ;;  %19232 = vmatprep.subr.mxu0 %v21685_v21 }
 0x67e   :  { %19233 = vmatpush3.msra.mxu0 %v21685_v21 }
 0x687   :  { %v13633_v6 = vpop.f32.mrf.mxu1 }
 0x689   :  { %v19115_v53 = vpop.f32.mrf.mxu1 }
 0x68b   :  { %v13781_v39 = vpop.f32.mrf.mxu1 }
 0x68d   :  { %v19125_v0 = vpop.f32.mrf.mxu1 }
 0x68f   :  { %v13557_v1 = vpop.f32.mrf.mxu0  ;;  %v13927_v45 = vpop.f32.mrf.mxu1 }
 0x690   :  { %v13634_v30 = vadd.f32 %v13633_v6, %v13557_v1  ;;  %v21694_v1 = vsub.f32 %v15440_v38, %v21685_v21 }
 0x691   :  { %v19110_v14 = vpop.f32.mrf.mxu0  ;;  %v19135_v17 = vpop.f32.mrf.mxu1 }
 0x692   :  { %v15438_v14 = vld [vmem:[#allocation5 + $0x10] sm:$0xff] }
 0x694   :  { %v13707_v20 = vpop.f32.mrf.mxu0 }
 0x695   :  { %v13708_v42 = vadd.f32 %v13707_v20, %v13634_v30  ;;  %v14085_v18 = vpop.f32.mrf.mxu1 }
 0x696   :  { %v19120_v62 = vpop.f32.mrf.mxu0 }
 0x697   :  { %v19145_v56 = vpop.f32.mrf.mxu1  ;;  %v13782_v44 = vadd.f32 %v13781_v39, %v13708_v42  ;;  %v15570_v39 = vsub.f32 %v21672_v40, %v21679_v48  ;;  %v15577_v42 = vsub.f32 %v21682_v32, %v21691_v58 }
 0x698   :  { %v21706_v56 = vand.u32 4294901760, %v21694_v1 }
 0x699   :  { %v13855_v27 = vpop.f32.mrf.mxu0  ;;  %v14233_v34 = vpop.f32.mrf.mxu1  ;;  %v15571_v20 = vand.u32 4294901760, %v15570_v39 }
 0x69a   :  { %v13856_v7 = vadd.f32 %v13855_v27, %v13782_v44 }
 0x69b   :  { %v19130_v50 = vpop.f32.mrf.mxu0  ;;  %v19155_v63 = vpop.f32.mrf.mxu1  ;;  %19247 = vmatprep.subr.mxu1 %v15571_v20 }
 0x69c   :  { %v13928_v19 = vadd.f32 %v13927_v45, %v13856_v7  ;;  %v21696_v45 = vand.u32 4294901760, %v15439_v31  ;;  %v15578_v7 = vand.u32 4294901760, %v15577_v42  ;;  %v21715_v63 = vand.u32 4294901760, %v15437_v25  ;;  %19248 = vmatpush3.msra.mxu1 %v15571_v20 }
 0x69d   :  { %v14009_v51 = vpop.f32.mrf.mxu0 }
 0x69e   :  { %v14379_v41 = vpop.f32.mrf.mxu1  ;;  %v15354_v46 = vmul.f32 %v19633_v57, %v13928_v19  ;;  %v14086_v61 = vadd.f32 %v14085_v18, %v14009_v51  ;;  %v21702_v18 = vand.u32 4294901760, %v15438_v14  ;;  %v21709_v44 = vsub.f32 %v15439_v31, %v21696_v45  ;;  %19234 = vmatprep.subr.mxu0 %v21696_v45  ;;  %19249 = vmatprep.subr.mxu1 %v15578_v7 }
 0x69f   :  { %v19140_v29 = vpop.f32.mrf.mxu0  ;;  %19235 = vmatpush3.msra.mxu0 %v21696_v45  ;;  %v15584_v57 = vsub.f32 %v21694_v1, %v21706_v56  ;;  %19250 = vmatpush3.msra.mxu1 %v15578_v7 }
 0x6a0   :  { %v19165_v43 = vpop.f32.mrf.mxu1  ;;  %15403 = vrot.lane.b32.xlu0 %v15354_v46, %s19767_s0  ;;  %v21713_v50 = vsub.f32 %v15438_v14, %v21702_v18  ;;  %v21721_v51 = vand.u32 4294901760, %v21709_v44  ;;  %19236 = vmatprep.subr.mxu0 %v21702_v18  ;;  %v15328_v46 = vpop.xlane.xlu1 %15327 }
 0x6a1   :  { %v14159_v4 = vpop.f32.mrf.mxu0  ;;  %v21728_v43 = vsub.f32 %v15437_v25, %v21715_v63  ;;  %19237 = vmatpush3.msra.mxu0 %v21702_v18  ;;  %19638 = vrcp.f32 %v15328_v46  ;;  %v15283_v46 = vpop.xlane.xlu0 %15282 }
 0x6a2   :  { %v14160_v36 = vadd.f32 %v14159_v4, %v14086_v61  ;;  %v14534_v59 = vpop.f32.mrf.mxu1  ;;  %v21725_v61 = vand.u32 4294901760, %v21713_v50  ;;  %19238 = vmatprep.subr.mxu0 %v21715_v63  ;;  %19640 = vrcp.f32 %v15283_v46 }
 0x6a3   :  { %v19150_v10 = vpop.f32.mrf.mxu0  ;;  %19239 = vmatpush3.msra.mxu0 %v21715_v63 }
 0x6a4   :  { %v19175_v60 = vpop.f32.mrf.mxu1  ;;  %v14234_v5 = vadd.f32 %v14233_v34, %v14160_v36  ;;  %v15591_v10 = vsub.f32 %v21709_v44, %v21721_v51 }
 0x6a5   :  { %v14307_v54 = vpop.f32.mrf.mxu0  ;;  %v15598_v60 = vsub.f32 %v21713_v50, %v21725_v61 }
 0x6a6   :  { %v14308_v47 = vadd.f32 %v14307_v54, %v14234_v5  ;;  %v14682_v35 = vpop.f32.mrf.mxu1  ;;  %v21739_v5 = vand.u32 4294901760, %v21728_v43 }
 0x6a7   :  { %v19160_v2 = vpop.f32.mrf.mxu0  ;;  %v15599_v38 = vand.u32 4294901760, %v15598_v60 }
 0x6a8   :  { %v14380_v11 = vadd.f32 %v14379_v41, %v14308_v47  ;;  %v19185_v22 = vpop.f32.mrf.mxu1  ;;  %v15436_v41 = vld [vmem:[#allocation5] sm:$0xff]  ;;  %v15592_v47 = vand.u32 4294901760, %v15591_v10 }
 0x6a9   :  { %v14458_v15 = vpop.f32.mrf.mxu0  ;;  %v21730_v4 = vand.u32 4294901760, %v15436_v41 }
 0x6aa   :  { %v14828_v6 = vpop.f32.mrf.mxu1  ;;  %v15356_v53 = vmul.f32 %v19635_v13, %v14380_v11  ;;  %v14535_v17 = vadd.f32 %v14534_v59, %v14458_v15  ;;  %v15585_v59 = vand.u32 4294901760, %v15584_v57  ;;  %v15605_v11 = vsub.f32 %v21728_v43, %v21739_v5 }
 0x6ab   :  { %v19170_v0 = vpop.f32.mrf.mxu0  ;;  %v21742_v54 = vsub.f32 %v15436_v41, %v21730_v4  ;;  %19240 = vmatprep.subr.mxu0 %v21730_v4  ;;  %v19662_v41 = vld [vmem:[#allocation2 + $0x18] sm:$0xff] }
 0x6ac   :  { %v19195_v30 = vpop.f32.mrf.mxu1  ;;  %15405 = vrot.lane.b32.xlu1 %v15356_v53, %s19767_s0  ;;  %19251 = vmatprep.subr.mxu1 %v15585_v59  ;;  %v15606_v31 = vand.u32 4294901760, %v15605_v11 }
 0x6ad   :  { %v14608_v62 = vpop.f32.mrf.mxu0  ;;  %19252 = vmatpush3.msra.mxu1 %v15585_v59  ;;  %v21749_v22 = vand.u32 4294901760, %v21742_v54  ;;  %19241 = vmatpush3.msra.mxu0 %v21730_v4 }
 0x6ae   :  { %v14609_v27 = vadd.f32 %v14608_v62, %v14535_v17  ;;  %v14983_v34 = vpop.f32.mrf.mxu1  ;;  %19253 = vmatprep.subr.mxu1 %v15592_v47  ;;  %19264 = vmatprep.subr.mxu0 %v21660_v24  ;;  %v19661_v62 = vld [vmem:[#allocation2 + $0x8] sm:$0xff] }
 0x6af   :  { %v19180_v19 = vpop.f32.mrf.mxu0  ;;  %19254 = vmatpush3.msra.mxu1 %v15592_v47 }
 0x6b0   :  { %v19205_v29 = vpop.f32.mrf.mxu1  ;;  %v14683_v33 = vadd.f32 %v14682_v35, %v14609_v27  ;;  %v19637_v35 = vpop.eup %19636  ;;  %19255 = vmatprep.subr.mxu1 %v15599_v38 }
 0x6b1   :  { %v14756_v36 = vpop.f32.mrf.mxu0  ;;  %19256 = vmatpush3.msra.mxu1 %v15599_v38  ;;  %v19639_v7 = vpop.eup %19638 }
 0x6b2   :  { %v14757_v23 = vadd.f32 %v14756_v36, %v14683_v33  ;;  %v15131_v8 = vpop.f32.mrf.mxu1  ;;  %19257 = vmatprep.subr.mxu1 %v15606_v31  ;;  %v15286_v29 = vpop.xlane.xlu1 %15285 }
 0x6b3   :  { %v19190_v49 = vpop.f32.mrf.mxu0  ;;  %19258 = vmatpush3.msra.mxu1 %v15606_v31  ;;  %v15364_v36 = vpop.permute.xlu0 %15363  ;;  %19642 = vrcp.f32 %v15286_v29 }
 0x6b4   :  { %v14829_v37 = vadd.f32 %v14828_v6, %v14757_v23  ;;  %v19215_v2 = vpop.f32.mrf.mxu1  ;;  %v15612_v6 = vsub.f32 %v21742_v54, %v21749_v22  ;;  %v19641_v23 = vpop.eup %19640 }
 0x6b5   :  { %v14907_v28 = vpop.f32.mrf.mxu0  ;;  %v15330_v49 = vmul.f32 %v19641_v23, %v21285_v52 }
 0x6b6   :  { %v15277_v13 = vpop.f32.mrf.mxu1  ;;  %v15358_v15 = vmul.f32 %v19637_v35, %v14829_v37  ;;  %v14984_v39 = vadd.f32 %v14983_v34, %v14907_v28  ;;  %v15613_v14 = vand.u32 4294901760, %v15612_v6  ;;  %v15366_v33 = vpop.permute.xlu1 %15365 }
 0x6b7   :  { %v19200_v53 = vpop.f32.mrf.mxu0  ;;  %v15380_v59 = vpop.permute.xlu0 %15379  ;;  %v15417_v35 = vsel %vm778_vm3, %v15330_v49, %v15364_v36 }
 0x6b8   :  { %v19225_v0 = vpop.f32.mrf.mxu1  ;;  %15411 = vrot.lane.b32.xlu0 %v15358_v15, %s19766_s16  ;;  %19259 = vmatprep.subr.mxu1 %v15613_v14 }
 0x6b9   :  { %v15057_v17 = vpop.f32.mrf.mxu0  ;;  %19260 = vmatpush3.msra.mxu1 %v15613_v14 }
 0x6ba   :  { %v15058_v30 = vadd.f32 %v15057_v17, %v14984_v39  ;;  %19283 = vmatprep.subr.mxu1 %v21657_v3  ;;  %v15372_v10 = vpop.permute.xlu1 %15371 }
 0x6bb   :  { %v19210_v20 = vpop.f32.mrf.mxu0  ;;  %v15420_v37 = vsel %vm15419_vm4, %v15417_v35, %v15372_v10 }
 0x6bc   :  { %v15132_v42 = vadd.f32 %v15131_v8, %v15058_v30  ;;  %74 = vrot.lane.b32.xlu0 %v19661_v62, %s19756_s1  ;;  %v15423_v11 = vsel %vm15422_vm5, %v15420_v37, %v15380_v59 }
 0x6bd   :  { %v15205_v25 = vpop.f32.mrf.mxu0 }
 0x6be   :  { %v15206_v27 = vadd.f32 %v15205_v25, %v15132_v42  ;;  %v15374_v60 = vpop.permute.xlu1 %15373 }
 0x6bf   :  { %v19220_v34 = vpop.f32.mrf.mxu0 }
 0x6c0   :  { %v15278_v19 = vadd.f32 %v15277_v13, %v15206_v27  ;;  %v19643_v53 = vpop.eup %19642 }
 0x6c1   :  { %v15332_v17 = vmul.f32 %v19643_v53, %v21298_v26 }
 0x6c2   :  { %v15360_v57 = vmul.f32 %v19639_v7, %v15278_v19  ;;  %v15382_v2 = vpop.permute.xlu1 %15381 }
 0x6c3   :  { %v15418_v20 = vsel %vm778_vm3, %v15332_v17, %v15366_v33 }
 0x6c4   :  { %15413 = vrot.lane.b32.xlu1 %v15360_v57, %s19766_s16  ;;  %v15421_v62 = vsel %vm15419_vm4, %v15418_v20, %v15374_v60  ;;  %v19664_v60 = vld [vmem:[#allocation2] sm:$0xff] }
 0x6c5   :  { %v15424_v27 = vsel %vm15422_vm5, %v15421_v62, %v15382_v2  ;;  %v16084_v20 = vld [vmem:[%s22595_s3 + $0x60] sm:$0xff] }
 0x6c6   :  { %v21895_v62 = vand.u32 4294901760, %v16084_v20 }
 0x6c8   :  { %76 = vrot.lane.b32.xlu1 %v19662_v41, %s19756_s1 }
 0x6ca   :  { %v15388_v8 = vpop.permute.xlu0 %15387 }
 0x6cb   :  { %v15425_v28 = vsel %vm80_vm0, %v15423_v11, %v15388_v8 }
 0x6d7   :  { %v15390_v15 = vpop.permute.xlu1 %15389 }
 0x6d8   :  { %v15426_v7 = vsel %vm80_vm0, %v15424_v27, %v15390_v15 }
 0x6e3   :  { %v15396_v47 = vpop.permute.xlu0 %15395 }
 0x6e4   :  { %v15428_v13 = vsel %vm15427_vm6, %v15425_v28, %v15396_v47 }
 0x6ef   :  { %v15398_v14 = vpop.permute.xlu1 %15397 }
 0x6f0   :  { %v15429_v19 = vsel %vm15427_vm6, %v15426_v7, %v15398_v14  ;;  %v16085_v14 = vld [vmem:[%s22595_s3 + $0x68] sm:$0xff] }
 0x712   :  { %v15404_v38 = vpop.permute.xlu0 %15403 }
 0x713   :  { %v15431_v52 = vsel %vm15430_vm7, %v15428_v13, %v15404_v38 }
 0x71e   :  { %v15406_v25 = vpop.permute.xlu1 %15405 }
 0x71f   :  { %v15432_v26 = vsel %vm15430_vm7, %v15429_v19, %v15406_v25  ;;  %v16083_v25 = vld [vmem:[%s22595_s3 + $0x58] sm:$0xff]  ;;  %v16082_v19 = vld [vmem:[%s22595_s3 + $0x50] sm:$0xff] }
 0x720   :  { %v21905_v7 = vand.u32 4294901760, %v16083_v25 }
 0x72a   :  { %v15412_v31 = vpop.permute.xlu0 %15411 }
 0x72b   :  { %v15434_v6 = vsel %vm15433_vm8, %v15431_v52, %v15412_v31 }
 0x72c   :  { %v15445_v39 = vsel %vm134_vm1, %v15434_v6, 0  ;;  %v16087_v6 = vld [vmem:[%s22595_s3 + $0x78] sm:$0xff] }
 0x72d   :  { %v21769_v0 = vand.u32 4294901760, %v15445_v39  ;;  %v21873_v53 = vand.u32 4294901760, %v16087_v6 }
 0x72f   :  { %v15524_v30 = vsub.f32 %v15445_v39, %v21769_v0  ;;  %19261 = vmatprep.mubr.f32.mxu1 %v21769_v0  ;;  %v16086_v39 = vld [vmem:[%s22595_s3 + $0x70] sm:$0xff]  ;;  %v21884_v17 = vsub.f32 %v16087_v6, %v21873_v53 }
 0x731   :  { %v15525_v42 = vand.u32 4294901760, %v15524_v30  ;;  %v16215_v27 = vand.u32 4294901760, %v21884_v17 }
 0x733   :  { %v15526_v34 = vsub.f32 %v15524_v30, %v15525_v42 }
 0x735   :  { %v15527_v57 = vand.u32 4294901760, %v15526_v34 }
 0x736   :  { %v15414_v41 = vpop.permute.xlu1 %15413 }
 0x737   :  { %v15435_v46 = vsel %vm15433_vm8, %v15432_v26, %v15414_v41  ;;  %19242 = vmatprep.mubr.f32.mxu0 %v15527_v57  ;;  %v21913_v26 = vsub.f32 %v16084_v20, %v21895_v62  ;;  %v21915_v41 = vand.u32 4294901760, %v16082_v19 }
 0x738   :  { %v15448_v29 = vsel %vm134_vm1, %v15435_v46, 0  ;;  %v16081_v46 = vld [vmem:[%s22595_s3 + $0x48] sm:$0xff] }
 0x739   :  { %v21782_v33 = vand.u32 4294901760, %v15448_v29 }
 0x73b   :  { %v15534_v36 = vsub.f32 %v15448_v29, %v21782_v33  ;;  %19262 = vmatmul.mubr.f32.vlgmr.msra.gmra.mxu1 %v21782_v33  ;;  %v16216_v29 = vsub.f32 %v21884_v17, %v16215_v27 }
 0x73c   :  { %19284 = vmatpush3.msra.mxu1 %v21657_v3  ;;  %19299 = vmatprep.mubr.f32.mxu1 %v15525_v42 }
 0x73d   :  { %v15535_v59 = vand.u32 4294901760, %v15534_v36  ;;  %19285 = vmatprep.subr.mxu1 %v21667_v16 }
 0x73e   :  { %19286 = vmatpush3.msra.mxu1 %v21667_v16 }
 0x73f   :  { %v15536_v10 = vsub.f32 %v15534_v36, %v15535_v59  ;;  %19287 = vmatprep.subr.mxu1 %v21674_v9 }
 0x740   :  { %19288 = vmatpush3.msra.mxu1 %v21674_v9 }
 0x741   :  { %v15537_v23 = vand.u32 4294901760, %v15536_v10  ;;  %19289 = vmatprep.subr.mxu1 %v21685_v21  ;;  %v16080_v10 = vld [vmem:[%s22595_s3 + $0x40] sm:$0xff] }
 0x742   :  { %19290 = vmatpush3.msra.mxu1 %v21685_v21 }
 0x743   :  { %19291 = vmatprep.subr.mxu1 %v21696_v45  ;;  %19243 = vmatmul.mubr.f32.vlgmr.msra.gmra.mxu0 %v15537_v23 }
 0x744   :  { %19265 = vmatpush3.msra.mxu0 %v21660_v24  ;;  %19292 = vmatpush3.msra.mxu1 %v21696_v45 }
 0x745   :  { %19266 = vmatprep.subr.mxu0 %v21672_v40  ;;  %19280 = vmatprep.mubr.f32.mxu0 %v15524_v30  ;;  %v21886_v30 = vand.u32 4294901760, %v16085_v14 }
 0x746   :  { %19293 = vmatprep.subr.mxu1 %v21702_v18  ;;  %19267 = vmatpush3.msra.mxu0 %v21672_v40 }
 0x747   :  { %19294 = vmatpush3.msra.mxu1 %v21702_v18  ;;  %19268 = vmatprep.subr.mxu0 %v21682_v32  ;;  %v21903_v34 = vsub.f32 %v16085_v14, %v21886_v30  ;;  %v16072_v14 = vld [vmem:[%s22595_s3] sm:$0xff] }
 0x748   :  { %19295 = vmatprep.subr.mxu1 %v21715_v63  ;;  %19269 = vmatpush3.msra.mxu0 %v21682_v32 }
 0x749   :  { %19296 = vmatpush3.msra.mxu1 %v21715_v63  ;;  %19270 = vmatprep.subr.mxu0 %v21694_v1 }
 0x74a   :  { %19297 = vmatprep.subr.mxu1 %v21730_v4  ;;  %19271 = vmatpush3.msra.mxu0 %v21694_v1 }
 0x74b   :  { %19298 = vmatpush3.msra.mxu1 %v21730_v4  ;;  %19272 = vmatprep.subr.mxu0 %v21709_v44 }
 0x74c   :  { %19300 = vmatmul.mubr.f32.vlgmr.msra.gmra.mxu1 %v15535_v59  ;;  %19321 = vmatprep.subr.mxu1 %v21657_v3  ;;  %v21928_v59 = vand.u32 4294901760, %v16081_v46 }
 0x74d   :  { %19273 = vmatpush3.msra.mxu0 %v21709_v44  ;;  %19322 = vmatpush3.msra.mxu1 %v21657_v3 }
 0x74e   :  { %19337 = vmatprep.mubr.f32.mxu1 %v21769_v0  ;;  %19274 = vmatprep.subr.mxu0 %v21713_v50 }
 0x74f   :  { %19323 = vmatprep.subr.mxu1 %v21667_v16  ;;  %19275 = vmatpush3.msra.mxu0 %v21713_v50 }
 0x750   :  { %19324 = vmatpush3.msra.mxu1 %v21667_v16  ;;  %19276 = vmatprep.subr.mxu0 %v21728_v43 }
 0x751   :  { %19325 = vmatprep.subr.mxu1 %v21674_v9  ;;  %19277 = vmatpush3.msra.mxu0 %v21728_v43 }
 0x752   :  { %19326 = vmatpush3.msra.mxu1 %v21674_v9  ;;  %19278 = vmatprep.subr.mxu0 %v21742_v54 }
 0x753   :  { %19327 = vmatprep.subr.mxu1 %v21685_v21  ;;  %19279 = vmatpush3.msra.mxu0 %v21742_v54 }
 0x754   :  { %19328 = vmatpush3.msra.mxu1 %v21685_v21  ;;  %19281 = vmatmul.mubr.f32.vlgmr.msra.gmra.mxu0 %v15534_v36  ;;  %v21926_v36 = vsub.f32 %v16083_v25, %v21905_v7 }
 0x755   :  { %19302 = vmatprep.subr.mxu0 %v21665_v12  ;;  %19329 = vmatprep.subr.mxu1 %v21696_v45 }
 0x756   :  { %19303 = vmatpush3.msra.mxu0 %v21665_v12  ;;  %19318 = vmatprep.mubr.f32.mxu0 %v21769_v0  ;;  %v21878_v0 = vand.u32 4294901760, %v16086_v39 }
 0x757   :  { %19330 = vmatpush3.msra.mxu1 %v21696_v45  ;;  %19304 = vmatprep.subr.mxu0 %v21679_v48 }
 0x758   :  { %19331 = vmatprep.subr.mxu1 %v21702_v18  ;;  %19305 = vmatpush3.msra.mxu0 %v21679_v48  ;;  %v21893_v42 = vsub.f32 %v16086_v39, %v21878_v0 }
 0x759   :  { %19332 = vmatpush3.msra.mxu1 %v21702_v18  ;;  %19306 = vmatprep.subr.mxu0 %v21691_v58 }
 0x75a   :  { %19333 = vmatprep.subr.mxu1 %v21715_v63  ;;  %19307 = vmatpush3.msra.mxu0 %v21691_v58  ;;  %v16221_v57 = vand.u32 4294901760, %v21893_v42 }
 0x75b   :  { %19334 = vmatpush3.msra.mxu1 %v21715_v63  ;;  %19308 = vmatprep.subr.mxu0 %v21706_v56 }
 0x75c   :  { %19335 = vmatprep.subr.mxu1 %v21730_v4  ;;  %19309 = vmatpush3.msra.mxu0 %v21706_v56  ;;  %v77_v56 = vpop.permute.xlu1 %76  ;;  %v16222_v23 = vsub.f32 %v21893_v42, %v16221_v57 }
 0x75d   :  { %19336 = vmatpush3.msra.mxu1 %v21730_v4  ;;  %19310 = vmatprep.subr.mxu0 %v21721_v51  ;;  %v19663_v4 = vld [vmem:[#allocation2 + $0x10] sm:$0xff] }
 0x75e   :  { %19338 = vmatmul.mubr.f32.vlgmr.msra.gmra.mxu1 %v21782_v33  ;;  %19311 = vmatpush3.msra.mxu0 %v21721_v51 }
 0x75f   :  { %19312 = vmatprep.subr.mxu0 %v21725_v61  ;;  %16341 = vmatprep.mubr.f32.mxu1 %v19759_v55 }
 0x760   :  { %19313 = vmatpush3.msra.mxu0 %v21725_v61  ;;  %v75_v61 = vpop.permute.xlu0 %74 }
 0x761   :  { %19314 = vmatprep.subr.mxu0 %v21739_v5  ;;  %v81_v49 = vsel %vm80_vm0, %v19664_v60, %v75_v61  ;;  %v16076_v61 = vld [vmem:[%s22595_s3 + $0x20] sm:$0xff] }
 0x762   :  { %19315 = vmatpush3.msra.mxu0 %v21739_v5  ;;  %v82_v5 = vsel %vm80_vm0, %v19663_v4, %v77_v56  ;;  %v16077_v56 = vld [vmem:[%s22595_s3 + $0x28] sm:$0xff] }
 0x763   :  { %19316 = vmatprep.subr.mxu0 %v21749_v22 }
 0x764   :  { %19317 = vmatpush3.msra.mxu0 %v21749_v22 }
 0x765   :  { %19319 = vmatmul.mubr.f32.vlgmr.msra.gmra.mxu0 %v21782_v33  ;;  %16111 = vmatprep.subr.mxu0 %v21873_v53  ;;  %v16227_v33 = vand.u32 4294901760, %v21903_v34 }
 0x766   :  { %16174 = vmatprep.mubr.f32.mxu0 %v19759_v55  ;;  %16113 = vmatpush1.msra.mxu0 %v21878_v0 }
 0x767   :  { %16115 = vmatprep.subr.mxu0 %v21886_v30 }
 0x768   :  { %16117 = vmatpush1.msra.mxu0 %v21895_v62 }
 0x769   :  { %16119 = vmatprep.subr.mxu0 %v21905_v7 }
 0x76a   :  { %16121 = vmatpush1.msra.mxu0 %v21915_v41 }
 0x76b   :  { %16123 = vmatprep.subr.mxu0 %v21928_v59 }
 0x7fb   :  { %v19263_v24 = vpop.f32.mrf.mxu1 }
 0x7fd   :  { %v15650_v40 = vpop.f32.mrf.mxu1 }
 0x803   :  { %v19244_v3 = vpop.f32.mrf.mxu0 }
 0x804   :  { %v15657_v9 = vadd.f32 %v19263_v24, %v19244_v3  ;;  %v16233_v3 = vand.u32 4294901760, %v21913_v26  ;;  %v21939_v24 = vsub.f32 %v16082_v19, %v21915_v41 }
 0x805   :  { %v15529_v12 = vpop.f32.mrf.mxu0 }
 0x806   :  { %v15651_v21 = vadd.f32 %v15650_v40, %v15529_v12  ;;  %v21941_v12 = vand.u32 4294901760, %v16080_v10  ;;  %v16217_v40 = vand.u32 4294901760, %v16216_v29 }
 0x808   :  { %16125 = vmatpush1.msra.mxu0 %v21941_v12  ;;  %16218 = vmatprep.subr.mxu1 %v16217_v40 }
 0x80c   :  { %v19301_v48 = vpop.f32.mrf.mxu1 }
 0x80e   :  { %v15832_v45 = vpop.f32.mrf.mxu1 }
 0x814   :  { %v19282_v16 = vpop.f32.mrf.mxu0 }
 0x815   :  { %v15752_v58 = vadd.f32 %v19282_v16, %v15657_v9  ;;  %v16079_v16 = vld [vmem:[%s22595_s3 + $0x38] sm:$0xff]  ;;  %v16228_v9 = vsub.f32 %v21903_v34, %v16227_v33 }
 0x816   :  { %v15744_v32 = vpop.f32.mrf.mxu0 }
 0x817   :  { %v15745_v1 = vadd.f32 %v15744_v32, %v15651_v21  ;;  %v15841_v18 = vadd.f32 %v19301_v48, %v15752_v58  ;;  %v16239_v48 = vand.u32 4294901760, %v21926_v36  ;;  %v21952_v32 = vsub.f32 %v16081_v46, %v21928_v59  ;;  %v16078_v21 = vld [vmem:[%s22595_s3 + $0x30] sm:$0xff] }
 0x818   :  { %v16223_v58 = vand.u32 4294901760, %v16222_v23 }
 0x819   :  { %v15833_v51 = vadd.f32 %v15832_v45, %v15745_v1  ;;  %v16234_v1 = vsub.f32 %v21913_v26, %v16233_v3  ;;  %v16245_v45 = vand.u32 4294901760, %v21939_v24 }
 0x81a   :  { %16224 = vmatpush1.msra.mxu1 %v16223_v58  ;;  %v22045_v58 = vand.u32 4294901760, %v16072_v14 }
 0x81b   :  { %v16246_v4 = vsub.f32 %v21939_v24, %v16245_v45 }
 0x81e   :  { %v19339_v44 = vpop.f32.mrf.mxu1 }
 0x820   :  { %v16020_v8 = vpop.f32.mrf.mxu1 }
 0x825   :  { %v19320_v50 = vpop.f32.mrf.mxu0 }
 0x826   :  { %v15942_v63 = vadd.f32 %v19320_v50, %v15841_v18  ;;  %v21963_v18 = vsub.f32 %v16080_v10, %v21941_v12  ;;  %v16240_v50 = vsub.f32 %v21926_v36, %v16239_v48 }
 0x827   :  { %v15935_v43 = vpop.f32.mrf.mxu0 }
 0x828   :  { %v16027_v54 = vadd.f32 %v19339_v44, %v15942_v63  ;;  %v15936_v22 = vadd.f32 %v15935_v43, %v15833_v51  ;;  %v16229_v44 = vand.u32 4294901760, %v16228_v9  ;;  %v16251_v63 = vand.u32 4294901760, %v21952_v32 }
 0x829   :  { %v21973_v51 = vand.u32 4294901760, %v16079_v16  ;;  %v16235_v43 = vand.u32 4294901760, %v16234_v1 }
 0x82a   :  { %v16021_v47 = vadd.f32 %v16020_v8, %v15936_v22  ;;  %v21856_v35 = vadd.f32 %v16027_v54, %v82_v5  ;;  %v16257_v5 = vand.u32 4294901760, %v21963_v18  ;;  %v21982_v54 = vand.u32 4294901760, %v16078_v21  ;;  %v16075_v22 = vld [vmem:[%s22595_s3 + $0x18] sm:$0xff]  ;;  %16230 = vmatprep.subr.mxu1 %v16229_v44 }
 0x82b   :  { %v16241_v8 = vand.u32 4294901760, %v16240_v50  ;;  %v16252_v60 = vsub.f32 %v21952_v32, %v16251_v63  ;;  %16127 = vmatprep.subr.mxu0 %v21973_v51  ;;  %16236 = vmatpush1.msra.mxu1 %v16235_v43  ;;  %v22015_v39 = vand.u32 4294901760, %v16075_v22 }
 0x82c   :  { %22638 = vst [vmem:[#allocation12_spill] sm:$0xff] %v21856_v35  ;;  %v21858_v37 = vadd.f32 %v16021_v47, %v81_v49  ;;  %v16033_v2 = vmul.f32 %v21856_v35, %v21856_v35  ;;  %v21991_v49 = vsub.f32 %v16079_v16, %v21973_v51  ;;  %v21993_v47 = vand.u32 4294901760, %v16077_v56  ;;  %16129 = vmatpush1.msra.mxu0 %v21982_v54 }
 0x82d   :  { %16242 = vmatprep.subr.mxu1 %v16241_v8  ;;  %v22033_v23 = vsub.f32 %v16075_v22, %v22015_v39  ;;  %v22061_v22 = vsub.f32 %v16072_v14, %v22045_v58 }
 0x82e   :  { %22639 = vst [vmem:[#allocation13_spill] sm:$0xff] %v21858_v37  ;;  %16052 = vrot.lane.b32.xlu1 %v16033_v2, %s19761_s12  ;;  %v16032_v38 = vmul.f32 %v21858_v37, %v21858_v37  ;;  %v16037_v28 = vsel %vm80_vm0, %v16033_v2, 0.0  ;;  %v16074_v2 = vld [vmem:[%s22595_s3 + $0x10] sm:$0xff]  ;;  %v22013_v6 = vsub.f32 %v16077_v56, %v21993_v47  ;;  %16131 = vmatprep.subr.mxu0 %v21993_v47 }
 0x82f   :  { %v22025_v46 = vand.u32 4294901760, %v16074_v2  ;;  %v22602_v44 = vand.u32 4294901760, %v22033_v23 }
 0x830   :  { %16050 = vrot.lane.b32.xlu0 %v16032_v38, %s19761_s12  ;;  %v16034_v11 = vsel %vm80_vm0, %v16032_v38, 0.0  ;;  %v16247_v38 = vand.u32 4294901760, %v16246_v4  ;;  %v16275_v10 = vand.u32 4294901760, %v22013_v6 }
 0x832   :  { %16248 = vmatpush1.msra.mxu1 %v16247_v38  ;;  %v16276_v56 = vsub.f32 %v22013_v6, %v16275_v10 }
 0x834   :  { %v16277_v8 = vand.u32 4294901760, %v16276_v56 }
 0x84f   :  { %16035 = vadd.xlane.f32.xlu0 %v16034_v11  ;;  %v16258_v11 = vsub.f32 %v21963_v18, %v16257_v5 }
 0x851   :  { %v16259_v20 = vand.u32 4294901760, %v16258_v11 }
 0x853   :  { %16038 = vadd.xlane.f32.xlu0 %v16037_v28  ;;  %v22003_v28 = vsub.f32 %v16078_v21, %v21982_v54  ;;  %v22043_v21 = vsub.f32 %v16074_v2, %v22025_v46 }
 0x855   :  { %v16269_v25 = vand.u32 4294901760, %v22003_v28  ;;  %v22601_v4 = vand.u32 4294901760, %v22043_v21 }
 0x857   :  { %v16270_v40 = vsub.f32 %v22003_v28, %v16269_v25  ;;  %v16294_v11 = vsub.f32 %v22043_v21, %v22601_v4 }
 0x8a0   :  { %v16053_v13 = vpop.permute.xlu1 %16052 }
 0x8a1   :  { %v16059_v15 = vsel %vm80_vm0, %v16053_v13, 0.0  ;;  %v22005_v13 = vand.u32 4294901760, %v16076_v61 }
 0x8a2   :  { %v16051_v52 = vpop.permute.xlu0 %16050  ;;  %16060 = vadd.xlane.f32.xlu0 %v16059_v15  ;;  %v16073_v15 = vld [vmem:[%s22595_s3 + $0x8] sm:$0xff] }
 0x8a3   :  { %v16056_v31 = vsel %vm80_vm0, %v16051_v52, 0.0  ;;  %v16253_v52 = vand.u32 4294901760, %v16252_v60  ;;  %v22023_v19 = vsub.f32 %v16076_v61, %v22005_v13  ;;  %16133 = vmatpush1.msra.mxu0 %v22005_v13  ;;  %v22035_v16 = vand.u32 4294901760, %v16073_v15 }
 0x8a4   :  { %16057 = vadd.xlane.f32.xlu1 %v16056_v31  ;;  %v16263_v31 = vand.u32 4294901760, %v21991_v49  ;;  %16135 = vmatprep.subr.mxu0 %v22015_v39  ;;  %v16271_v61 = vand.u32 4294901760, %v16270_v40  ;;  %v16288_v60 = vsub.f32 %v22033_v23, %v22602_v44 }
 0x8a5   :  { %16254 = vmatprep.subr.mxu1 %v16253_v52  ;;  %v16281_v9 = vand.u32 4294901760, %v22023_v19  ;;  %16137 = vmatpush1.msra.mxu0 %v22025_v46  ;;  %v22053_v50 = vsub.f32 %v16073_v15, %v22035_v16  ;;  %v22603_v15 = vand.u32 4294901760, %v22061_v22 }
 0x8a6   :  { %v16264_v29 = vsub.f32 %v21991_v49, %v16263_v31  ;;  %16260 = vmatpush1.msra.mxu1 %v16259_v20  ;;  %16139 = vmatprep.subr.mxu0 %v22035_v16  ;;  %v16289_v52 = vand.u32 4294901760, %v16288_v60  ;;  %v16295_v20 = vand.u32 4294901760, %v16294_v11 }
 0x8a7   :  { %v16282_v43 = vsub.f32 %v22023_v19, %v16281_v9  ;;  %16141 = vmatpush1.msra.mxu0 %v22045_v58  ;;  %v22600_v2 = vand.u32 4294901760, %v22053_v50 }
 0x8a8   :  { %v16265_v1 = vand.u32 4294901760, %v16264_v29  ;;  %16374 = vmatprep.subr.mxu0 %v21884_v17  ;;  %v16306_v29 = vsub.f32 %v22061_v22, %v22603_v15  ;;  %v22642_v17 = vand.u32 4294901760, %v22053_v50 }
 0x8a9   :  { %v16283_v38 = vand.u32 4294901760, %v16282_v43  ;;  %v16300_v14 = vsub.f32 %v22053_v50, %v22600_v2 }
 0x8aa   :  { %16266 = vmatprep.subr.mxu1 %v16265_v1  ;;  %v16307_v1 = vand.u32 4294901760, %v16306_v29 }
 0x8ab   :  { %16272 = vmatpush1.msra.mxu1 %v16271_v61  ;;  %v16301_v40 = vand.u32 4294901760, %v16300_v14 }
 0x8ac   :  { %16278 = vmatprep.subr.mxu1 %v16277_v8 }
 0x8ad   :  { %16284 = vmatpush1.msra.mxu1 %v16283_v38 }
 0x8ae   :  { %16290 = vmatprep.subr.mxu1 %v16289_v52 }
 0x8af   :  { %16296 = vmatpush1.msra.mxu1 %v16295_v20 }
 0x8b0   :  { %16302 = vmatprep.subr.mxu1 %v16301_v40 }
 0x8b1   :  { %16308 = vmatpush1.msra.mxu1 %v16307_v1 }
 0x8b2   :  { %16486 = vmatprep.subr.mxu1 %v21873_v53 }
 0x8d8   :  { %v16036_v56 = vpop.xlane.xlu0 %16035 }
 0x8d9   :  { %v16040_v8 = vmul.f32 0.03125, %v16036_v56 }
 0x8db   :  { %v16042_v2 = vadd.f32 1e-05, %v16040_v8 }
 0x8dc   :  { %v16039_v61 = vpop.xlane.xlu0 %16038 }
 0x8dd   :  { %v16041_v43 = vmul.f32 0.03125, %v16039_v61 }
 0x8df   :  { %v16043_v60 = vadd.f32 1e-05, %v16041_v43 }
 0x8e1   :  { %19644 = vrsqrt.f32 %v16043_v60 }
 0x8e2   :  { %19646 = vrsqrt.f32 %v16042_v2 }
 0x8ee   :  { %v19645_v14 = vpop.eup %19644 }
 0x8ef   :  { %v19647_v20 = vpop.eup %19646  ;;  %v16047_v40 = vmul.f32 %v19645_v14, %v21856_v35 }
 0x8f0   :  { %v16046_v61 = vmul.f32 %v19647_v20, %v21858_v37 }
 0x92b   :  { %v16061_v38 = vpop.xlane.xlu0 %16060 }
 0x92c   :  { %v16063_v11 = vmul.f32 0.03125, %v16061_v38 }
 0x92d   :  { %v16058_v4 = vpop.xlane.xlu1 %16057 }
 0x92e   :  { %v16065_v44 = vadd.f32 1e-05, %v16063_v11  ;;  %v16062_v15 = vmul.f32 0.03125, %v16058_v4 }
 0x930   :  { %19648 = vrsqrt.f32 %v16065_v44  ;;  %v16064_v52 = vadd.f32 1e-05, %v16062_v15 }
 0x932   :  { %19650 = vrsqrt.f32 %v16064_v52 }
 0x93d   :  { %v19649_v29 = vpop.eup %19648 }
 0x93e   :  { %v16069_v1 = vmul.f32 %v19649_v29, %v21856_v35 }
 0x93f   :  { %v19651_v56 = vpop.eup %19650 }
 0x940   :  { %v16068_v43 = vmul.f32 %v19651_v56, %v21858_v37  ;;  %v16071_v8 = vsel %vm80_vm0, %v16047_v40, %v16069_v1 }
 0x941   :  { %v16092_v4 = vsel %vm134_vm1, %v16071_v8, 0  ;;  %v16812_v8 = vld [vmem:[%s22596_s4 + $0x30] sm:$0xff] }
 0x942   :  { %v16070_v44 = vsel %vm80_vm0, %v16046_v61, %v16068_v43  ;;  %v22087_v2 = vand.u32 4294901760, %v16092_v4 }
 0x943   :  { %v16089_v15 = vsel %vm134_vm1, %v16070_v44, 0 }
 0x944   :  { %v22090_v60 = vand.u32 4294901760, %v16089_v15  ;;  %v22093_v38 = vsub.f32 %v16092_v4, %v22087_v2 }
 0x946   :  { %v16176_v11 = vsub.f32 %v16089_v15, %v22090_v60  ;;  %16343 = vmatmul.mubr.f32.vlgmr.msra.gmra.mxu1 %v22090_v60  ;;  %v16188_v14 = vand.u32 4294901760, %v22093_v38 }
 0x947   :  { %16488 = vmatpush1.msra.mxu1 %v21878_v0  ;;  %16348 = vmatprep.mubr.f32.mxu1 %v19759_v55 }
 0x948   :  { %16490 = vmatprep.subr.mxu1 %v21886_v30  ;;  %v16177_v52 = vand.u32 4294901760, %v16176_v11  ;;  %v16189_v40 = vsub.f32 %v22093_v38, %v16188_v14 }
 0x949   :  { %16492 = vmatpush1.msra.mxu1 %v21895_v62 }
 0x94a   :  { %16494 = vmatprep.subr.mxu1 %v21905_v7  ;;  %16350 = vmatmul.mubr.f32.gmra.mxu1 %v22087_v2  ;;  %v16178_v20 = vsub.f32 %v16176_v11, %v16177_v52  ;;  %v16190_v1 = vand.u32 4294901760, %v16189_v40  ;;  %v16810_v40 = vld [vmem:[%s22596_s4 + $0x20] sm:$0xff] }
 0x94b   :  { %16496 = vmatpush1.msra.mxu1 %v21915_v41  ;;  %16549 = vmatprep.mubr.f32.mxu1 %v19759_v55 }
 0x94c   :  { %16498 = vmatprep.subr.mxu1 %v21928_v59  ;;  %v16179_v29 = vand.u32 4294901760, %v16178_v20 }
 0x94d   :  { %16500 = vmatpush1.msra.mxu1 %v21941_v12 }
 0x94e   :  { %16502 = vmatprep.subr.mxu1 %v21973_v51  ;;  %16180 = vmatmul.mubr.f32.vlgmr.msra.gmra.mxu0 %v16179_v29 }
 0x94f   :  { %16377 = vmatpush1.msra.mxu0 %v21893_v42  ;;  %16504 = vmatpush1.msra.mxu1 %v21982_v54  ;;  %v16821_v42 = vld [vmem:[%s22596_s4 + $0x78] sm:$0xff] }
 0x950   :  { %16380 = vmatprep.subr.mxu0 %v21903_v34  ;;  %16506 = vmatprep.subr.mxu1 %v21993_v47 }
 0x951   :  { %16383 = vmatpush1.msra.mxu0 %v21913_v26  ;;  %16508 = vmatpush1.msra.mxu1 %v22005_v13 }
 0x952   :  { %16185 = vmatprep.mubr.f32.mxu0 %v19759_v55  ;;  %16386 = vmatprep.subr.mxu0 %v21926_v36 }
 0x953   :  { %16510 = vmatprep.subr.mxu1 %v22015_v39  ;;  %16191 = vmatmul.mubr.f32.gmra.mxu0 %v16190_v1 }
 0x954   :  { %16389 = vmatpush1.msra.mxu0 %v21939_v24  ;;  %16512 = vmatpush1.msra.mxu1 %v22025_v46 }
 0x955   :  { %16392 = vmatprep.subr.mxu0 %v21952_v32  ;;  %16514 = vmatprep.subr.mxu1 %v22035_v16 }
 0x956   :  { %16395 = vmatpush1.msra.mxu0 %v21963_v18  ;;  %16516 = vmatpush1.msra.mxu1 %v22045_v58 }
 0x957   :  { %16398 = vmatprep.subr.mxu0 %v21991_v49  ;;  %16553 = vmatmul.mubr.f32.vlgmr.msra.gmra.mxu1 %v16177_v52 }
 0x958   :  { %16712 = vmatprep.subr.mxu1 %v21873_v53  ;;  %16401 = vmatpush1.msra.mxu0 %v22003_v28  ;;  %v22640_v53 = vand.u32 4294901760, %v22033_v23 }
 0x959   :  { %16714 = vmatpush1.msra.mxu1 %v21878_v0  ;;  %16404 = vmatprep.subr.mxu0 %v22013_v6  ;;  %v22641_v0 = vand.u32 4294901760, %v22043_v21 }
 0x95a   :  { %16716 = vmatprep.subr.mxu1 %v21886_v30  ;;  %16407 = vmatpush1.msra.mxu0 %v22023_v19  ;;  %v22643_v30 = vand.u32 4294901760, %v22061_v22 }
 0x95b   :  { %16558 = vmatprep.mubr.f32.mxu1 %v19759_v55  ;;  %16718 = vmatpush1.msra.mxu1 %v21895_v62  ;;  %v22196_v62 = vand.u32 4294901760, %v16821_v42 }
 0x95c   :  { %16410 = vmatprep.subr.mxu0 %v22033_v23  ;;  %16562 = vmatmul.mubr.f32.gmra.mxu1 %v16188_v14 }
 0x95d   :  { %16720 = vmatprep.subr.mxu1 %v21905_v7  ;;  %16413 = vmatpush1.msra.mxu0 %v22043_v21  ;;  %v22202_v34 = vsub.f32 %v16821_v42, %v22196_v62  ;;  %v16809_v42 = vld [vmem:[%s22596_s4 + $0x18] sm:$0xff] }
 0x95e   :  { %16722 = vmatpush1.msra.mxu1 %v21915_v41  ;;  %16416 = vmatprep.subr.mxu0 %v22053_v50 }
 0x95f   :  { %16724 = vmatprep.subr.mxu1 %v21928_v59  ;;  %16419 = vmatpush1.msra.mxu0 %v22061_v22 }
 0x960   :  { %16452 = vmatprep.mubr.f32.mxu0 %v19759_v55  ;;  %16726 = vmatpush1.msra.mxu1 %v21941_v12  ;;  %v16817_v12 = vld [vmem:[%s22596_s4 + $0x58] sm:$0xff] }
 0x961   :  { %16455 = vmatmul.mubr.f32.vlgmr.msra.gmra.mxu0 %v16176_v11  ;;  %16587 = vmatprep.subr.mxu0 %v16215_v27  ;;  %v16820_v27 = vld [vmem:[%s22596_s4 + $0x70] sm:$0xff] }
 0x962   :  { %16728 = vmatprep.subr.mxu1 %v21973_v51  ;;  %16591 = vmatpush1.msra.mxu0 %v16221_v57  ;;  %v22204_v7 = vand.u32 4294901760, %v16820_v27  ;;  %v22212_v57 = vand.u32 4294901760, %v22202_v34  ;;  %v16816_v51 = vld [vmem:[%s22596_s4 + $0x50] sm:$0xff] }
 0x963   :  { %16730 = vmatpush1.msra.mxu1 %v21982_v54  ;;  %16595 = vmatprep.subr.mxu0 %v16227_v33  ;;  %v16818_v33 = vld [vmem:[%s22596_s4 + $0x60] sm:$0xff] }
 0x964   :  { %16732 = vmatprep.subr.mxu1 %v21993_v47  ;;  %16460 = vmatprep.mubr.f32.mxu0 %v19759_v55  ;;  %22644 = vst [vmem:[#allocation14_spill] sm:$0xff] %v22212_v57  ;;  %v22215_v26 = vsub.f32 %v16820_v27, %v22204_v7  ;;  %v16927_v36 = vsub.f32 %v22202_v34, %v22212_v57  ;;  %v22232_v24 = vand.u32 4294901760, %v16818_v33  ;;  %v22259_v47 = vand.u32 4294901760, %v16816_v51 }
 0x965   :  { %16599 = vmatpush1.msra.mxu0 %v16233_v3  ;;  %16734 = vmatpush1.msra.mxu1 %v22005_v13  ;;  %v16815_v13 = vld [vmem:[%s22596_s4 + $0x48] sm:$0xff] }
 0x966   :  { %16463 = vmatmul.mubr.f32.gmra.mxu0 %v22093_v38  ;;  %16603 = vmatprep.subr.mxu0 %v16239_v48  ;;  %v22227_v59 = vand.u32 4294901760, %v22215_v26  ;;  %v16928_v48 = vand.u32 4294901760, %v16927_v36  ;;  %v22245_v18 = vsub.f32 %v16818_v33, %v22232_v24  ;;  %v16811_v38 = vld [vmem:[%s22596_s4 + $0x28] sm:$0xff]  ;;  %v22364_v36 = vand.u32 4294901760, %v16809_v42 }
 0x967   :  { %16736 = vmatprep.subr.mxu1 %v22015_v39  ;;  %16607 = vmatpush1.msra.mxu0 %v16245_v45  ;;  %v22271_v39 = vsub.f32 %v16816_v51, %v22259_v47  ;;  %v22333_v20 = vand.u32 4294901760, %v16811_v38 }
 0x968   :  { %16738 = vmatpush1.msra.mxu1 %v22025_v46  ;;  %16611 = vmatprep.subr.mxu0 %v16251_v63  ;;  %22645 = vst [vmem:[#allocation15_spill] sm:$0xff] %v22227_v59  ;;  %v16934_v32 = vsub.f32 %v22215_v26, %v22227_v59  ;;  %v22248_v63 = vand.u32 4294901760, %v16817_v12  ;;  %v22257_v49 = vand.u32 4294901760, %v22245_v18  ;;  %v16814_v46 = vld [vmem:[%s22596_s4 + $0x40] sm:$0xff] }
 0x969   :  { %16740 = vmatprep.subr.mxu1 %v22035_v16  ;;  %16615 = vmatpush1.msra.mxu0 %v16257_v5  ;;  %v22284_v23 = vand.u32 4294901760, %v22271_v39 }
 0x96a   :  { %16742 = vmatpush1.msra.mxu1 %v22045_v58  ;;  %16775 = vmatprep.mubr.f32.mxu1 %v19759_v55  ;;  %v16935_v5 = vand.u32 4294901760, %v16934_v32  ;;  %22647 = vst [vmem:[#allocation17_spill] sm:$0xff] %v22257_v49  ;;  %v22262_v28 = vsub.f32 %v16817_v12, %v22248_v63  ;;  %v16948_v6 = vsub.f32 %v22245_v18, %v22257_v49  ;;  %v16813_v58 = vld [vmem:[%s22596_s4 + $0x38] sm:$0xff] }
 0x96b   :  { %16619 = vmatprep.subr.mxu0 %v16263_v31  ;;  %16777 = vmatmul.mubr.f32.vlgmr.msra.gmra.mxu1 %v22090_v60  ;;  %22649 = vst [vmem:[#allocation19_spill] sm:$0xff] %v22284_v23  ;;  %v16962_v50 = vsub.f32 %v22271_v39, %v22284_v23  ;;  %v22306_v61 = vand.u32 4294901760, %v16813_v58 }
 0x96c   :  { %16623 = vmatpush1.msra.mxu0 %v16269_v25  ;;  %16782 = vmatprep.mubr.f32.mxu1 %v19759_v55  ;;  %v22273_v25 = vand.u32 4294901760, %v16815_v13  ;;  %v22277_v19 = vand.u32 4294901760, %v22262_v28 }
 0x96d   :  { %16627 = vmatprep.subr.mxu0 %v16275_v10  ;;  %16680 = vmatprep.mubr.f32.mxu0 %v19759_v55  ;;  %v16949_v10 = vand.u32 4294901760, %v16948_v6  ;;  %v16963_v4 = vand.u32 4294901760, %v16962_v50  ;;  %v22319_v15 = vsub.f32 %v16813_v58, %v22306_v61  ;;  %v16806_v50 = vld [vmem:[%s22596_s4] sm:$0xff] }
 0x96e   :  { %16631 = vmatpush1.msra.mxu0 %v16281_v9  ;;  %19375 = vmatprep.subr.mxu1 %v16928_v48  ;;  %22648 = vst [vmem:[#allocation18_spill] sm:$0xff] %v22277_v19  ;;  %v22287_v16 = vsub.f32 %v16815_v13, %v22273_v25  ;;  %v22289_v9 = vand.u32 4294901760, %v16814_v46  ;;  %v16955_v21 = vsub.f32 %v22262_v28, %v22277_v19 }
 0x96f   :  { %16635 = vmatprep.subr.mxu0 %v22640_v53  ;;  %16784 = vmatmul.mubr.f32.gmra.mxu1 %v22087_v2  ;;  %v22331_v14 = vand.u32 4294901760, %v22319_v15 }
 0x970   :  { %16639 = vmatpush1.msra.mxu0 %v22641_v0  ;;  %19376 = vmatpush3.msra.mxu1 %v16928_v48  ;;  %v22301_v22 = vand.u32 4294901760, %v22287_v16  ;;  %v22304_v56 = vsub.f32 %v16814_v46, %v22289_v9  ;;  %v16956_v43 = vand.u32 4294901760, %v16955_v21  ;;  %v22346_v0 = vsub.f32 %v16811_v38, %v22333_v20  ;;  %v16808_v48 = vld [vmem:[%s22596_s4 + $0x10] sm:$0xff] }
 0x971   :  { %16643 = vmatprep.subr.mxu0 %v22642_v17  ;;  %19377 = vmatprep.subr.mxu1 %v16935_v5  ;;  %22652 = vst [vmem:[#allocation22_spill] sm:$0xff] %v22331_v14  ;;  %v16983_v53 = vsub.f32 %v22319_v15, %v22331_v14  ;;  %v22348_v17 = vand.u32 4294901760, %v16810_v40 }
 0x972   :  { %16647 = vmatpush1.msra.mxu0 %v22643_v30  ;;  %19378 = vmatpush3.msra.mxu1 %v16935_v5  ;;  %22650 = vst [vmem:[#allocation20_spill] sm:$0xff] %v22301_v22  ;;  %v16969_v44 = vsub.f32 %v22287_v16, %v22301_v22  ;;  %v22379_v5 = vsub.f32 %v16809_v42, %v22364_v36 }
 0x973   :  { %16682 = vmatmul.mubr.f32.vlgmr.msra.gmra.mxu0 %v22090_v60  ;;  %19340 = vmatprep.subr.mxu0 %v22196_v62  ;;  %v22322_v60 = vand.u32 4294901760, %v16812_v8  ;;  %v16984_v27 = vand.u32 4294901760, %v16983_v53  ;;  %v22362_v33 = vsub.f32 %v16810_v40, %v22348_v17 }
 0x974   :  { %16687 = vmatprep.mubr.f32.mxu0 %v19759_v55  ;;  %v16819_v55 = vld [vmem:[%s22596_s4 + $0x68] sm:$0xff]  ;;  %19341 = vmatpush3.msra.mxu0 %v22196_v62  ;;  %v16970_v11 = vand.u32 4294901760, %v16969_v44  ;;  %v22408_v44 = vand.u32 4294901760, %v16806_v50 }
 0x975   :  { %v22217_v41 = vand.u32 4294901760, %v16819_v55  ;;  %19342 = vmatprep.subr.mxu0 %v22204_v7  ;;  %v22337_v29 = vsub.f32 %v16812_v8, %v22322_v60  ;;  %v22376_v51 = vand.u32 4294901760, %v22362_v33 }
 0x976   :  { %19343 = vmatpush3.msra.mxu0 %v22204_v7  ;;  %v22418_v40 = vsub.f32 %v16806_v50, %v22408_v44 }
 0x977   :  { %16689 = vmatmul.mubr.f32.gmra.mxu0 %v22087_v2  ;;  %v22230_v3 = vsub.f32 %v16819_v55, %v22217_v41  ;;  %19344 = vmatprep.subr.mxu0 %v22217_v41  ;;  %v22316_v2 = vand.u32 4294901760, %v22304_v56  ;;  %v22352_v30 = vand.u32 4294901760, %v22337_v29  ;;  %v22359_v55 = vand.u32 4294901760, %v22346_v0  ;;  %22655 = vst [vmem:[#allocation25_spill] sm:$0xff] %v22376_v51 }
 0x978   :  { %19345 = vmatpush3.msra.mxu0 %v22217_v41  ;;  %v17004_v46 = vsub.f32 %v22362_v33, %v22376_v51  ;;  %v22426_v42 = vand.u32 4294901760, %v22418_v40 }
 0x979   :  { %v22242_v45 = vand.u32 4294901760, %v22230_v3  ;;  %19346 = vmatprep.subr.mxu0 %v22232_v24  ;;  %22651 = vst [vmem:[#allocation21_spill] sm:$0xff] %v22316_v2  ;;  %v16976_v52 = vsub.f32 %v22304_v56, %v22316_v2  ;;  %22653 = vst [vmem:[#allocation23_spill] sm:$0xff] %v22352_v30  ;;  %v16990_v12 = vsub.f32 %v22337_v29, %v22352_v30 }
 0x97a   :  { %19347 = vmatpush3.msra.mxu0 %v22232_v24  ;;  %22654 = vst [vmem:[#allocation24_spill] sm:$0xff] %v22359_v55  ;;  %v16997_v32 = vsub.f32 %v22346_v0, %v22359_v55  ;;  %22659 = vst [vmem:[#allocation29_spill] sm:$0xff] %v22426_v42 }
 0x97b   :  { %22646 = vst [vmem:[#allocation16_spill] sm:$0xff] %v22242_v45  ;;  %v16941_v54 = vsub.f32 %v22230_v3, %v22242_v45  ;;  %19348 = vmatprep.subr.mxu0 %v22248_v63  ;;  %v16977_v1 = vand.u32 4294901760, %v16976_v52  ;;  %v16991_v13 = vand.u32 4294901760, %v16990_v12  ;;  %v17032_v12 = vsub.f32 %v22418_v40, %v22426_v42 }
 0x97c   :  { %19349 = vmatpush3.msra.mxu0 %v22248_v63  ;;  %v16998_v6 = vand.u32 4294901760, %v16997_v32 }
 0x97d   :  { %v16942_v31 = vand.u32 4294901760, %v16941_v54  ;;  %19350 = vmatprep.subr.mxu0 %v22259_v47  ;;  %v22381_v54 = vand.u32 4294901760, %v16808_v48  ;;  %v17033_v32 = vand.u32 4294901760, %v17032_v12 }
 0x97e   :  { %19351 = vmatpush3.msra.mxu0 %v22259_v47 }
 0x97f   :  { %19379 = vmatprep.subr.mxu1 %v16942_v31  ;;  %19352 = vmatprep.subr.mxu0 %v22273_v25  ;;  %v22394_v21 = vsub.f32 %v16808_v48, %v22381_v54 }
 0x980   :  { %19380 = vmatpush3.msra.mxu1 %v16942_v31  ;;  %19353 = vmatpush3.msra.mxu0 %v22273_v25  ;;  %v16807_v31 = vld [vmem:[%s22596_s4 + $0x8] sm:$0xff]  ;;  %s19772_s4 = smov [#allocation8]  }
 0x981   :  { %19381 = vmatprep.subr.mxu1 %v16949_v10  ;;  %19354 = vmatprep.subr.mxu0 %v22289_v9  ;;  %v22397_v58 = vand.u32 4294901760, %v16807_v31  ;;  %s17525_s14 = sshll.u32 %s19772_s4, 4  ;;  %s17526_s14 = int_to_ptr.vmem [resolvable:$true] %s17525_s14 }
 0x982   :  { %19382 = vmatpush3.msra.mxu1 %v16949_v10  ;;  %19355 = vmatpush3.msra.mxu0 %v22289_v9  ;;  %v22391_v10 = vand.u32 4294901760, %v22379_v5  ;;  %s19725_s15 = scalar_lea.vmem %s17526_s14, 512  ;;  %p19730_p2 = scmp.lt.s32.totalorder %s17526_s14, %s17526_s14 }
 0x983   :  { %19383 = vmatprep.subr.mxu1 %v16956_v43  ;;  %19356 = vmatprep.subr.mxu0 %v22306_v61  ;;  %v22412_v38 = vsub.f32 %v16807_v31, %v22397_v58  ;;  %p19726_p1 = scmp.ne.s32.totalorder %s17526_s14, %s19725_s15  ;;  %p19731_p3 = scmp.lt.s32.totalorder %s19725_s15, %s19725_s15 }
 0x984   :  { %19384 = vmatpush3.msra.mxu1 %v16956_v43  ;;  %19357 = vmatpush3.msra.mxu0 %v22306_v61  ;;  %22656 = vst [vmem:[#allocation26_spill] sm:$0xff] %v22391_v10  ;;  %v17005_v43 = vand.u32 4294901760, %v17004_v46  ;;  %v17011_v8 = vsub.f32 %v22379_v5, %v22391_v10 }
 0x985   :  { %19385 = vmatprep.subr.mxu1 %v16963_v4  ;;  %19358 = vmatprep.subr.mxu0 %v22322_v60  ;;  %p19732_p4 = por %p19731_p3, %p19730_p2 }
 0x986   :  { %19386 = vmatpush3.msra.mxu1 %v16963_v4  ;;  %19359 = vmatpush3.msra.mxu0 %v22322_v60  ;;  %v22406_v4 = vand.u32 4294901760, %v22394_v21 }
 0x987   :  { %19387 = vmatprep.subr.mxu1 %v16970_v11  ;;  %19360 = vmatprep.subr.mxu0 %v22333_v20  ;;  %p19733_p5 = pnand %p19732_p4, %p19726_p1 }
 0x988   :  { %19388 = vmatpush3.msra.mxu1 %v16970_v11  ;;  %19361 = vmatpush3.msra.mxu0 %v22333_v20  ;;  %22657 = vst [vmem:[#allocation27_spill] sm:$0xff] %v22406_v4  ;;  %v17012_v11 = vand.u32 4294901760, %v17011_v8  ;;  %v17018_v52 = vsub.f32 %v22394_v21, %v22406_v4 }
 0x989   :  { %19389 = vmatprep.subr.mxu1 %v16977_v1  ;;  %19362 = vmatprep.subr.mxu0 %v22348_v17 }
 0x98a   :  { %19390 = vmatpush3.msra.mxu1 %v16977_v1  ;;  %19363 = vmatpush3.msra.mxu0 %v22348_v17  ;;  %v22422_v1 = vand.u32 4294901760, %v22412_v38  ;;  %v17019_v53 = vand.u32 4294901760, %v17018_v52 }
 0x98b   :  { %19391 = vmatprep.subr.mxu1 %v16984_v27  ;;  %19364 = vmatprep.subr.mxu0 %v22364_v36 }
 0x98c   :  { %19392 = vmatpush3.msra.mxu1 %v16984_v27  ;;  %19365 = vmatpush3.msra.mxu0 %v22364_v36  ;;  %22658 = vst [vmem:[#allocation28_spill] sm:$0xff] %v22422_v1  ;;  %v17025_v27 = vsub.f32 %v22412_v38, %v22422_v1 }
 0x98d   :  { %19393 = vmatprep.subr.mxu1 %v16991_v13  ;;  %19366 = vmatprep.subr.mxu0 %v22381_v54 }
 0x98e   :  { %19394 = vmatpush3.msra.mxu1 %v16991_v13  ;;  %19367 = vmatpush3.msra.mxu0 %v22381_v54  ;;  %v17026_v48 = vand.u32 4294901760, %v17025_v27 }
 0x98f   :  { %19395 = vmatprep.subr.mxu1 %v16998_v6  ;;  %19368 = vmatprep.subr.mxu0 %v22397_v58 }
 0x990   :  { %19396 = vmatpush3.msra.mxu1 %v16998_v6  ;;  %19369 = vmatpush3.msra.mxu0 %v22397_v58 }
 0x991   :  { %19397 = vmatprep.subr.mxu1 %v17005_v43  ;;  %19370 = vmatprep.subr.mxu0 %v22408_v44 }
 0x992   :  { %19398 = vmatpush3.msra.mxu1 %v17005_v43  ;;  %19371 = vmatpush3.msra.mxu0 %v22408_v44 }
 0x993   :  { %19399 = vmatprep.subr.mxu1 %v17012_v11  ;;  %19410 = vmatprep.subr.mxu0 %v22202_v34 }
 0x994   :  { %19400 = vmatpush3.msra.mxu1 %v17012_v11 }
 0x995   :  { %19401 = vmatprep.subr.mxu1 %v17019_v53 }
 0x996   :  { %19402 = vmatpush3.msra.mxu1 %v17019_v53 }
 0x997   :  { %19403 = vmatprep.subr.mxu1 %v17026_v48 }
 0x998   :  { %19404 = vmatpush3.msra.mxu1 %v17026_v48 }
 0x999   :  { %19405 = vmatprep.subr.mxu1 %v17033_v32 }
 0x99a   :  { %19406 = vmatpush3.msra.mxu1 %v17033_v32 }
 0x99b   :  { %19445 = vmatprep.subr.mxu1 %v22196_v62 }
 0xa06   :  { %v16344_v13 = vpop.f32.mrf.mxu1 }
 0xa08   :  { %v16346_v6 = vpop.f32.mrf.mxu1 }
 0xa0a   :  { %v16351_v50 = vpop.f32.mrf.mxu1 }
 0xa0c   :  { %v16353_v8 = vpop.f32.mrf.mxu1 }
 0xa0e   :  { %v16181_v31 = vpop.f32.mrf.mxu0 }
 0xa0f   :  { %v16345_v12 = vadd.f32 %v16344_v13, %v16181_v31 }
 0xa10   :  { %v16183_v46 = vpop.f32.mrf.mxu0 }
 0xa13   :  { %v16192_v43 = vpop.f32.mrf.mxu0 }
 0xa14   :  { %v16352_v32 = vadd.f32 %v16351_v50, %v16192_v43 }
 0xa15   :  { %v16194_v11 = vpop.f32.mrf.mxu0 }
 0xa17   :  { %v16554_v52 = vpop.f32.mrf.mxu1 }
 0xa19   :  { %v16556_v35 = vpop.f32.mrf.mxu1 }
 0xa1c   :  { %v16563_v53 = vpop.f32.mrf.mxu1 }
 0xa1e   :  { %v16565_v1 = vpop.f32.mrf.mxu1 }
 0xa21   :  { %v16456_v37 = vpop.f32.mrf.mxu0 }
 0xa22   :  { %v16457_v48 = vadd.f32 %v16456_v37, %v16345_v12 }
 0xa23   :  { %v16458_v27 = vpop.f32.mrf.mxu0 }
 0xa24   :  { %v16555_v55 = vadd.f32 %v16554_v52, %v16457_v48 }
 0xa26   :  { %v16464_v42 = vpop.f32.mrf.mxu0 }
 0xa27   :  { %v16465_v51 = vadd.f32 %v16464_v42, %v16352_v32  ;;  %v16347_v42 = vadd.f32 %v16346_v6, %v16183_v46 }
 0xa28   :  { %v16466_v4 = vpop.f32.mrf.mxu0 }
 0xa29   :  { %v16564_v19 = vadd.f32 %v16563_v53, %v16465_v51  ;;  %v16459_v12 = vadd.f32 %v16458_v27, %v16347_v42 }
 0xa2b   :  { %v16778_v10 = vpop.f32.mrf.mxu1 }
 0xa2d   :  { %v16780_v2 = vpop.f32.mrf.mxu1 }
 0xa2f   :  { %v16785_v57 = vpop.f32.mrf.mxu1 }
 0xa31   :  { %v16787_v32 = vpop.f32.mrf.mxu1 }
 0xa33   :  { %v16683_v30 = vpop.f32.mrf.mxu0 }
 0xa34   :  { %v16684_v14 = vadd.f32 %v16683_v30, %v16555_v55  ;;  %v16354_v30 = vadd.f32 %v16353_v8, %v16194_v11 }
 0xa35   :  { %v16685_v22 = vpop.f32.mrf.mxu0 }
 0xa36   :  { %v16779_v23 = vadd.f32 %v16778_v10, %v16684_v14  ;;  %v16467_v55 = vadd.f32 %v16466_v4, %v16354_v30  ;;  %v16557_v14 = vadd.f32 %v16556_v35, %v16459_v12  ;;  %v22676_v30 = vld [vmem:[#allocation12_spill] sm:$0xff] }
 0xa37   :  { %v16690_v49 = vpop.f32.mrf.mxu0 }
 0xa38   :  { %v17538_v45 = vmul.f32 -1.442695, %v16779_v23  ;;  %v16691_v59 = vadd.f32 %v16690_v49, %v16564_v19  ;;  %v16686_v51 = vadd.f32 %v16685_v22, %v16557_v14  ;;  %v16566_v53 = vadd.f32 %v16565_v1, %v16467_v55  ;;  %v22677_v14 = vld [vmem:[#allocation13_spill] sm:$0xff] }
 0xa39   :  { %v16692_v10 = vpop.f32.mrf.mxu0 }
 0xa3a   :  { %19652 = vpow2.f32 %v17538_v45  ;;  %v16786_v13 = vadd.f32 %v16785_v57, %v16691_v59  ;;  %v16781_v45 = vadd.f32 %v16780_v2, %v16686_v51  ;;  %v16693_v57 = vadd.f32 %v16692_v10, %v16566_v53 }
 0xa3c   :  { %v17539_v31 = vmul.f32 -1.442695, %v16786_v13  ;;  %v16788_v6 = vadd.f32 %v16787_v32, %v16693_v57 }
 0xa3e   :  { %19654 = vpow2.f32 %v17539_v31 }
 0xa47   :  { %v19653_v37 = vpop.eup %19652 }
 0xa48   :  { %v16796_v50 = vadd.f32 1.0, %v19653_v37 }
 0xa4a   :  { %19656 = vrcp.f32 %v16796_v50 }
 0xa4b   :  { %v19655_v43 = vpop.eup %19654 }
 0xa4c   :  { %v16797_v52 = vadd.f32 1.0, %v19655_v43 }
 0xa4e   :  { %19658 = vrcp.f32 %v16797_v52 }
 0xa57   :  { %v19657_v49 = vpop.eup %19656 }
 0xa58   :  { %v16802_v19 = vmul.f32 %v19657_v49, %v16779_v23 }
 0xa5a   :  { %v16804_v59 = vmul.f32 %v16802_v19, %v16781_v45 }
 0xa5b   :  { %v19659_v48 = vpop.eup %19658 }
 0xa5c   :  { %v22435_v31 = vand.u32 4294901760, %v16804_v59  ;;  %v16803_v37 = vmul.f32 %v19659_v48, %v16786_v13 }
 0xa5e   :  { %v16904_v46 = vsub.f32 %v16804_v59, %v22435_v31  ;;  %v16805_v27 = vmul.f32 %v16803_v37, %v16788_v6  ;;  %19407 = vmatprep.mubr.f32.mxu1 %v22435_v31 }
 0xa60   :  { %v22439_v35 = vand.u32 4294901760, %v16805_v27  ;;  %v16905_v22 = vand.u32 4294901760, %v16904_v46 }
 0xa62   :  { %v22442_v4 = vsub.f32 %v16805_v27, %v22439_v35  ;;  %19408 = vmatmul.mubr.f32.vlgmr.msra.gmra.mxu1 %v22439_v35  ;;  %v16906_v23 = vsub.f32 %v16904_v46, %v16905_v22 }
 0xa63   :  { %19446 = vmatpush3.msra.mxu1 %v22196_v62  ;;  %19477 = vmatprep.mubr.f32.mxu1 %v16905_v22 }
 0xa64   :  { %v16915_v2 = vand.u32 4294901760, %v22442_v4  ;;  %19447 = vmatprep.subr.mxu1 %v22204_v7  ;;  %v16907_v1 = vand.u32 4294901760, %v16906_v23 }
 0xa65   :  { %19448 = vmatpush3.msra.mxu1 %v22204_v7 }
 0xa66   :  { %v16916_v8 = vsub.f32 %v22442_v4, %v16915_v2  ;;  %19449 = vmatprep.subr.mxu1 %v22217_v41  ;;  %19372 = vmatprep.mubr.f32.mxu0 %v16907_v1 }
 0xa67   :  { %19450 = vmatpush3.msra.mxu1 %v22217_v41 }
 0xa68   :  { %v16917_v11 = vand.u32 4294901760, %v16916_v8  ;;  %19451 = vmatprep.subr.mxu1 %v22232_v24 }
 0xa69   :  { %19452 = vmatpush3.msra.mxu1 %v22232_v24 }
 0xa6a   :  { %19453 = vmatprep.subr.mxu1 %v22248_v63  ;;  %19373 = vmatmul.mubr.f32.vlgmr.msra.gmra.mxu0 %v16917_v11 }
 0xa6b   :  { %19411 = vmatpush3.msra.mxu0 %v22202_v34  ;;  %19454 = vmatpush3.msra.mxu1 %v22248_v63  ;;  %v22661_v34 = vld [vmem:[#allocation15_spill] sm:$0xff] }
 0xa6c   :  { %19412 = vmatprep.subr.mxu0 %v22215_v26  ;;  %19442 = vmatprep.mubr.f32.mxu0 %v16904_v46 }
 0xa6d   :  { %19455 = vmatprep.subr.mxu1 %v22259_v47  ;;  %19413 = vmatpush3.msra.mxu0 %v22215_v26  ;;  %v22663_v26 = vld [vmem:[#allocation17_spill] sm:$0xff] }
 0xa6e   :  { %19456 = vmatpush3.msra.mxu1 %v22259_v47  ;;  %19414 = vmatprep.subr.mxu0 %v22230_v3 }
 0xa6f   :  { %19457 = vmatprep.subr.mxu1 %v22273_v25  ;;  %19415 = vmatpush3.msra.mxu0 %v22230_v3  ;;  %v22665_v3 = vld [vmem:[#allocation19_spill] sm:$0xff] }
 0xa70   :  { %19458 = vmatpush3.msra.mxu1 %v22273_v25  ;;  %19416 = vmatprep.subr.mxu0 %v22245_v18 }
 0xa71   :  { %19459 = vmatprep.subr.mxu1 %v22289_v9  ;;  %19417 = vmatpush3.msra.mxu0 %v22245_v18  ;;  %v22667_v18 = vld [vmem:[#allocation21_spill] sm:$0xff] }
 0xa72   :  { %19460 = vmatpush3.msra.mxu1 %v22289_v9  ;;  %19418 = vmatprep.subr.mxu0 %v22262_v28 }
 0xa73   :  { %19461 = vmatprep.subr.mxu1 %v22306_v61  ;;  %19419 = vmatpush3.msra.mxu0 %v22262_v28  ;;  %v22670_v28 = vld [vmem:[#allocation24_spill] sm:$0xff] }
 0xa74   :  { %19462 = vmatpush3.msra.mxu1 %v22306_v61  ;;  %19420 = vmatprep.subr.mxu0 %v22271_v39 }
 0xa75   :  { %19463 = vmatprep.subr.mxu1 %v22322_v60  ;;  %19421 = vmatpush3.msra.mxu0 %v22271_v39  ;;  %v22671_v39 = vld [vmem:[#allocation25_spill] sm:$0xff] }
 0xa76   :  { %19464 = vmatpush3.msra.mxu1 %v22322_v60  ;;  %19422 = vmatprep.subr.mxu0 %v22287_v16 }
 0xa77   :  { %19465 = vmatprep.subr.mxu1 %v22333_v20  ;;  %19423 = vmatpush3.msra.mxu0 %v22287_v16  ;;  %v22673_v16 = vld [vmem:[#allocation27_spill] sm:$0xff] }
 0xa78   :  { %19466 = vmatpush3.msra.mxu1 %v22333_v20  ;;  %19424 = vmatprep.subr.mxu0 %v22304_v56 }
 0xa79   :  { %19467 = vmatprep.subr.mxu1 %v22348_v17  ;;  %19425 = vmatpush3.msra.mxu0 %v22304_v56  ;;  %v22675_v56 = vld [vmem:[#allocation29_spill] sm:$0xff] }
 0xa7a   :  { %19468 = vmatpush3.msra.mxu1 %v22348_v17  ;;  %19426 = vmatprep.subr.mxu0 %v22319_v15 }
 0xa7b   :  { %19469 = vmatprep.subr.mxu1 %v22364_v36  ;;  %19427 = vmatpush3.msra.mxu0 %v22319_v15 }
 0xa7c   :  { %19470 = vmatpush3.msra.mxu1 %v22364_v36  ;;  %19428 = vmatprep.subr.mxu0 %v22337_v29 }
 0xa7d   :  { %19471 = vmatprep.subr.mxu1 %v22381_v54  ;;  %19429 = vmatpush3.msra.mxu0 %v22337_v29 }
 0xa7e   :  { %19472 = vmatpush3.msra.mxu1 %v22381_v54  ;;  %19430 = vmatprep.subr.mxu0 %v22346_v0 }
 0xa7f   :  { %19473 = vmatprep.subr.mxu1 %v22397_v58  ;;  %19431 = vmatpush3.msra.mxu0 %v22346_v0 }
 0xa80   :  { %19474 = vmatpush3.msra.mxu1 %v22397_v58  ;;  %19432 = vmatprep.subr.mxu0 %v22362_v33 }
 0xa81   :  { %19475 = vmatprep.subr.mxu1 %v22408_v44  ;;  %19433 = vmatpush3.msra.mxu0 %v22362_v33 }
 0xa82   :  { %19476 = vmatpush3.msra.mxu1 %v22408_v44  ;;  %19434 = vmatprep.subr.mxu0 %v22379_v5 }
 0xa83   :  { %19478 = vmatmul.mubr.f32.vlgmr.msra.gmra.mxu1 %v16915_v2  ;;  %19515 = vmatprep.subr.mxu1 %v22196_v62 }
 0xa84   :  { %19435 = vmatpush3.msra.mxu0 %v22379_v5  ;;  %19516 = vmatpush3.msra.mxu1 %v22196_v62  ;;  %v22660_v62 = vld [vmem:[#allocation14_spill] sm:$0xff] }
 0xa85   :  { %19547 = vmatprep.mubr.f32.mxu1 %v22435_v31  ;;  %19436 = vmatprep.subr.mxu0 %v22394_v21 }
 0xa86   :  { %19517 = vmatprep.subr.mxu1 %v22204_v7  ;;  %19437 = vmatpush3.msra.mxu0 %v22394_v21 }
 0xa87   :  { %19518 = vmatpush3.msra.mxu1 %v22204_v7  ;;  %19438 = vmatprep.subr.mxu0 %v22412_v38  ;;  %v22662_v7 = vld [vmem:[#allocation16_spill] sm:$0xff] }
 0xa88   :  { %19519 = vmatprep.subr.mxu1 %v22217_v41  ;;  %19439 = vmatpush3.msra.mxu0 %v22412_v38 }
 0xa89   :  { %19520 = vmatpush3.msra.mxu1 %v22217_v41  ;;  %19440 = vmatprep.subr.mxu0 %v22418_v40  ;;  %v22664_v41 = vld [vmem:[#allocation18_spill] sm:$0xff] }
 0xa8a   :  { %19521 = vmatprep.subr.mxu1 %v22232_v24  ;;  %19441 = vmatpush3.msra.mxu0 %v22418_v40 }
 0xa8b   :  { %19522 = vmatpush3.msra.mxu1 %v22232_v24  ;;  %19443 = vmatmul.mubr.f32.vlgmr.msra.gmra.mxu0 %v22442_v4  ;;  %v22666_v24 = vld [vmem:[#allocation20_spill] sm:$0xff] }
 0xa8c   :  { %19480 = vmatprep.subr.mxu0 %v22660_v62  ;;  %19523 = vmatprep.subr.mxu1 %v22248_v63 }
 0xa8d   :  { %19481 = vmatpush3.msra.mxu0 %v22660_v62  ;;  %19512 = vmatprep.mubr.f32.mxu0 %v22435_v31 }
 0xa8e   :  { %19524 = vmatpush3.msra.mxu1 %v22248_v63  ;;  %19482 = vmatprep.subr.mxu0 %v22661_v34  ;;  %v22668_v63 = vld [vmem:[#allocation22_spill] sm:$0xff] }
 0xa8f   :  { %19525 = vmatprep.subr.mxu1 %v22259_v47  ;;  %19483 = vmatpush3.msra.mxu0 %v22661_v34 }
 0xa90   :  { %19526 = vmatpush3.msra.mxu1 %v22259_v47  ;;  %19484 = vmatprep.subr.mxu0 %v22662_v7  ;;  %v22669_v47 = vld [vmem:[#allocation23_spill] sm:$0xff] }
 0xa91   :  { %19527 = vmatprep.subr.mxu1 %v22273_v25  ;;  %19485 = vmatpush3.msra.mxu0 %v22662_v7 }
 0xa92   :  { %19528 = vmatpush3.msra.mxu1 %v22273_v25  ;;  %19486 = vmatprep.subr.mxu0 %v22663_v26  ;;  %v22672_v25 = vld [vmem:[#allocation26_spill] sm:$0xff] }
 0xa93   :  { %19529 = vmatprep.subr.mxu1 %v22289_v9  ;;  %19487 = vmatpush3.msra.mxu0 %v22663_v26 }
 0xa94   :  { %19530 = vmatpush3.msra.mxu1 %v22289_v9  ;;  %19488 = vmatprep.subr.mxu0 %v22664_v41  ;;  %v22674_v9 = vld [vmem:[#allocation28_spill] sm:$0xff] }
 0xa95   :  { %19531 = vmatprep.subr.mxu1 %v22306_v61  ;;  %19489 = vmatpush3.msra.mxu0 %v22664_v41 }
 0xa96   :  { %19532 = vmatpush3.msra.mxu1 %v22306_v61  ;;  %19490 = vmatprep.subr.mxu0 %v22665_v3 }
 0xa97   :  { %19533 = vmatprep.subr.mxu1 %v22322_v60  ;;  %19491 = vmatpush3.msra.mxu0 %v22665_v3 }
 0xa98   :  { %19534 = vmatpush3.msra.mxu1 %v22322_v60  ;;  %19492 = vmatprep.subr.mxu0 %v22666_v24 }
 0xa99   :  { %19535 = vmatprep.subr.mxu1 %v22333_v20  ;;  %19493 = vmatpush3.msra.mxu0 %v22666_v24 }
 0xa9a   :  { %19536 = vmatpush3.msra.mxu1 %v22333_v20  ;;  %19494 = vmatprep.subr.mxu0 %v22667_v18 }
 0xa9b   :  { %19537 = vmatprep.subr.mxu1 %v22348_v17  ;;  %19495 = vmatpush3.msra.mxu0 %v22667_v18 }
 0xa9c   :  { %19538 = vmatpush3.msra.mxu1 %v22348_v17  ;;  %19496 = vmatprep.subr.mxu0 %v22668_v63 }
 0xa9d   :  { %19539 = vmatprep.subr.mxu1 %v22364_v36  ;;  %19497 = vmatpush3.msra.mxu0 %v22668_v63 }
 0xa9e   :  { %19540 = vmatpush3.msra.mxu1 %v22364_v36  ;;  %19498 = vmatprep.subr.mxu0 %v22669_v47 }
 0xa9f   :  { %19541 = vmatprep.subr.mxu1 %v22381_v54  ;;  %19499 = vmatpush3.msra.mxu0 %v22669_v47 }
 0xaa0   :  { %19542 = vmatpush3.msra.mxu1 %v22381_v54  ;;  %19500 = vmatprep.subr.mxu0 %v22670_v28 }
 0xaa1   :  { %19543 = vmatprep.subr.mxu1 %v22397_v58  ;;  %19501 = vmatpush3.msra.mxu0 %v22670_v28 }
 0xaa2   :  { %19544 = vmatpush3.msra.mxu1 %v22397_v58  ;;  %19502 = vmatprep.subr.mxu0 %v22671_v39 }
 0xaa3   :  { %19545 = vmatprep.subr.mxu1 %v22408_v44  ;;  %19503 = vmatpush3.msra.mxu0 %v22671_v39 }
 0xaa4   :  { %19546 = vmatpush3.msra.mxu1 %v22408_v44  ;;  %19504 = vmatprep.subr.mxu0 %v22672_v25 }
 0xaa5   :  { %19548 = vmatmul.mubr.f32.vlgmr.msra.gmra.mxu1 %v22439_v35  ;;  %19505 = vmatpush3.msra.mxu0 %v22672_v25 }
 0xaa6   :  { %19506 = vmatprep.subr.mxu0 %v22673_v16 }
 0xaa7   :  { %19507 = vmatpush3.msra.mxu0 %v22673_v16 }
 0xaa8   :  { %19508 = vmatprep.subr.mxu0 %v22674_v9 }
 0xaa9   :  { %19509 = vmatpush3.msra.mxu0 %v22674_v9 }
 0xaaa   :  { %19510 = vmatprep.subr.mxu0 %v22675_v56 }
 0xaab   :  { %19511 = vmatpush3.msra.mxu0 %v22675_v56 }
 0xaac   :  { %19513 = vmatmul.mubr.f32.vlgmr.msra.gmra.mxu0 %v22439_v35 }
 0xb22   :  { %v19409_v15 = vpop.f32.mrf.mxu1 }
 0xb24   :  { %v17070_v29 = vpop.f32.mrf.mxu1 }
 0xb2a   :  { %v19374_v61 = vpop.f32.mrf.mxu0 }
 0xb2b   :  { %v17077_v0 = vadd.f32 %v19409_v15, %v19374_v61 }
 0xb2c   :  { %v16909_v60 = vpop.f32.mrf.mxu0 }
 0xb2d   :  { %v17071_v36 = vadd.f32 %v17070_v29, %v16909_v60 }
 0xb43   :  { %v19479_v17 = vpop.f32.mrf.mxu1 }
 0xb45   :  { %v17276_v21 = vpop.f32.mrf.mxu1 }
 0xb4b   :  { %v19444_v20 = vpop.f32.mrf.mxu0 }
 0xb4c   :  { %v17188_v5 = vadd.f32 %v19444_v20, %v17077_v0 }
 0xb4d   :  { %v17180_v33 = vpop.f32.mrf.mxu0 }
 0xb4e   :  { %v17181_v54 = vadd.f32 %v17180_v33, %v17071_v36  ;;  %v17285_v58 = vadd.f32 %v19479_v17, %v17188_v5 }
 0xb50   :  { %v17277_v13 = vadd.f32 %v17276_v21, %v17181_v54 }
 0xb65   :  { %v19549_v44 = vpop.f32.mrf.mxu1 }
 0xb67   :  { %v17496_v52 = vpop.f32.mrf.mxu1 }
 0xb6c   :  { %v19514_v38 = vpop.f32.mrf.mxu0 }
 0xb6d   :  { %v17410_v40 = vadd.f32 %v19514_v38, %v17285_v58 }
 0xb6e   :  { %v17403_v50 = vpop.f32.mrf.mxu0 }
 0xb6f   :  { %v17503_v43 = vadd.f32 %v19549_v44, %v17410_v40  ;;  %v17404_v42 = vadd.f32 %v17403_v50, %v17277_v13 }
 0xb71   :  { %v17497_v12 = vadd.f32 %v17496_v52, %v17404_v42  ;;  %v17507_v55 = vadd.f32 %v17503_v43, %v22676_v30 }
 0xb73   :  { %17512 = vrot.lane.b32.xlu1 %v17507_v55, %s19761_s12  ;;  %17518 = vst.msk [vmem:[#allocation8 + $0x10] sm:$0xff] %vm80_vm0, %v17507_v55  ;;  %v17506_v51 = vadd.f32 %v17497_v12, %v22677_v14 }
 0xb75   :  { %17510 = vrot.lane.b32.xlu0 %v17506_v51, %s19761_s12  ;;  %17516 = vst.msk [vmem:[#allocation8] sm:$0xff] %vm80_vm0, %v17506_v51 }
 0xbe5   :  { %v17513_v10 = vpop.permute.xlu1 %17512 }
 0xbe6   :  { %17519 = vst.msk [vmem:[#allocation8 + $0x18] sm:$0xff] %vm80_vm0, %v17513_v10 }
 0xbe7   :  { %v17511_v53 = vpop.permute.xlu0 %17510 }
 0xbe8   :  { %17517 = vst.msk [vmem:[#allocation8 + $0x8] sm:$0xff] %vm80_vm0, %v17511_v53 }
 0xbe9   :  { %19736 = shalt.err (!%p19733_p5)
}
 0xbea   :  { %17531 = dma.vmem_to_hbm [thread:$0]  %s17526_s14, 512, %s22599_s7, [#allocation4], %s19753_s29, %s19753_s29, %s19754_s30  }
 0xbeb   :  { %19749 = dma.done.wait [#allocation4], 512  }
 0xbec   :  { %19750 = vsyncadd [#allocation4], 4294966784 }
 0xbed   :  { %17535 = vsyncpa [#allocation3], 1 }
 0xbee   :  { %17536 = vsyncpa [#allocation6], 1 }
 0xbef   :  { %17537 = vsyncpa [#allocation4], 1 }

</bundles_post_ra>
